<compile_context>
chip_gen: v6e
topology: v6e:2x2x1
jax: 0.10.0
libtpu: 0.0.40
codegen_flags: <defaults>
</compile_context>

<pallas_src>
import functools
import math

import jax
import jax.numpy as jnp
from jax.experimental import pallas as pl
from jax.experimental.pallas import tpu as pltpu


# ------------------------------ fused kernel -------------------------------

def _seq2seq_kernel(tok_oh_ref, mask_ref,
                    enc_w_ref, enc_u_ref, enc_b_ref,
                    dec_w_ref, dec_u_ref, dec_b_ref,
                    fc_w_ref, fc_b_ref,
                    rand_ref, gumbel_ref,
                    out_ref, *, T, B, V, H, inv_temp):
    """Whole Seq2Seq forward in one kernel.

    tok_oh_ref : [T, B, V] f32  one-hot tokens (temp_input_ids layout)
    mask_ref   : [B, T]    f32  attention mask
    enc_w_ref  : [V, 4H]   f32  enc_emb @ enc_W_ih   (embedding fused into the ih weight)
    enc_u_ref  : [H, 4H]   f32  enc_W_hh
    enc_b_ref  : [1, 4H]   f32  enc bias (b_ih + b_hh)
    dec_*      : same for the decoder
    fc_w_ref   : [H, V], fc_b_ref : [1, V]
    rand_ref   : [B, V]    f32  random init of outputs[0] (torch.rand slot that is
                                consumed when mask[b,0]==1 but never written)
    gumbel_ref : [T, B, V] f32  gumbel noise, one slab per output position
    out_ref    : [T, B, V] f32  per-position one-hots ("onehots" in [T,B,V] layout)
    """
    f32 = jnp.float32
    iota_v = jax.lax.broadcasted_iota(jnp.int32, (B, V), 1)

    def lstm_step(x_oh, h, c, w_ref, u_ref, b_ref):
        # gates = onehot @ (emb @ W_ih) + h @ W_hh + b   -- PyTorch gate order i, f, g, o
        gates = (jnp.dot(x_oh, w_ref[...], preferred_element_type=f32)
                 + jnp.dot(h, u_ref[...], preferred_element_type=f32)
                 + b_ref[...])
        i = jax.nn.sigmoid(gates[:, 0:H])
        f = jax.nn.sigmoid(gates[:, H:2 * H])
        g = jnp.tanh(gates[:, 2 * H:3 * H])
        o = jax.nn.sigmoid(gates[:, 3 * H:4 * H])
        c_new = f * c + i * g
        h_new = o * jnp.tanh(c_new)
        return h_new, c_new

    def gumbel_hard(logits, noise):
        # argmax is invariant under softmax, so skip exp/normalize entirely; first-index
        # tie-breaking (max + min-over-iota) matches torch's .max(dim=-1).
        # TODO(synk): straight-through gradient ((hard-soft).detach()+soft) is not wired
        #             (forward value is identical); no custom VJP defined for this kernel.
        y = (logits + noise) * inv_temp
        m = jnp.max(y, axis=-1, keepdims=True)
        idx = jnp.min(jnp.where(y == m, iota_v, V), axis=-1, keepdims=True)
        return (iota_v == idx).astype(f32)

    # ---------------- encoder: T steps, weights stay resident in VMEM ----------------
    h = jnp.zeros((B, H), f32)
    c = jnp.zeros((B, H), f32)
    for t in range(T):                       # static trip count -> fully unrolled
        h, c = lstm_step(tok_oh_ref[t], h, c, enc_w_ref, enc_u_ref, enc_b_ref)

    # ---------------- position t = 0 ----------------
    # masked rows consume the random-initialized outputs[0] slot (never written by the
    # decoder); unmasked rows are the token one-hot.
    hard0 = gumbel_hard(rand_ref[...], gumbel_ref[0])
    out_ref[0] = jnp.where(mask_ref[:, 0:1] > 0.5, hard0, tok_oh_ref[0])

    # ---------------- decoder: T-1 steps with fc_out + gumbel-hard fused ----------------
    for t in range(1, T):
        h, c = lstm_step(tok_oh_ref[t - 1], h, c, dec_w_ref, dec_u_ref, dec_b_ref)
        pred = jnp.dot(h, fc_w_ref[...], preferred_element_type=f32) + fc_b_ref[...]
        hard = gumbel_hard(pred, gumbel_ref[t])
        out_ref[t] = jnp.where(mask_ref[:, t:t + 1] > 0.5, hard, tok_oh_ref[t])
        # TODO(synk): at V=32 these are masked lane stores; pad V to a 128-lane multiple
        #             for the output slab if vocab is scaled up.


# ------------------------------- parameters --------------------------------

def init_params(key, vocab=32, emb=16, hid=32):
    ks = jax.random.split(key, 9)

    def u(k, shape, scale=0.1):
        return jax.random.uniform(k, shape, jnp.float32, -scale, scale)

    # arrays only (keeps the dict jit-friendly); dims are recovered from shapes.
    return {
        'enc_emb': u(ks[0], (vocab, emb)),
        'enc_wih': u(ks[1], (emb, 4 * hid)),
        'enc_whh': u(ks[2], (hid, 4 * hid)),
        'enc_b':   u(ks[3], (1, 4 * hid)),      # = b_ih + b_hh
        'dec_emb': u(ks[4], (vocab, emb)),
        'dec_wih': u(ks[5], (emb, 4 * hid)),
        'dec_whh': u(ks[6], (hid, 4 * hid)),
        'dec_b':   u(ks[7], (1, 4 * hid)),      # = b_ih + b_hh
        'fc_w':    u(ks[8], (hid, vocab)),
        'fc_b':    jnp.zeros((1, vocab), jnp.float32),
    }


# ------------------------------ forward pass -------------------------------

@functools.partial(jax.jit, static_argnames=('update_step',))
def seq2seq_forward(params, input_ids, my_attention_mask, key, *, update_step):
    V, _E = params['enc_emb'].shape
    H = params['enc_whh'].shape[0]
    T = input_ids.shape[-1]

    ids2d = input_ids.reshape(-1, T)                               # [B, T]
    B = ids2d.shape[0]
    temp_input_ids = ids2d.T                                       # [T, B]
    maskf = my_attention_mask.reshape(-1, T).astype(jnp.float32)   # [B, T]

    # token one-hots once for the whole sequence (used for the embedding matmul inside
    # the kernel and as the mask==0 passthrough rows).
    tok_oh = jax.nn.one_hot(temp_input_ids, V, dtype=jnp.float32)  # [T, B, V]

    # fold the embedding table into the LSTM input weight: onehot @ (emb @ W_ih)
    enc_w = jnp.dot(params['enc_emb'], params['enc_wih'])          # [V, 4H]
    dec_w = jnp.dot(params['dec_emb'], params['dec_wih'])          # [V, 4H]

    temperature = max(0.5, math.exp(-1 * 0.003 * update_step))
    inv_temp = 1.0 / float(temperature)

    k_rand, k_gumbel = jax.random.split(key)
    rand0 = jax.random.uniform(k_rand, (B, V), dtype=jnp.float32)  # torch.rand outputs[0]
    eps = 1e-20
    U = jax.random.uniform(k_gumbel, (T, B, V), dtype=jnp.float32)
    gumbel = -jnp.log(-jnp.log(U + eps) + eps)

    out = pl.pallas_call(
        functools.partial(_seq2seq_kernel, T=T, B=B, V=V, H=H, inv_temp=inv_temp),
        out_shape=jax.ShapeDtypeStruct((T, B, V), jnp.float32),
        in_specs=[pl.BlockSpec(memory_space=pltpu.MemorySpace.VMEM)] * 12,
        out_specs=pl.BlockSpec(memory_space=pltpu.MemorySpace.VMEM),
    )(tok_oh, maskf,
      enc_w, params['enc_whh'], params['enc_b'],
      dec_w, params['dec_whh'], params['dec_b'],
      params['fc_w'], params['fc_b'],
      rand0, gumbel)

    # [T, B, V] -> [B, T, V] -> [B*T, V]  (torch layout)
    onehots = jnp.transpose(out, (1, 0, 2)).reshape(B * T, V)
    # TODO(synk): torch `.to_sparse()` has no Pallas/JAX equivalent; returning dense.

    return {
        'update_step': update_step,
        'input_ids': input_ids,
        'inputs_embeds': onehots,
        'my_attention_mask': my_attention_mask,
    }


# ---------------------------------- main -----------------------------------

if __name__ == "__main__":
    key = jax.random.PRNGKey(0)
    kp, kid, kfwd = jax.random.split(key, 3)

    B, T, V, E, H = 2, 8, 32, 16, 32
    params = init_params(kp, vocab=V, emb=E, hid=H)

    input_ids = jax.random.randint(kid, (B, T), 0, V, dtype=jnp.int32)
    lengths = jnp.array([6, 4], dtype=jnp.int32)
    my_attention_mask = (jnp.arange(T)[None, :] < lengths[:, None]).astype(jnp.int32)

    out = seq2seq_forward(params, input_ids, my_attention_mask, kfwd, update_step=100)
    jax.block_until_ready(out['inputs_embeds'])

    assert out['inputs_embeds'].shape == (B * T, V)
    # every output row is a one-hot (gumbel-hard or token passthrough)
    assert bool(jnp.allclose(out['inputs_embeds'].sum(axis=-1), 1.0, atol=1e-5))
    print("KERNEL_OK")
</pallas_src>

<mosaic_0001>
module attributes {stable_mosaic.version = 11 : i64} {
  func.func @_seq2seq_kernel(%arg0: memref<8x2x32xf32, #tpu.memory_space<vmem>>, %arg1: memref<2x8xf32, #tpu.memory_space<vmem>>, %arg2: memref<32x128xf32, #tpu.memory_space<vmem>>, %arg3: memref<32x128xf32, #tpu.memory_space<vmem>>, %arg4: memref<1x128xf32, #tpu.memory_space<vmem>>, %arg5: memref<32x128xf32, #tpu.memory_space<vmem>>, %arg6: memref<32x128xf32, #tpu.memory_space<vmem>>, %arg7: memref<1x128xf32, #tpu.memory_space<vmem>>, %arg8: memref<32x32xf32, #tpu.memory_space<vmem>>, %arg9: memref<1x32xf32, #tpu.memory_space<vmem>>, %arg10: memref<2x32xf32, #tpu.memory_space<vmem>>, %arg11: memref<8x2x32xf32, #tpu.memory_space<vmem>>, %arg12: memref<8x2x32xf32, #tpu.memory_space<vmem>>) attributes {dimension_semantics = [], scalar_prefetch = 0 : i64, scratch_operands = 0 : i64, tpu.core_type = #tpu.core_type<tc>} {
    %0 = tpu.iota {dimensions = array<i32: 1>} : vector<2x32xi32>
    %cst = arith.constant 0.000000e+00 : f32
    %1 = vector.broadcast %cst : f32 to vector<2x32xf32>
    %cst_0 = arith.constant 0.000000e+00 : f32
    %2 = vector.broadcast %cst_0 : f32 to vector<2x32xf32>
    %c0 = arith.constant 0 : index
    %c0_1 = arith.constant 0 : index
    %c0_2 = arith.constant 0 : index
    %3 = vector.load %arg0[%c0, %c0_1, %c0_2] : memref<8x2x32xf32, #tpu.memory_space<vmem>>, vector<1x2x32xf32>
    %4 = vector.shape_cast %3 : vector<1x2x32xf32> to vector<2x32xf32>
    %c0_3 = arith.constant 0 : index
    %c0_4 = arith.constant 0 : index
    %5 = vector.load %arg2[%c0_3, %c0_4] : memref<32x128xf32, #tpu.memory_space<vmem>>, vector<32x128xf32>
    %cst_5 = arith.constant dense<0.000000e+00> : vector<2x128xf32>
    %6 = tpu.matmul %4, %5, %cst_5 {dimension_numbers = #tpu.dot_dimension_numbers<[1], [0], [0], [1], [0, 0, 1, 1], [], []>} : vector<2x32xf32>, vector<32x128xf32>, vector<2x128xf32> -> vector<2x128xf32>
    %c0_6 = arith.constant 0 : index
    %c0_7 = arith.constant 0 : index
    %7 = vector.load %arg3[%c0_6, %c0_7] : memref<32x128xf32, #tpu.memory_space<vmem>>, vector<32x128xf32>
    %cst_8 = arith.constant dense<0.000000e+00> : vector<2x128xf32>
    %8 = tpu.matmul %1, %7, %cst_8 {dimension_numbers = #tpu.dot_dimension_numbers<[1], [0], [0], [1], [0, 0, 1, 1], [], []>} : vector<2x32xf32>, vector<32x128xf32>, vector<2x128xf32> -> vector<2x128xf32>
    %9 = arith.addf %6, %8 : vector<2x128xf32>
    %c0_9 = arith.constant 0 : index
    %c0_10 = arith.constant 0 : index
    %10 = vector.load %arg4[%c0_9, %c0_10] : memref<1x128xf32, #tpu.memory_space<vmem>>, vector<1x128xf32>
    %11 = vector.broadcast %10 : vector<1x128xf32> to vector<2x128xf32>
    %12 = arith.addf %9, %11 : vector<2x128xf32>
    %13 = vector.extract_strided_slice %12 {offsets = [0, 0], sizes = [2, 32], strides = [1, 1]} : vector<2x128xf32> to vector<2x32xf32>
    %14 = arith.negf %13 : vector<2x32xf32>
    %15 = math.exp %14 : vector<2x32xf32>
    %cst_11 = arith.constant 1.000000e+00 : f32
    %16 = vector.broadcast %cst_11 : f32 to vector<2x32xf32>
    %17 = arith.addf %16, %15 : vector<2x32xf32>
    %18 = arith.divf %16, %17 : vector<2x32xf32>
    %19 = vector.extract_strided_slice %12 {offsets = [0, 32], sizes = [2, 32], strides = [1, 1]} : vector<2x128xf32> to vector<2x32xf32>
    %20 = arith.negf %19 : vector<2x32xf32>
    %21 = math.exp %20 : vector<2x32xf32>
    %cst_12 = arith.constant 1.000000e+00 : f32
    %22 = vector.broadcast %cst_12 : f32 to vector<2x32xf32>
    %23 = arith.addf %22, %21 : vector<2x32xf32>
    %24 = arith.divf %22, %23 : vector<2x32xf32>
    %25 = vector.extract_strided_slice %12 {offsets = [0, 64], sizes = [2, 32], strides = [1, 1]} : vector<2x128xf32> to vector<2x32xf32>
    %26 = math.tanh %25 : vector<2x32xf32>
    %27 = vector.extract_strided_slice %12 {offsets = [0, 96], sizes = [2, 32], strides = [1, 1]} : vector<2x128xf32> to vector<2x32xf32>
    %28 = arith.negf %27 : vector<2x32xf32>
    %29 = math.exp %28 : vector<2x32xf32>
    %cst_13 = arith.constant 1.000000e+00 : f32
    %30 = vector.broadcast %cst_13 : f32 to vector<2x32xf32>
    %31 = arith.addf %30, %29 : vector<2x32xf32>
    %32 = arith.divf %30, %31 : vector<2x32xf32>
    %33 = arith.mulf %24, %2 : vector<2x32xf32>
    %34 = arith.mulf %18, %26 : vector<2x32xf32>
    %35 = arith.addf %33, %34 : vector<2x32xf32>
    %36 = math.tanh %35 : vector<2x32xf32>
    %37 = arith.mulf %32, %36 : vector<2x32xf32>
    %c1 = arith.constant 1 : index
    %c0_14 = arith.constant 0 : index
    %c0_15 = arith.constant 0 : index
    %38 = vector.load %arg0[%c1, %c0_14, %c0_15] : memref<8x2x32xf32, #tpu.memory_space<vmem>>, vector<1x2x32xf32>
    %39 = vector.shape_cast %38 : vector<1x2x32xf32> to vector<2x32xf32>
    %c0_16 = arith.constant 0 : index
    %c0_17 = arith.constant 0 : index
    %40 = vector.load %arg2[%c0_16, %c0_17] : memref<32x128xf32, #tpu.memory_space<vmem>>, vector<32x128xf32>
    %cst_18 = arith.constant dense<0.000000e+00> : vector<2x128xf32>
    %41 = tpu.matmul %39, %40, %cst_18 {dimension_numbers = #tpu.dot_dimension_numbers<[1], [0], [0], [1], [0, 0, 1, 1], [], []>} : vector<2x32xf32>, vector<32x128xf32>, vector<2x128xf32> -> vector<2x128xf32>
    %c0_19 = arith.constant 0 : index
    %c0_20 = arith.constant 0 : index
    %42 = vector.load %arg3[%c0_19, %c0_20] : memref<32x128xf32, #tpu.memory_space<vmem>>, vector<32x128xf32>
    %cst_21 = arith.constant dense<0.000000e+00> : vector<2x128xf32>
    %43 = tpu.matmul %37, %42, %cst_21 {dimension_numbers = #tpu.dot_dimension_numbers<[1], [0], [0], [1], [0, 0, 1, 1], [], []>} : vector<2x32xf32>, vector<32x128xf32>, vector<2x128xf32> -> vector<2x128xf32>
    %44 = arith.addf %41, %43 : vector<2x128xf32>
    %c0_22 = arith.constant 0 : index
    %c0_23 = arith.constant 0 : index
    %45 = vector.load %arg4[%c0_22, %c0_23] : memref<1x128xf32, #tpu.memory_space<vmem>>, vector<1x128xf32>
    %46 = vector.broadcast %45 : vector<1x128xf32> to vector<2x128xf32>
    %47 = arith.addf %44, %46 : vector<2x128xf32>
    %48 = vector.extract_strided_slice %47 {offsets = [0, 0], sizes = [2, 32], strides = [1, 1]} : vector<2x128xf32> to vector<2x32xf32>
    %49 = arith.negf %48 : vector<2x32xf32>
    %50 = math.exp %49 : vector<2x32xf32>
    %cst_24 = arith.constant 1.000000e+00 : f32
    %51 = vector.broadcast %cst_24 : f32 to vector<2x32xf32>
    %52 = arith.addf %51, %50 : vector<2x32xf32>
    %53 = arith.divf %51, %52 : vector<2x32xf32>
    %54 = vector.extract_strided_slice %47 {offsets = [0, 32], sizes = [2, 32], strides = [1, 1]} : vector<2x128xf32> to vector<2x32xf32>
    %55 = arith.negf %54 : vector<2x32xf32>
    %56 = math.exp %55 : vector<2x32xf32>
    %cst_25 = arith.constant 1.000000e+00 : f32
    %57 = vector.broadcast %cst_25 : f32 to vector<2x32xf32>
    %58 = arith.addf %57, %56 : vector<2x32xf32>
    %59 = arith.divf %57, %58 : vector<2x32xf32>
    %60 = vector.extract_strided_slice %47 {offsets = [0, 64], sizes = [2, 32], strides = [1, 1]} : vector<2x128xf32> to vector<2x32xf32>
    %61 = math.tanh %60 : vector<2x32xf32>
    %62 = vector.extract_strided_slice %47 {offsets = [0, 96], sizes = [2, 32], strides = [1, 1]} : vector<2x128xf32> to vector<2x32xf32>
    %63 = arith.negf %62 : vector<2x32xf32>
    %64 = math.exp %63 : vector<2x32xf32>
    %cst_26 = arith.constant 1.000000e+00 : f32
    %65 = vector.broadcast %cst_26 : f32 to vector<2x32xf32>
    %66 = arith.addf %65, %64 : vector<2x32xf32>
    %67 = arith.divf %65, %66 : vector<2x32xf32>
    %68 = arith.mulf %59, %35 : vector<2x32xf32>
    %69 = arith.mulf %53, %61 : vector<2x32xf32>
    %70 = arith.addf %68, %69 : vector<2x32xf32>
    %71 = math.tanh %70 : vector<2x32xf32>
    %72 = arith.mulf %67, %71 : vector<2x32xf32>
    %c2 = arith.constant 2 : index
    %c0_27 = arith.constant 0 : index
    %c0_28 = arith.constant 0 : index
    %73 = vector.load %arg0[%c2, %c0_27, %c0_28] : memref<8x2x32xf32, #tpu.memory_space<vmem>>, vector<1x2x32xf32>
    %74 = vector.shape_cast %73 : vector<1x2x32xf32> to vector<2x32xf32>
    %c0_29 = arith.constant 0 : index
    %c0_30 = arith.constant 0 : index
    %75 = vector.load %arg2[%c0_29, %c0_30] : memref<32x128xf32, #tpu.memory_space<vmem>>, vector<32x128xf32>
    %cst_31 = arith.constant dense<0.000000e+00> : vector<2x128xf32>
    %76 = tpu.matmul %74, %75, %cst_31 {dimension_numbers = #tpu.dot_dimension_numbers<[1], [0], [0], [1], [0, 0, 1, 1], [], []>} : vector<2x32xf32>, vector<32x128xf32>, vector<2x128xf32> -> vector<2x128xf32>
    %c0_32 = arith.constant 0 : index
    %c0_33 = arith.constant 0 : index
    %77 = vector.load %arg3[%c0_32, %c0_33] : memref<32x128xf32, #tpu.memory_space<vmem>>, vector<32x128xf32>
    %cst_34 = arith.constant dense<0.000000e+00> : vector<2x128xf32>
    %78 = tpu.matmul %72, %77, %cst_34 {dimension_numbers = #tpu.dot_dimension_numbers<[1], [0], [0], [1], [0, 0, 1, 1], [], []>} : vector<2x32xf32>, vector<32x128xf32>, vector<2x128xf32> -> vector<2x128xf32>
    %79 = arith.addf %76, %78 : vector<2x128xf32>
    %c0_35 = arith.constant 0 : index
    %c0_36 = arith.constant 0 : index
    %80 = vector.load %arg4[%c0_35, %c0_36] : memref<1x128xf32, #tpu.memory_space<vmem>>, vector<1x128xf32>
    %81 = vector.broadcast %80 : vector<1x128xf32> to vector<2x128xf32>
    %82 = arith.addf %79, %81 : vector<2x128xf32>
    %83 = vector.extract_strided_slice %82 {offsets = [0, 0], sizes = [2, 32], strides = [1, 1]} : vector<2x128xf32> to vector<2x32xf32>
    %84 = arith.negf %83 : vector<2x32xf32>
    %85 = math.exp %84 : vector<2x32xf32>
    %cst_37 = arith.constant 1.000000e+00 : f32
    %86 = vector.broadcast %cst_37 : f32 to vector<2x32xf32>
    %87 = arith.addf %86, %85 : vector<2x32xf32>
    %88 = arith.divf %86, %87 : vector<2x32xf32>
    %89 = vector.extract_strided_slice %82 {offsets = [0, 32], sizes = [2, 32], strides = [1, 1]} : vector<2x128xf32> to vector<2x32xf32>
    %90 = arith.negf %89 : vector<2x32xf32>
    %91 = math.exp %90 : vector<2x32xf32>
    %cst_38 = arith.constant 1.000000e+00 : f32
    %92 = vector.broadcast %cst_38 : f32 to vector<2x32xf32>
    %93 = arith.addf %92, %91 : vector<2x32xf32>
    %94 = arith.divf %92, %93 : vector<2x32xf32>
    %95 = vector.extract_strided_slice %82 {offsets = [0, 64], sizes = [2, 32], strides = [1, 1]} : vector<2x128xf32> to vector<2x32xf32>
    %96 = math.tanh %95 : vector<2x32xf32>
    %97 = vector.extract_strided_slice %82 {offsets = [0, 96], sizes = [2, 32], strides = [1, 1]} : vector<2x128xf32> to vector<2x32xf32>
    %98 = arith.negf %97 : vector<2x32xf32>
    %99 = math.exp %98 : vector<2x32xf32>
    %cst_39 = arith.constant 1.000000e+00 : f32
    %100 = vector.broadcast %cst_39 : f32 to vector<2x32xf32>
    %101 = arith.addf %100, %99 : vector<2x32xf32>
    %102 = arith.divf %100, %101 : vector<2x32xf32>
    %103 = arith.mulf %94, %70 : vector<2x32xf32>
    %104 = arith.mulf %88, %96 : vector<2x32xf32>
    %105 = arith.addf %103, %104 : vector<2x32xf32>
    %106 = math.tanh %105 : vector<2x32xf32>
    %107 = arith.mulf %102, %106 : vector<2x32xf32>
    %c3 = arith.constant 3 : index
    %c0_40 = arith.constant 0 : index
    %c0_41 = arith.constant 0 : index
    %108 = vector.load %arg0[%c3, %c0_40, %c0_41] : memref<8x2x32xf32, #tpu.memory_space<vmem>>, vector<1x2x32xf32>
    %109 = vector.shape_cast %108 : vector<1x2x32xf32> to vector<2x32xf32>
    %c0_42 = arith.constant 0 : index
    %c0_43 = arith.constant 0 : index
    %110 = vector.load %arg2[%c0_42, %c0_43] : memref<32x128xf32, #tpu.memory_space<vmem>>, vector<32x128xf32>
    %cst_44 = arith.constant dense<0.000000e+00> : vector<2x128xf32>
    %111 = tpu.matmul %109, %110, %cst_44 {dimension_numbers = #tpu.dot_dimension_numbers<[1], [0], [0], [1], [0, 0, 1, 1], [], []>} : vector<2x32xf32>, vector<32x128xf32>, vector<2x128xf32> -> vector<2x128xf32>
    %c0_45 = arith.constant 0 : index
    %c0_46 = arith.constant 0 : index
    %112 = vector.load %arg3[%c0_45, %c0_46] : memref<32x128xf32, #tpu.memory_space<vmem>>, vector<32x128xf32>
    %cst_47 = arith.constant dense<0.000000e+00> : vector<2x128xf32>
    %113 = tpu.matmul %107, %112, %cst_47 {dimension_numbers = #tpu.dot_dimension_numbers<[1], [0], [0], [1], [0, 0, 1, 1], [], []>} : vector<2x32xf32>, vector<32x128xf32>, vector<2x128xf32> -> vector<2x128xf32>
    %114 = arith.addf %111, %113 : vector<2x128xf32>
    %c0_48 = arith.constant 0 : index
    %c0_49 = arith.constant 0 : index
    %115 = vector.load %arg4[%c0_48, %c0_49] : memref<1x128xf32, #tpu.memory_space<vmem>>, vector<1x128xf32>
    %116 = vector.broadcast %115 : vector<1x128xf32> to vector<2x128xf32>
    %117 = arith.addf %114, %116 : vector<2x128xf32>
    %118 = vector.extract_strided_slice %117 {offsets = [0, 0], sizes = [2, 32], strides = [1, 1]} : vector<2x128xf32> to vector<2x32xf32>
    %119 = arith.negf %118 : vector<2x32xf32>
    %120 = math.exp %119 : vector<2x32xf32>
    %cst_50 = arith.constant 1.000000e+00 : f32
    %121 = vector.broadcast %cst_50 : f32 to vector<2x32xf32>
    %122 = arith.addf %121, %120 : vector<2x32xf32>
    %123 = arith.divf %121, %122 : vector<2x32xf32>
    %124 = vector.extract_strided_slice %117 {offsets = [0, 32], sizes = [2, 32], strides = [1, 1]} : vector<2x128xf32> to vector<2x32xf32>
    %125 = arith.negf %124 : vector<2x32xf32>
    %126 = math.exp %125 : vector<2x32xf32>
    %cst_51 = arith.constant 1.000000e+00 : f32
    %127 = vector.broadcast %cst_51 : f32 to vector<2x32xf32>
    %128 = arith.addf %127, %126 : vector<2x32xf32>
    %129 = arith.divf %127, %128 : vector<2x32xf32>
    %130 = vector.extract_strided_slice %117 {offsets = [0, 64], sizes = [2, 32], strides = [1, 1]} : vector<2x128xf32> to vector<2x32xf32>
    %131 = math.tanh %130 : vector<2x32xf32>
    %132 = vector.extract_strided_slice %117 {offsets = [0, 96], sizes = [2, 32], strides = [1, 1]} : vector<2x128xf32> to vector<2x32xf32>
    %133 = arith.negf %132 : vector<2x32xf32>
    %134 = math.exp %133 : vector<2x32xf32>
    %cst_52 = arith.constant 1.000000e+00 : f32
    %135 = vector.broadcast %cst_52 : f32 to vector<2x32xf32>
    %136 = arith.addf %135, %134 : vector<2x32xf32>
    %137 = arith.divf %135, %136 : vector<2x32xf32>
    %138 = arith.mulf %129, %105 : vector<2x32xf32>
    %139 = arith.mulf %123, %131 : vector<2x32xf32>
    %140 = arith.addf %138, %139 : vector<2x32xf32>
    %141 = math.tanh %140 : vector<2x32xf32>
    %142 = arith.mulf %137, %141 : vector<2x32xf32>
    %c4 = arith.constant 4 : index
    %c0_53 = arith.constant 0 : index
    %c0_54 = arith.constant 0 : index
    %143 = vector.load %arg0[%c4, %c0_53, %c0_54] : memref<8x2x32xf32, #tpu.memory_space<vmem>>, vector<1x2x32xf32>
    %144 = vector.shape_cast %143 : vector<1x2x32xf32> to vector<2x32xf32>
    %c0_55 = arith.constant 0 : index
    %c0_56 = arith.constant 0 : index
    %145 = vector.load %arg2[%c0_55, %c0_56] : memref<32x128xf32, #tpu.memory_space<vmem>>, vector<32x128xf32>
    %cst_57 = arith.constant dense<0.000000e+00> : vector<2x128xf32>
    %146 = tpu.matmul %144, %145, %cst_57 {dimension_numbers = #tpu.dot_dimension_numbers<[1], [0], [0], [1], [0, 0, 1, 1], [], []>} : vector<2x32xf32>, vector<32x128xf32>, vector<2x128xf32> -> vector<2x128xf32>
    %c0_58 = arith.constant 0 : index
    %c0_59 = arith.constant 0 : index
    %147 = vector.load %arg3[%c0_58, %c0_59] : memref<32x128xf32, #tpu.memory_space<vmem>>, vector<32x128xf32>
    %cst_60 = arith.constant dense<0.000000e+00> : vector<2x128xf32>
    %148 = tpu.matmul %142, %147, %cst_60 {dimension_numbers = #tpu.dot_dimension_numbers<[1], [0], [0], [1], [0, 0, 1, 1], [], []>} : vector<2x32xf32>, vector<32x128xf32>, vector<2x128xf32> -> vector<2x128xf32>
    %149 = arith.addf %146, %148 : vector<2x128xf32>
    %c0_61 = arith.constant 0 : index
    %c0_62 = arith.constant 0 : index
    %150 = vector.load %arg4[%c0_61, %c0_62] : memref<1x128xf32, #tpu.memory_space<vmem>>, vector<1x128xf32>
    %151 = vector.broadcast %150 : vector<1x128xf32> to vector<2x128xf32>
    %152 = arith.addf %149, %151 : vector<2x128xf32>
    %153 = vector.extract_strided_slice %152 {offsets = [0, 0], sizes = [2, 32], strides = [1, 1]} : vector<2x128xf32> to vector<2x32xf32>
    %154 = arith.negf %153 : vector<2x32xf32>
    %155 = math.exp %154 : vector<2x32xf32>
    %cst_63 = arith.constant 1.000000e+00 : f32
    %156 = vector.broadcast %cst_63 : f32 to vector<2x32xf32>
    %157 = arith.addf %156, %155 : vector<2x32xf32>
    %158 = arith.divf %156, %157 : vector<2x32xf32>
    %159 = vector.extract_strided_slice %152 {offsets = [0, 32], sizes = [2, 32], strides = [1, 1]} : vector<2x128xf32> to vector<2x32xf32>
    %160 = arith.negf %159 : vector<2x32xf32>
    %161 = math.exp %160 : vector<2x32xf32>
    %cst_64 = arith.constant 1.000000e+00 : f32
    %162 = vector.broadcast %cst_64 : f32 to vector<2x32xf32>
    %163 = arith.addf %162, %161 : vector<2x32xf32>
    %164 = arith.divf %162, %163 : vector<2x32xf32>
    %165 = vector.extract_strided_slice %152 {offsets = [0, 64], sizes = [2, 32], strides = [1, 1]} : vector<2x128xf32> to vector<2x32xf32>
    %166 = math.tanh %165 : vector<2x32xf32>
    %167 = vector.extract_strided_slice %152 {offsets = [0, 96], sizes = [2, 32], strides = [1, 1]} : vector<2x128xf32> to vector<2x32xf32>
    %168 = arith.negf %167 : vector<2x32xf32>
    %169 = math.exp %168 : vector<2x32xf32>
    %cst_65 = arith.constant 1.000000e+00 : f32
    %170 = vector.broadcast %cst_65 : f32 to vector<2x32xf32>
    %171 = arith.addf %170, %169 : vector<2x32xf32>
    %172 = arith.divf %170, %171 : vector<2x32xf32>
    %173 = arith.mulf %164, %140 : vector<2x32xf32>
    %174 = arith.mulf %158, %166 : vector<2x32xf32>
    %175 = arith.addf %173, %174 : vector<2x32xf32>
    %176 = math.tanh %175 : vector<2x32xf32>
    %177 = arith.mulf %172, %176 : vector<2x32xf32>
    %c5 = arith.constant 5 : index
    %c0_66 = arith.constant 0 : index
    %c0_67 = arith.constant 0 : index
    %178 = vector.load %arg0[%c5, %c0_66, %c0_67] : memref<8x2x32xf32, #tpu.memory_space<vmem>>, vector<1x2x32xf32>
    %179 = vector.shape_cast %178 : vector<1x2x32xf32> to vector<2x32xf32>
    %c0_68 = arith.constant 0 : index
    %c0_69 = arith.constant 0 : index
    %180 = vector.load %arg2[%c0_68, %c0_69] : memref<32x128xf32, #tpu.memory_space<vmem>>, vector<32x128xf32>
    %cst_70 = arith.constant dense<0.000000e+00> : vector<2x128xf32>
    %181 = tpu.matmul %179, %180, %cst_70 {dimension_numbers = #tpu.dot_dimension_numbers<[1], [0], [0], [1], [0, 0, 1, 1], [], []>} : vector<2x32xf32>, vector<32x128xf32>, vector<2x128xf32> -> vector<2x128xf32>
    %c0_71 = arith.constant 0 : index
    %c0_72 = arith.constant 0 : index
    %182 = vector.load %arg3[%c0_71, %c0_72] : memref<32x128xf32, #tpu.memory_space<vmem>>, vector<32x128xf32>
    %cst_73 = arith.constant dense<0.000000e+00> : vector<2x128xf32>
    %183 = tpu.matmul %177, %182, %cst_73 {dimension_numbers = #tpu.dot_dimension_numbers<[1], [0], [0], [1], [0, 0, 1, 1], [], []>} : vector<2x32xf32>, vector<32x128xf32>, vector<2x128xf32> -> vector<2x128xf32>
    %184 = arith.addf %181, %183 : vector<2x128xf32>
    %c0_74 = arith.constant 0 : index
    %c0_75 = arith.constant 0 : index
    %185 = vector.load %arg4[%c0_74, %c0_75] : memref<1x128xf32, #tpu.memory_space<vmem>>, vector<1x128xf32>
    %186 = vector.broadcast %185 : vector<1x128xf32> to vector<2x128xf32>
    %187 = arith.addf %184, %186 : vector<2x128xf32>
    %188 = vector.extract_strided_slice %187 {offsets = [0, 0], sizes = [2, 32], strides = [1, 1]} : vector<2x128xf32> to vector<2x32xf32>
    %189 = arith.negf %188 : vector<2x32xf32>
    %190 = math.exp %189 : vector<2x32xf32>
    %cst_76 = arith.constant 1.000000e+00 : f32
    %191 = vector.broadcast %cst_76 : f32 to vector<2x32xf32>
    %192 = arith.addf %191, %190 : vector<2x32xf32>
    %193 = arith.divf %191, %192 : vector<2x32xf32>
    %194 = vector.extract_strided_slice %187 {offsets = [0, 32], sizes = [2, 32], strides = [1, 1]} : vector<2x128xf32> to vector<2x32xf32>
    %195 = arith.negf %194 : vector<2x32xf32>
    %196 = math.exp %195 : vector<2x32xf32>
    %cst_77 = arith.constant 1.000000e+00 : f32
    %197 = vector.broadcast %cst_77 : f32 to vector<2x32xf32>
    %198 = arith.addf %197, %196 : vector<2x32xf32>
    %199 = arith.divf %197, %198 : vector<2x32xf32>
    %200 = vector.extract_strided_slice %187 {offsets = [0, 64], sizes = [2, 32], strides = [1, 1]} : vector<2x128xf32> to vector<2x32xf32>
    %201 = math.tanh %200 : vector<2x32xf32>
    %202 = vector.extract_strided_slice %187 {offsets = [0, 96], sizes = [2, 32], strides = [1, 1]} : vector<2x128xf32> to vector<2x32xf32>
    %203 = arith.negf %202 : vector<2x32xf32>
    %204 = math.exp %203 : vector<2x32xf32>
    %cst_78 = arith.constant 1.000000e+00 : f32
    %205 = vector.broadcast %cst_78 : f32 to vector<2x32xf32>
    %206 = arith.addf %205, %204 : vector<2x32xf32>
    %207 = arith.divf %205, %206 : vector<2x32xf32>
    %208 = arith.mulf %199, %175 : vector<2x32xf32>
    %209 = arith.mulf %193, %201 : vector<2x32xf32>
    %210 = arith.addf %208, %209 : vector<2x32xf32>
    %211 = math.tanh %210 : vector<2x32xf32>
    %212 = arith.mulf %207, %211 : vector<2x32xf32>
    %c6 = arith.constant 6 : index
    %c0_79 = arith.constant 0 : index
    %c0_80 = arith.constant 0 : index
    %213 = vector.load %arg0[%c6, %c0_79, %c0_80] : memref<8x2x32xf32, #tpu.memory_space<vmem>>, vector<1x2x32xf32>
    %214 = vector.shape_cast %213 : vector<1x2x32xf32> to vector<2x32xf32>
    %c0_81 = arith.constant 0 : index
    %c0_82 = arith.constant 0 : index
    %215 = vector.load %arg2[%c0_81, %c0_82] : memref<32x128xf32, #tpu.memory_space<vmem>>, vector<32x128xf32>
    %cst_83 = arith.constant dense<0.000000e+00> : vector<2x128xf32>
    %216 = tpu.matmul %214, %215, %cst_83 {dimension_numbers = #tpu.dot_dimension_numbers<[1], [0], [0], [1], [0, 0, 1, 1], [], []>} : vector<2x32xf32>, vector<32x128xf32>, vector<2x128xf32> -> vector<2x128xf32>
    %c0_84 = arith.constant 0 : index
    %c0_85 = arith.constant 0 : index
    %217 = vector.load %arg3[%c0_84, %c0_85] : memref<32x128xf32, #tpu.memory_space<vmem>>, vector<32x128xf32>
    %cst_86 = arith.constant dense<0.000000e+00> : vector<2x128xf32>
    %218 = tpu.matmul %212, %217, %cst_86 {dimension_numbers = #tpu.dot_dimension_numbers<[1], [0], [0], [1], [0, 0, 1, 1], [], []>} : vector<2x32xf32>, vector<32x128xf32>, vector<2x128xf32> -> vector<2x128xf32>
    %219 = arith.addf %216, %218 : vector<2x128xf32>
    %c0_87 = arith.constant 0 : index
    %c0_88 = arith.constant 0 : index
    %220 = vector.load %arg4[%c0_87, %c0_88] : memref<1x128xf32, #tpu.memory_space<vmem>>, vector<1x128xf32>
    %221 = vector.broadcast %220 : vector<1x128xf32> to vector<2x128xf32>
    %222 = arith.addf %219, %221 : vector<2x128xf32>
    %223 = vector.extract_strided_slice %222 {offsets = [0, 0], sizes = [2, 32], strides = [1, 1]} : vector<2x128xf32> to vector<2x32xf32>
    %224 = arith.negf %223 : vector<2x32xf32>
    %225 = math.exp %224 : vector<2x32xf32>
    %cst_89 = arith.constant 1.000000e+00 : f32
    %226 = vector.broadcast %cst_89 : f32 to vector<2x32xf32>
    %227 = arith.addf %226, %225 : vector<2x32xf32>
    %228 = arith.divf %226, %227 : vector<2x32xf32>
    %229 = vector.extract_strided_slice %222 {offsets = [0, 32], sizes = [2, 32], strides = [1, 1]} : vector<2x128xf32> to vector<2x32xf32>
    %230 = arith.negf %229 : vector<2x32xf32>
    %231 = math.exp %230 : vector<2x32xf32>
    %cst_90 = arith.constant 1.000000e+00 : f32
    %232 = vector.broadcast %cst_90 : f32 to vector<2x32xf32>
    %233 = arith.addf %232, %231 : vector<2x32xf32>
    %234 = arith.divf %232, %233 : vector<2x32xf32>
    %235 = vector.extract_strided_slice %222 {offsets = [0, 64], sizes = [2, 32], strides = [1, 1]} : vector<2x128xf32> to vector<2x32xf32>
    %236 = math.tanh %235 : vector<2x32xf32>
    %237 = vector.extract_strided_slice %222 {offsets = [0, 96], sizes = [2, 32], strides = [1, 1]} : vector<2x128xf32> to vector<2x32xf32>
    %238 = arith.negf %237 : vector<2x32xf32>
    %239 = math.exp %238 : vector<2x32xf32>
    %cst_91 = arith.constant 1.000000e+00 : f32
    %240 = vector.broadcast %cst_91 : f32 to vector<2x32xf32>
    %241 = arith.addf %240, %239 : vector<2x32xf32>
    %242 = arith.divf %240, %241 : vector<2x32xf32>
    %243 = arith.mulf %234, %210 : vector<2x32xf32>
    %244 = arith.mulf %228, %236 : vector<2x32xf32>
    %245 = arith.addf %243, %244 : vector<2x32xf32>
    %246 = math.tanh %245 : vector<2x32xf32>
    %247 = arith.mulf %242, %246 : vector<2x32xf32>
    %c7 = arith.constant 7 : index
    %c0_92 = arith.constant 0 : index
    %c0_93 = arith.constant 0 : index
    %248 = vector.load %arg0[%c7, %c0_92, %c0_93] : memref<8x2x32xf32, #tpu.memory_space<vmem>>, vector<1x2x32xf32>
    %249 = vector.shape_cast %248 : vector<1x2x32xf32> to vector<2x32xf32>
    %c0_94 = arith.constant 0 : index
    %c0_95 = arith.constant 0 : index
    %250 = vector.load %arg2[%c0_94, %c0_95] : memref<32x128xf32, #tpu.memory_space<vmem>>, vector<32x128xf32>
    %cst_96 = arith.constant dense<0.000000e+00> : vector<2x128xf32>
    %251 = tpu.matmul %249, %250, %cst_96 {dimension_numbers = #tpu.dot_dimension_numbers<[1], [0], [0], [1], [0, 0, 1, 1], [], []>} : vector<2x32xf32>, vector<32x128xf32>, vector<2x128xf32> -> vector<2x128xf32>
    %c0_97 = arith.constant 0 : index
    %c0_98 = arith.constant 0 : index
    %252 = vector.load %arg3[%c0_97, %c0_98] : memref<32x128xf32, #tpu.memory_space<vmem>>, vector<32x128xf32>
    %cst_99 = arith.constant dense<0.000000e+00> : vector<2x128xf32>
    %253 = tpu.matmul %247, %252, %cst_99 {dimension_numbers = #tpu.dot_dimension_numbers<[1], [0], [0], [1], [0, 0, 1, 1], [], []>} : vector<2x32xf32>, vector<32x128xf32>, vector<2x128xf32> -> vector<2x128xf32>
    %254 = arith.addf %251, %253 : vector<2x128xf32>
    %c0_100 = arith.constant 0 : index
    %c0_101 = arith.constant 0 : index
    %255 = vector.load %arg4[%c0_100, %c0_101] : memref<1x128xf32, #tpu.memory_space<vmem>>, vector<1x128xf32>
    %256 = vector.broadcast %255 : vector<1x128xf32> to vector<2x128xf32>
    %257 = arith.addf %254, %256 : vector<2x128xf32>
    %258 = vector.extract_strided_slice %257 {offsets = [0, 0], sizes = [2, 32], strides = [1, 1]} : vector<2x128xf32> to vector<2x32xf32>
    %259 = arith.negf %258 : vector<2x32xf32>
    %260 = math.exp %259 : vector<2x32xf32>
    %cst_102 = arith.constant 1.000000e+00 : f32
    %261 = vector.broadcast %cst_102 : f32 to vector<2x32xf32>
    %262 = arith.addf %261, %260 : vector<2x32xf32>
    %263 = arith.divf %261, %262 : vector<2x32xf32>
    %264 = vector.extract_strided_slice %257 {offsets = [0, 32], sizes = [2, 32], strides = [1, 1]} : vector<2x128xf32> to vector<2x32xf32>
    %265 = arith.negf %264 : vector<2x32xf32>
    %266 = math.exp %265 : vector<2x32xf32>
    %cst_103 = arith.constant 1.000000e+00 : f32
    %267 = vector.broadcast %cst_103 : f32 to vector<2x32xf32>
    %268 = arith.addf %267, %266 : vector<2x32xf32>
    %269 = arith.divf %267, %268 : vector<2x32xf32>
    %270 = vector.extract_strided_slice %257 {offsets = [0, 64], sizes = [2, 32], strides = [1, 1]} : vector<2x128xf32> to vector<2x32xf32>
    %271 = math.tanh %270 : vector<2x32xf32>
    %272 = vector.extract_strided_slice %257 {offsets = [0, 96], sizes = [2, 32], strides = [1, 1]} : vector<2x128xf32> to vector<2x32xf32>
    %273 = arith.negf %272 : vector<2x32xf32>
    %274 = math.exp %273 : vector<2x32xf32>
    %cst_104 = arith.constant 1.000000e+00 : f32
    %275 = vector.broadcast %cst_104 : f32 to vector<2x32xf32>
    %276 = arith.addf %275, %274 : vector<2x32xf32>
    %277 = arith.divf %275, %276 : vector<2x32xf32>
    %278 = arith.mulf %269, %245 : vector<2x32xf32>
    %279 = arith.mulf %263, %271 : vector<2x32xf32>
    %280 = arith.addf %278, %279 : vector<2x32xf32>
    %281 = math.tanh %280 : vector<2x32xf32>
    %282 = arith.mulf %277, %281 : vector<2x32xf32>
    %c0_105 = arith.constant 0 : index
    %c0_106 = arith.constant 0 : index
    %283 = vector.load %arg10[%c0_105, %c0_106] : memref<2x32xf32, #tpu.memory_space<vmem>>, vector<2x32xf32>
    %c0_107 = arith.constant 0 : index
    %c0_108 = arith.constant 0 : index
    %c0_109 = arith.constant 0 : index
    %284 = vector.load %arg11[%c0_107, %c0_108, %c0_109] : memref<8x2x32xf32, #tpu.memory_space<vmem>>, vector<1x2x32xf32>
    %285 = vector.shape_cast %284 : vector<1x2x32xf32> to vector<2x32xf32>
    %286 = arith.addf %283, %285 : vector<2x32xf32>
    %cst_110 = arith.constant 1.34985876 : f32
    %287 = vector.broadcast %cst_110 : f32 to vector<2x32xf32>
    %288 = arith.mulf %286, %287 : vector<2x32xf32>
    %cst_111 = arith.constant dense<0xFF800000> : vector<2xf32>
    %289 = vector.multi_reduction <maximumf>, %288, %cst_111 [1] : vector<2x32xf32> to vector<2xf32>
    %290 = vector.shape_cast %289 : vector<2xf32> to vector<2x1xf32>
    %291 = vector.broadcast %290 : vector<2x1xf32> to vector<2x32xf32>
    %292 = arith.cmpf oeq, %288, %291 : vector<2x32xf32>
    %c32_i32 = arith.constant 32 : i32
    %293 = vector.broadcast %c32_i32 : i32 to vector<2x32xi32>
    %294 = arith.select %292, %0, %293 : vector<2x32xi1>, vector<2x32xi32>
    %cst_112 = arith.constant dense<2147483647> : vector<2xi32>
    %295 = vector.multi_reduction <minsi>, %294, %cst_112 [1] : vector<2x32xi32> to vector<2xi32>
    %296 = vector.shape_cast %295 : vector<2xi32> to vector<2x1xi32>
    %297 = vector.broadcast %296 : vector<2x1xi32> to vector<2x32xi32>
    %298 = arith.cmpi eq, %0, %297 : vector<2x32xi32>
    %299 = arith.extui %298 : vector<2x32xi1> to vector<2x32xi32>
    %300 = arith.sitofp %299 : vector<2x32xi32> to vector<2x32xf32>
    %c0_113 = arith.constant 0 : index
    %c0_114 = arith.constant 0 : index
    %301 = vector.load %arg1[%c0_113, %c0_114] : memref<2x8xf32, #tpu.memory_space<vmem>>, vector<2x1xf32>
    %cst_115 = arith.constant 5.000000e-01 : f32
    %302 = vector.broadcast %cst_115 : f32 to vector<2x1xf32>
    %303 = arith.cmpf ogt, %301, %302 : vector<2x1xf32>
    %c0_116 = arith.constant 0 : index
    %c0_117 = arith.constant 0 : index
    %c0_118 = arith.constant 0 : index
    %304 = vector.load %arg0[%c0_116, %c0_117, %c0_118] : memref<8x2x32xf32, #tpu.memory_space<vmem>>, vector<1x2x32xf32>
    %305 = vector.shape_cast %304 : vector<1x2x32xf32> to vector<2x32xf32>
    %306 = vector.shape_cast %303 : vector<2x1xi1> to vector<2x1xi1>
    %307 = vector.broadcast %306 : vector<2x1xi1> to vector<2x32xi1>
    %308 = arith.select %307, %300, %305 : vector<2x32xi1>, vector<2x32xf32>
    %c0_119 = arith.constant 0 : index
    %c0_120 = arith.constant 0 : index
    %c0_121 = arith.constant 0 : index
    %309 = vector.load %arg12[%c0_119, %c0_120, %c0_121] : memref<8x2x32xf32, #tpu.memory_space<vmem>>, vector<1x2x32xf32>
    %310 = vector.shape_cast %309 : vector<1x2x32xf32> to vector<2x32xf32>
    %311 = vector.shape_cast %308 : vector<2x32xf32> to vector<1x2x32xf32>
    tpu.vector_store %arg12[%c0_119, %c0_120, %c0_121], %311 {strides = array<i32>} : memref<8x2x32xf32, #tpu.memory_space<vmem>>, vector<1x2x32xf32>,
    %c0_122 = arith.constant 0 : index
    %c0_123 = arith.constant 0 : index
    %c0_124 = arith.constant 0 : index
    %312 = vector.load %arg0[%c0_122, %c0_123, %c0_124] : memref<8x2x32xf32, #tpu.memory_space<vmem>>, vector<1x2x32xf32>
    %313 = vector.shape_cast %312 : vector<1x2x32xf32> to vector<2x32xf32>
    %c0_125 = arith.constant 0 : index
    %c0_126 = arith.constant 0 : index
    %314 = vector.load %arg5[%c0_125, %c0_126] : memref<32x128xf32, #tpu.memory_space<vmem>>, vector<32x128xf32>
    %cst_127 = arith.constant dense<0.000000e+00> : vector<2x128xf32>
    %315 = tpu.matmul %313, %314, %cst_127 {dimension_numbers = #tpu.dot_dimension_numbers<[1], [0], [0], [1], [0, 0, 1, 1], [], []>} : vector<2x32xf32>, vector<32x128xf32>, vector<2x128xf32> -> vector<2x128xf32>
    %c0_128 = arith.constant 0 : index
    %c0_129 = arith.constant 0 : index
    %316 = vector.load %arg6[%c0_128, %c0_129] : memref<32x128xf32, #tpu.memory_space<vmem>>, vector<32x128xf32>
    %cst_130 = arith.constant dense<0.000000e+00> : vector<2x128xf32>
    %317 = tpu.matmul %282, %316, %cst_130 {dimension_numbers = #tpu.dot_dimension_numbers<[1], [0], [0], [1], [0, 0, 1, 1], [], []>} : vector<2x32xf32>, vector<32x128xf32>, vector<2x128xf32> -> vector<2x128xf32>
    %318 = arith.addf %315, %317 : vector<2x128xf32>
    %c0_131 = arith.constant 0 : index
    %c0_132 = arith.constant 0 : index
    %319 = vector.load %arg7[%c0_131, %c0_132] : memref<1x128xf32, #tpu.memory_space<vmem>>, vector<1x128xf32>
    %320 = vector.broadcast %319 : vector<1x128xf32> to vector<2x128xf32>
    %321 = arith.addf %318, %320 : vector<2x128xf32>
    %322 = vector.extract_strided_slice %321 {offsets = [0, 0], sizes = [2, 32], strides = [1, 1]} : vector<2x128xf32> to vector<2x32xf32>
    %323 = arith.negf %322 : vector<2x32xf32>
    %324 = math.exp %323 : vector<2x32xf32>
    %cst_133 = arith.constant 1.000000e+00 : f32
    %325 = vector.broadcast %cst_133 : f32 to vector<2x32xf32>
    %326 = arith.addf %325, %324 : vector<2x32xf32>
    %327 = arith.divf %325, %326 : vector<2x32xf32>
    %328 = vector.extract_strided_slice %321 {offsets = [0, 32], sizes = [2, 32], strides = [1, 1]} : vector<2x128xf32> to vector<2x32xf32>
    %329 = arith.negf %328 : vector<2x32xf32>
    %330 = math.exp %329 : vector<2x32xf32>
    %cst_134 = arith.constant 1.000000e+00 : f32
    %331 = vector.broadcast %cst_134 : f32 to vector<2x32xf32>
    %332 = arith.addf %331, %330 : vector<2x32xf32>
    %333 = arith.divf %331, %332 : vector<2x32xf32>
    %334 = vector.extract_strided_slice %321 {offsets = [0, 64], sizes = [2, 32], strides = [1, 1]} : vector<2x128xf32> to vector<2x32xf32>
    %335 = math.tanh %334 : vector<2x32xf32>
    %336 = vector.extract_strided_slice %321 {offsets = [0, 96], sizes = [2, 32], strides = [1, 1]} : vector<2x128xf32> to vector<2x32xf32>
    %337 = arith.negf %336 : vector<2x32xf32>
    %338 = math.exp %337 : vector<2x32xf32>
    %cst_135 = arith.constant 1.000000e+00 : f32
    %339 = vector.broadcast %cst_135 : f32 to vector<2x32xf32>
    %340 = arith.addf %339, %338 : vector<2x32xf32>
    %341 = arith.divf %339, %340 : vector<2x32xf32>
    %342 = arith.mulf %333, %280 : vector<2x32xf32>
    %343 = arith.mulf %327, %335 : vector<2x32xf32>
    %344 = arith.addf %342, %343 : vector<2x32xf32>
    %345 = math.tanh %344 : vector<2x32xf32>
    %346 = arith.mulf %341, %345 : vector<2x32xf32>
    %c0_136 = arith.constant 0 : index
    %c0_137 = arith.constant 0 : index
    %347 = vector.load %arg8[%c0_136, %c0_137] : memref<32x32xf32, #tpu.memory_space<vmem>>, vector<32x32xf32>
    %cst_138 = arith.constant dense<0.000000e+00> : vector<2x32xf32>
    %348 = tpu.matmul %346, %347, %cst_138 {dimension_numbers = #tpu.dot_dimension_numbers<[1], [0], [0], [1], [0, 0, 1, 1], [], []>} : vector<2x32xf32>, vector<32x32xf32>, vector<2x32xf32> -> vector<2x32xf32>
    %c0_139 = arith.constant 0 : index
    %c0_140 = arith.constant 0 : index
    %349 = vector.load %arg9[%c0_139, %c0_140] : memref<1x32xf32, #tpu.memory_space<vmem>>, vector<1x32xf32>
    %350 = vector.broadcast %349 : vector<1x32xf32> to vector<2x32xf32>
    %351 = arith.addf %348, %350 : vector<2x32xf32>
    %c1_141 = arith.constant 1 : index
    %c0_142 = arith.constant 0 : index
    %c0_143 = arith.constant 0 : index
    %352 = vector.load %arg11[%c1_141, %c0_142, %c0_143] : memref<8x2x32xf32, #tpu.memory_space<vmem>>, vector<1x2x32xf32>
    %353 = vector.shape_cast %352 : vector<1x2x32xf32> to vector<2x32xf32>
    %354 = arith.addf %351, %353 : vector<2x32xf32>
    %cst_144 = arith.constant 1.34985876 : f32
    %355 = vector.broadcast %cst_144 : f32 to vector<2x32xf32>
    %356 = arith.mulf %354, %355 : vector<2x32xf32>
    %cst_145 = arith.constant dense<0xFF800000> : vector<2xf32>
    %357 = vector.multi_reduction <maximumf>, %356, %cst_145 [1] : vector<2x32xf32> to vector<2xf32>
    %358 = vector.shape_cast %357 : vector<2xf32> to vector<2x1xf32>
    %359 = vector.broadcast %358 : vector<2x1xf32> to vector<2x32xf32>
    %360 = arith.cmpf oeq, %356, %359 : vector<2x32xf32>
    %c32_i32_146 = arith.constant 32 : i32
    %361 = vector.broadcast %c32_i32_146 : i32 to vector<2x32xi32>
    %362 = arith.select %360, %0, %361 : vector<2x32xi1>, vector<2x32xi32>
    %cst_147 = arith.constant dense<2147483647> : vector<2xi32>
    %363 = vector.multi_reduction <minsi>, %362, %cst_147 [1] : vector<2x32xi32> to vector<2xi32>
    %364 = vector.shape_cast %363 : vector<2xi32> to vector<2x1xi32>
    %365 = vector.broadcast %364 : vector<2x1xi32> to vector<2x32xi32>
    %366 = arith.cmpi eq, %0, %365 : vector<2x32xi32>
    %367 = arith.extui %366 : vector<2x32xi1> to vector<2x32xi32>
    %368 = arith.sitofp %367 : vector<2x32xi32> to vector<2x32xf32>
    %c0_148 = arith.constant 0 : index
    %c1_149 = arith.constant 1 : index
    %369 = vector.load %arg1[%c0_148, %c1_149] : memref<2x8xf32, #tpu.memory_space<vmem>>, vector<2x1xf32>
    %cst_150 = arith.constant 5.000000e-01 : f32
    %370 = vector.broadcast %cst_150 : f32 to vector<2x1xf32>
    %371 = arith.cmpf ogt, %369, %370 : vector<2x1xf32>
    %c1_151 = arith.constant 1 : index
    %c0_152 = arith.constant 0 : index
    %c0_153 = arith.constant 0 : index
    %372 = vector.load %arg0[%c1_151, %c0_152, %c0_153] : memref<8x2x32xf32, #tpu.memory_space<vmem>>, vector<1x2x32xf32>
    %373 = vector.shape_cast %372 : vector<1x2x32xf32> to vector<2x32xf32>
    %374 = vector.shape_cast %371 : vector<2x1xi1> to vector<2x1xi1>
    %375 = vector.broadcast %374 : vector<2x1xi1> to vector<2x32xi1>
    %376 = arith.select %375, %368, %373 : vector<2x32xi1>, vector<2x32xf32>
    %c1_154 = arith.constant 1 : index
    %c0_155 = arith.constant 0 : index
    %c0_156 = arith.constant 0 : index
    %377 = vector.load %arg12[%c1_154, %c0_155, %c0_156] : memref<8x2x32xf32, #tpu.memory_space<vmem>>, vector<1x2x32xf32>
    %378 = vector.shape_cast %377 : vector<1x2x32xf32> to vector<2x32xf32>
    %379 = vector.shape_cast %376 : vector<2x32xf32> to vector<1x2x32xf32>
    tpu.vector_store %arg12[%c1_154, %c0_155, %c0_156], %379 {strides = array<i32>} : memref<8x2x32xf32, #tpu.memory_space<vmem>>, vector<1x2x32xf32>,
    %c1_157 = arith.constant 1 : index
    %c0_158 = arith.constant 0 : index
    %c0_159 = arith.constant 0 : index
    %380 = vector.load %arg0[%c1_157, %c0_158, %c0_159] : memref<8x2x32xf32, #tpu.memory_space<vmem>>, vector<1x2x32xf32>
    %381 = vector.shape_cast %380 : vector<1x2x32xf32> to vector<2x32xf32>
    %c0_160 = arith.constant 0 : index
    %c0_161 = arith.constant 0 : index
    %382 = vector.load %arg5[%c0_160, %c0_161] : memref<32x128xf32, #tpu.memory_space<vmem>>, vector<32x128xf32>
    %cst_162 = arith.constant dense<0.000000e+00> : vector<2x128xf32>
    %383 = tpu.matmul %381, %382, %cst_162 {dimension_numbers = #tpu.dot_dimension_numbers<[1], [0], [0], [1], [0, 0, 1, 1], [], []>} : vector<2x32xf32>, vector<32x128xf32>, vector<2x128xf32> -> vector<2x128xf32>
    %c0_163 = arith.constant 0 : index
    %c0_164 = arith.constant 0 : index
    %384 = vector.load %arg6[%c0_163, %c0_164] : memref<32x128xf32, #tpu.memory_space<vmem>>, vector<32x128xf32>
    %cst_165 = arith.constant dense<0.000000e+00> : vector<2x128xf32>
    %385 = tpu.matmul %346, %384, %cst_165 {dimension_numbers = #tpu.dot_dimension_numbers<[1], [0], [0], [1], [0, 0, 1, 1], [], []>} : vector<2x32xf32>, vector<32x128xf32>, vector<2x128xf32> -> vector<2x128xf32>
    %386 = arith.addf %383, %385 : vector<2x128xf32>
    %c0_166 = arith.constant 0 : index
    %c0_167 = arith.constant 0 : index
    %387 = vector.load %arg7[%c0_166, %c0_167] : memref<1x128xf32, #tpu.memory_space<vmem>>, vector<1x128xf32>
    %388 = vector.broadcast %387 : vector<1x128xf32> to vector<2x128xf32>
    %389 = arith.addf %386, %388 : vector<2x128xf32>
    %390 = vector.extract_strided_slice %389 {offsets = [0, 0], sizes = [2, 32], strides = [1, 1]} : vector<2x128xf32> to vector<2x32xf32>
    %391 = arith.negf %390 : vector<2x32xf32>
    %392 = math.exp %391 : vector<2x32xf32>
    %cst_168 = arith.constant 1.000000e+00 : f32
    %393 = vector.broadcast %cst_168 : f32 to vector<2x32xf32>
    %394 = arith.addf %393, %392 : vector<2x32xf32>
    %395 = arith.divf %393, %394 : vector<2x32xf32>
    %396 = vector.extract_strided_slice %389 {offsets = [0, 32], sizes = [2, 32], strides = [1, 1]} : vector<2x128xf32> to vector<2x32xf32>
    %397 = arith.negf %396 : vector<2x32xf32>
    %398 = math.exp %397 : vector<2x32xf32>
    %cst_169 = arith.constant 1.000000e+00 : f32
    %399 = vector.broadcast %cst_169 : f32 to vector<2x32xf32>
    %400 = arith.addf %399, %398 : vector<2x32xf32>
    %401 = arith.divf %399, %400 : vector<2x32xf32>
    %402 = vector.extract_strided_slice %389 {offsets = [0, 64], sizes = [2, 32], strides = [1, 1]} : vector<2x128xf32> to vector<2x32xf32>
    %403 = math.tanh %402 : vector<2x32xf32>
    %404 = vector.extract_strided_slice %389 {offsets = [0, 96], sizes = [2, 32], strides = [1, 1]} : vector<2x128xf32> to vector<2x32xf32>
    %405 = arith.negf %404 : vector<2x32xf32>
    %406 = math.exp %405 : vector<2x32xf32>
    %cst_170 = arith.constant 1.000000e+00 : f32
    %407 = vector.broadcast %cst_170 : f32 to vector<2x32xf32>
    %408 = arith.addf %407, %406 : vector<2x32xf32>
    %409 = arith.divf %407, %408 : vector<2x32xf32>
    %410 = arith.mulf %401, %344 : vector<2x32xf32>
    %411 = arith.mulf %395, %403 : vector<2x32xf32>
    %412 = arith.addf %410, %411 : vector<2x32xf32>
    %413 = math.tanh %412 : vector<2x32xf32>
    %414 = arith.mulf %409, %413 : vector<2x32xf32>
    %c0_171 = arith.constant 0 : index
    %c0_172 = arith.constant 0 : index
    %415 = vector.load %arg8[%c0_171, %c0_172] : memref<32x32xf32, #tpu.memory_space<vmem>>, vector<32x32xf32>
    %cst_173 = arith.constant dense<0.000000e+00> : vector<2x32xf32>
    %416 = tpu.matmul %414, %415, %cst_173 {dimension_numbers = #tpu.dot_dimension_numbers<[1], [0], [0], [1], [0, 0, 1, 1], [], []>} : vector<2x32xf32>, vector<32x32xf32>, vector<2x32xf32> -> vector<2x32xf32>
    %c0_174 = arith.constant 0 : index
    %c0_175 = arith.constant 0 : index
    %417 = vector.load %arg9[%c0_174, %c0_175] : memref<1x32xf32, #tpu.memory_space<vmem>>, vector<1x32xf32>
    %418 = vector.broadcast %417 : vector<1x32xf32> to vector<2x32xf32>
    %419 = arith.addf %416, %418 : vector<2x32xf32>
    %c2_176 = arith.constant 2 : index
    %c0_177 = arith.constant 0 : index
    %c0_178 = arith.constant 0 : index
    %420 = vector.load %arg11[%c2_176, %c0_177, %c0_178] : memref<8x2x32xf32, #tpu.memory_space<vmem>>, vector<1x2x32xf32>
    %421 = vector.shape_cast %420 : vector<1x2x32xf32> to vector<2x32xf32>
    %422 = arith.addf %419, %421 : vector<2x32xf32>
    %cst_179 = arith.constant 1.34985876 : f32
    %423 = vector.broadcast %cst_179 : f32 to vector<2x32xf32>
    %424 = arith.mulf %422, %423 : vector<2x32xf32>
    %cst_180 = arith.constant dense<0xFF800000> : vector<2xf32>
    %425 = vector.multi_reduction <maximumf>, %424, %cst_180 [1] : vector<2x32xf32> to vector<2xf32>
    %426 = vector.shape_cast %425 : vector<2xf32> to vector<2x1xf32>
    %427 = vector.broadcast %426 : vector<2x1xf32> to vector<2x32xf32>
    %428 = arith.cmpf oeq, %424, %427 : vector<2x32xf32>
    %c32_i32_181 = arith.constant 32 : i32
    %429 = vector.broadcast %c32_i32_181 : i32 to vector<2x32xi32>
    %430 = arith.select %428, %0, %429 : vector<2x32xi1>, vector<2x32xi32>
    %cst_182 = arith.constant dense<2147483647> : vector<2xi32>
    %431 = vector.multi_reduction <minsi>, %430, %cst_182 [1] : vector<2x32xi32> to vector<2xi32>
    %432 = vector.shape_cast %431 : vector<2xi32> to vector<2x1xi32>
    %433 = vector.broadcast %432 : vector<2x1xi32> to vector<2x32xi32>
    %434 = arith.cmpi eq, %0, %433 : vector<2x32xi32>
    %435 = arith.extui %434 : vector<2x32xi1> to vector<2x32xi32>
    %436 = arith.sitofp %435 : vector<2x32xi32> to vector<2x32xf32>
    %c0_183 = arith.constant 0 : index
    %c2_184 = arith.constant 2 : index
    %437 = vector.load %arg1[%c0_183, %c2_184] : memref<2x8xf32, #tpu.memory_space<vmem>>, vector<2x1xf32>
    %cst_185 = arith.constant 5.000000e-01 : f32
    %438 = vector.broadcast %cst_185 : f32 to vector<2x1xf32>
    %439 = arith.cmpf ogt, %437, %438 : vector<2x1xf32>
    %c2_186 = arith.constant 2 : index
    %c0_187 = arith.constant 0 : index
    %c0_188 = arith.constant 0 : index
    %440 = vector.load %arg0[%c2_186, %c0_187, %c0_188] : memref<8x2x32xf32, #tpu.memory_space<vmem>>, vector<1x2x32xf32>
    %441 = vector.shape_cast %440 : vector<1x2x32xf32> to vector<2x32xf32>
    %442 = vector.shape_cast %439 : vector<2x1xi1> to vector<2x1xi1>
    %443 = vector.broadcast %442 : vector<2x1xi1> to vector<2x32xi1>
    %444 = arith.select %443, %436, %441 : vector<2x32xi1>, vector<2x32xf32>
    %c2_189 = arith.constant 2 : index
    %c0_190 = arith.constant 0 : index
    %c0_191 = arith.constant 0 : index
    %445 = vector.load %arg12[%c2_189, %c0_190, %c0_191] : memref<8x2x32xf32, #tpu.memory_space<vmem>>, vector<1x2x32xf32>
    %446 = vector.shape_cast %445 : vector<1x2x32xf32> to vector<2x32xf32>
    %447 = vector.shape_cast %444 : vector<2x32xf32> to vector<1x2x32xf32>
    tpu.vector_store %arg12[%c2_189, %c0_190, %c0_191], %447 {strides = array<i32>} : memref<8x2x32xf32, #tpu.memory_space<vmem>>, vector<1x2x32xf32>,
    %c2_192 = arith.constant 2 : index
    %c0_193 = arith.constant 0 : index
    %c0_194 = arith.constant 0 : index
    %448 = vector.load %arg0[%c2_192, %c0_193, %c0_194] : memref<8x2x32xf32, #tpu.memory_space<vmem>>, vector<1x2x32xf32>
    %449 = vector.shape_cast %448 : vector<1x2x32xf32> to vector<2x32xf32>
    %c0_195 = arith.constant 0 : index
    %c0_196 = arith.constant 0 : index
    %450 = vector.load %arg5[%c0_195, %c0_196] : memref<32x128xf32, #tpu.memory_space<vmem>>, vector<32x128xf32>
    %cst_197 = arith.constant dense<0.000000e+00> : vector<2x128xf32>
    %451 = tpu.matmul %449, %450, %cst_197 {dimension_numbers = #tpu.dot_dimension_numbers<[1], [0], [0], [1], [0, 0, 1, 1], [], []>} : vector<2x32xf32>, vector<32x128xf32>, vector<2x128xf32> -> vector<2x128xf32>
    %c0_198 = arith.constant 0 : index
    %c0_199 = arith.constant 0 : index
    %452 = vector.load %arg6[%c0_198, %c0_199] : memref<32x128xf32, #tpu.memory_space<vmem>>, vector<32x128xf32>
    %cst_200 = arith.constant dense<0.000000e+00> : vector<2x128xf32>
    %453 = tpu.matmul %414, %452, %cst_200 {dimension_numbers = #tpu.dot_dimension_numbers<[1], [0], [0], [1], [0, 0, 1, 1], [], []>} : vector<2x32xf32>, vector<32x128xf32>, vector<2x128xf32> -> vector<2x128xf32>
    %454 = arith.addf %451, %453 : vector<2x128xf32>
    %c0_201 = arith.constant 0 : index
    %c0_202 = arith.constant 0 : index
    %455 = vector.load %arg7[%c0_201, %c0_202] : memref<1x128xf32, #tpu.memory_space<vmem>>, vector<1x128xf32>
    %456 = vector.broadcast %455 : vector<1x128xf32> to vector<2x128xf32>
    %457 = arith.addf %454, %456 : vector<2x128xf32>
    %458 = vector.extract_strided_slice %457 {offsets = [0, 0], sizes = [2, 32], strides = [1, 1]} : vector<2x128xf32> to vector<2x32xf32>
    %459 = arith.negf %458 : vector<2x32xf32>
    %460 = math.exp %459 : vector<2x32xf32>
    %cst_203 = arith.constant 1.000000e+00 : f32
    %461 = vector.broadcast %cst_203 : f32 to vector<2x32xf32>
    %462 = arith.addf %461, %460 : vector<2x32xf32>
    %463 = arith.divf %461, %462 : vector<2x32xf32>
    %464 = vector.extract_strided_slice %457 {offsets = [0, 32], sizes = [2, 32], strides = [1, 1]} : vector<2x128xf32> to vector<2x32xf32>
    %465 = arith.negf %464 : vector<2x32xf32>
    %466 = math.exp %465 : vector<2x32xf32>
    %cst_204 = arith.constant 1.000000e+00 : f32
    %467 = vector.broadcast %cst_204 : f32 to vector<2x32xf32>
    %468 = arith.addf %467, %466 : vector<2x32xf32>
    %469 = arith.divf %467, %468 : vector<2x32xf32>
    %470 = vector.extract_strided_slice %457 {offsets = [0, 64], sizes = [2, 32], strides = [1, 1]} : vector<2x128xf32> to vector<2x32xf32>
    %471 = math.tanh %470 : vector<2x32xf32>
    %472 = vector.extract_strided_slice %457 {offsets = [0, 96], sizes = [2, 32], strides = [1, 1]} : vector<2x128xf32> to vector<2x32xf32>
    %473 = arith.negf %472 : vector<2x32xf32>
    %474 = math.exp %473 : vector<2x32xf32>
    %cst_205 = arith.constant 1.000000e+00 : f32
    %475 = vector.broadcast %cst_205 : f32 to vector<2x32xf32>
    %476 = arith.addf %475, %474 : vector<2x32xf32>
    %477 = arith.divf %475, %476 : vector<2x32xf32>
    %478 = arith.mulf %469, %412 : vector<2x32xf32>
    %479 = arith.mulf %463, %471 : vector<2x32xf32>
    %480 = arith.addf %478, %479 : vector<2x32xf32>
    %481 = math.tanh %480 : vector<2x32xf32>
    %482 = arith.mulf %477, %481 : vector<2x32xf32>
    %c0_206 = arith.constant 0 : index
    %c0_207 = arith.constant 0 : index
    %483 = vector.load %arg8[%c0_206, %c0_207] : memref<32x32xf32, #tpu.memory_space<vmem>>, vector<32x32xf32>
    %cst_208 = arith.constant dense<0.000000e+00> : vector<2x32xf32>
    %484 = tpu.matmul %482, %483, %cst_208 {dimension_numbers = #tpu.dot_dimension_numbers<[1], [0], [0], [1], [0, 0, 1, 1], [], []>} : vector<2x32xf32>, vector<32x32xf32>, vector<2x32xf32> -> vector<2x32xf32>
    %c0_209 = arith.constant 0 : index
    %c0_210 = arith.constant 0 : index
    %485 = vector.load %arg9[%c0_209, %c0_210] : memref<1x32xf32, #tpu.memory_space<vmem>>, vector<1x32xf32>
    %486 = vector.broadcast %485 : vector<1x32xf32> to vector<2x32xf32>
    %487 = arith.addf %484, %486 : vector<2x32xf32>
    %c3_211 = arith.constant 3 : index
    %c0_212 = arith.constant 0 : index
    %c0_213 = arith.constant 0 : index
    %488 = vector.load %arg11[%c3_211, %c0_212, %c0_213] : memref<8x2x32xf32, #tpu.memory_space<vmem>>, vector<1x2x32xf32>
    %489 = vector.shape_cast %488 : vector<1x2x32xf32> to vector<2x32xf32>
    %490 = arith.addf %487, %489 : vector<2x32xf32>
    %cst_214 = arith.constant 1.34985876 : f32
    %491 = vector.broadcast %cst_214 : f32 to vector<2x32xf32>
    %492 = arith.mulf %490, %491 : vector<2x32xf32>
    %cst_215 = arith.constant dense<0xFF800000> : vector<2xf32>
    %493 = vector.multi_reduction <maximumf>, %492, %cst_215 [1] : vector<2x32xf32> to vector<2xf32>
    %494 = vector.shape_cast %493 : vector<2xf32> to vector<2x1xf32>
    %495 = vector.broadcast %494 : vector<2x1xf32> to vector<2x32xf32>
    %496 = arith.cmpf oeq, %492, %495 : vector<2x32xf32>
    %c32_i32_216 = arith.constant 32 : i32
    %497 = vector.broadcast %c32_i32_216 : i32 to vector<2x32xi32>
    %498 = arith.select %496, %0, %497 : vector<2x32xi1>, vector<2x32xi32>
    %cst_217 = arith.constant dense<2147483647> : vector<2xi32>
    %499 = vector.multi_reduction <minsi>, %498, %cst_217 [1] : vector<2x32xi32> to vector<2xi32>
    %500 = vector.shape_cast %499 : vector<2xi32> to vector<2x1xi32>
    %501 = vector.broadcast %500 : vector<2x1xi32> to vector<2x32xi32>
    %502 = arith.cmpi eq, %0, %501 : vector<2x32xi32>
    %503 = arith.extui %502 : vector<2x32xi1> to vector<2x32xi32>
    %504 = arith.sitofp %503 : vector<2x32xi32> to vector<2x32xf32>
    %c0_218 = arith.constant 0 : index
    %c3_219 = arith.constant 3 : index
    %505 = vector.load %arg1[%c0_218, %c3_219] : memref<2x8xf32, #tpu.memory_space<vmem>>, vector<2x1xf32>
    %cst_220 = arith.constant 5.000000e-01 : f32
    %506 = vector.broadcast %cst_220 : f32 to vector<2x1xf32>
    %507 = arith.cmpf ogt, %505, %506 : vector<2x1xf32>
    %c3_221 = arith.constant 3 : index
    %c0_222 = arith.constant 0 : index
    %c0_223 = arith.constant 0 : index
    %508 = vector.load %arg0[%c3_221, %c0_222, %c0_223] : memref<8x2x32xf32, #tpu.memory_space<vmem>>, vector<1x2x32xf32>
    %509 = vector.shape_cast %508 : vector<1x2x32xf32> to vector<2x32xf32>
    %510 = vector.shape_cast %507 : vector<2x1xi1> to vector<2x1xi1>
    %511 = vector.broadcast %510 : vector<2x1xi1> to vector<2x32xi1>
    %512 = arith.select %511, %504, %509 : vector<2x32xi1>, vector<2x32xf32>
    %c3_224 = arith.constant 3 : index
    %c0_225 = arith.constant 0 : index
    %c0_226 = arith.constant 0 : index
    %513 = vector.load %arg12[%c3_224, %c0_225, %c0_226] : memref<8x2x32xf32, #tpu.memory_space<vmem>>, vector<1x2x32xf32>
    %514 = vector.shape_cast %513 : vector<1x2x32xf32> to vector<2x32xf32>
    %515 = vector.shape_cast %512 : vector<2x32xf32> to vector<1x2x32xf32>
    tpu.vector_store %arg12[%c3_224, %c0_225, %c0_226], %515 {strides = array<i32>} : memref<8x2x32xf32, #tpu.memory_space<vmem>>, vector<1x2x32xf32>,
    %c3_227 = arith.constant 3 : index
    %c0_228 = arith.constant 0 : index
    %c0_229 = arith.constant 0 : index
    %516 = vector.load %arg0[%c3_227, %c0_228, %c0_229] : memref<8x2x32xf32, #tpu.memory_space<vmem>>, vector<1x2x32xf32>
    %517 = vector.shape_cast %516 : vector<1x2x32xf32> to vector<2x32xf32>
    %c0_230 = arith.constant 0 : index
    %c0_231 = arith.constant 0 : index
    %518 = vector.load %arg5[%c0_230, %c0_231] : memref<32x128xf32, #tpu.memory_space<vmem>>, vector<32x128xf32>
    %cst_232 = arith.constant dense<0.000000e+00> : vector<2x128xf32>
    %519 = tpu.matmul %517, %518, %cst_232 {dimension_numbers = #tpu.dot_dimension_numbers<[1], [0], [0], [1], [0, 0, 1, 1], [], []>} : vector<2x32xf32>, vector<32x128xf32>, vector<2x128xf32> -> vector<2x128xf32>
    %c0_233 = arith.constant 0 : index
    %c0_234 = arith.constant 0 : index
    %520 = vector.load %arg6[%c0_233, %c0_234] : memref<32x128xf32, #tpu.memory_space<vmem>>, vector<32x128xf32>
    %cst_235 = arith.constant dense<0.000000e+00> : vector<2x128xf32>
    %521 = tpu.matmul %482, %520, %cst_235 {dimension_numbers = #tpu.dot_dimension_numbers<[1], [0], [0], [1], [0, 0, 1, 1], [], []>} : vector<2x32xf32>, vector<32x128xf32>, vector<2x128xf32> -> vector<2x128xf32>
    %522 = arith.addf %519, %521 : vector<2x128xf32>
    %c0_236 = arith.constant 0 : index
    %c0_237 = arith.constant 0 : index
    %523 = vector.load %arg7[%c0_236, %c0_237] : memref<1x128xf32, #tpu.memory_space<vmem>>, vector<1x128xf32>
    %524 = vector.broadcast %523 : vector<1x128xf32> to vector<2x128xf32>
    %525 = arith.addf %522, %524 : vector<2x128xf32>
    %526 = vector.extract_strided_slice %525 {offsets = [0, 0], sizes = [2, 32], strides = [1, 1]} : vector<2x128xf32> to vector<2x32xf32>
    %527 = arith.negf %526 : vector<2x32xf32>
    %528 = math.exp %527 : vector<2x32xf32>
    %cst_238 = arith.constant 1.000000e+00 : f32
    %529 = vector.broadcast %cst_238 : f32 to vector<2x32xf32>
    %530 = arith.addf %529, %528 : vector<2x32xf32>
    %531 = arith.divf %529, %530 : vector<2x32xf32>
    %532 = vector.extract_strided_slice %525 {offsets = [0, 32], sizes = [2, 32], strides = [1, 1]} : vector<2x128xf32> to vector<2x32xf32>
    %533 = arith.negf %532 : vector<2x32xf32>
    %534 = math.exp %533 : vector<2x32xf32>
    %cst_239 = arith.constant 1.000000e+00 : f32
    %535 = vector.broadcast %cst_239 : f32 to vector<2x32xf32>
    %536 = arith.addf %535, %534 : vector<2x32xf32>
    %537 = arith.divf %535, %536 : vector<2x32xf32>
    %538 = vector.extract_strided_slice %525 {offsets = [0, 64], sizes = [2, 32], strides = [1, 1]} : vector<2x128xf32> to vector<2x32xf32>
    %539 = math.tanh %538 : vector<2x32xf32>
    %540 = vector.extract_strided_slice %525 {offsets = [0, 96], sizes = [2, 32], strides = [1, 1]} : vector<2x128xf32> to vector<2x32xf32>
    %541 = arith.negf %540 : vector<2x32xf32>
    %542 = math.exp %541 : vector<2x32xf32>
    %cst_240 = arith.constant 1.000000e+00 : f32
    %543 = vector.broadcast %cst_240 : f32 to vector<2x32xf32>
    %544 = arith.addf %543, %542 : vector<2x32xf32>
    %545 = arith.divf %543, %544 : vector<2x32xf32>
    %546 = arith.mulf %537, %480 : vector<2x32xf32>
    %547 = arith.mulf %531, %539 : vector<2x32xf32>
    %548 = arith.addf %546, %547 : vector<2x32xf32>
    %549 = math.tanh %548 : vector<2x32xf32>
    %550 = arith.mulf %545, %549 : vector<2x32xf32>
    %c0_241 = arith.constant 0 : index
    %c0_242 = arith.constant 0 : index
    %551 = vector.load %arg8[%c0_241, %c0_242] : memref<32x32xf32, #tpu.memory_space<vmem>>, vector<32x32xf32>
    %cst_243 = arith.constant dense<0.000000e+00> : vector<2x32xf32>
    %552 = tpu.matmul %550, %551, %cst_243 {dimension_numbers = #tpu.dot_dimension_numbers<[1], [0], [0], [1], [0, 0, 1, 1], [], []>} : vector<2x32xf32>, vector<32x32xf32>, vector<2x32xf32> -> vector<2x32xf32>
    %c0_244 = arith.constant 0 : index
    %c0_245 = arith.constant 0 : index
    %553 = vector.load %arg9[%c0_244, %c0_245] : memref<1x32xf32, #tpu.memory_space<vmem>>, vector<1x32xf32>
    %554 = vector.broadcast %553 : vector<1x32xf32> to vector<2x32xf32>
    %555 = arith.addf %552, %554 : vector<2x32xf32>
    %c4_246 = arith.constant 4 : index
    %c0_247 = arith.constant 0 : index
    %c0_248 = arith.constant 0 : index
    %556 = vector.load %arg11[%c4_246, %c0_247, %c0_248] : memref<8x2x32xf32, #tpu.memory_space<vmem>>, vector<1x2x32xf32>
    %557 = vector.shape_cast %556 : vector<1x2x32xf32> to vector<2x32xf32>
    %558 = arith.addf %555, %557 : vector<2x32xf32>
    %cst_249 = arith.constant 1.34985876 : f32
    %559 = vector.broadcast %cst_249 : f32 to vector<2x32xf32>
    %560 = arith.mulf %558, %559 : vector<2x32xf32>
    %cst_250 = arith.constant dense<0xFF800000> : vector<2xf32>
    %561 = vector.multi_reduction <maximumf>, %560, %cst_250 [1] : vector<2x32xf32> to vector<2xf32>
    %562 = vector.shape_cast %561 : vector<2xf32> to vector<2x1xf32>
    %563 = vector.broadcast %562 : vector<2x1xf32> to vector<2x32xf32>
    %564 = arith.cmpf oeq, %560, %563 : vector<2x32xf32>
    %c32_i32_251 = arith.constant 32 : i32
    %565 = vector.broadcast %c32_i32_251 : i32 to vector<2x32xi32>
    %566 = arith.select %564, %0, %565 : vector<2x32xi1>, vector<2x32xi32>
    %cst_252 = arith.constant dense<2147483647> : vector<2xi32>
    %567 = vector.multi_reduction <minsi>, %566, %cst_252 [1] : vector<2x32xi32> to vector<2xi32>
    %568 = vector.shape_cast %567 : vector<2xi32> to vector<2x1xi32>
    %569 = vector.broadcast %568 : vector<2x1xi32> to vector<2x32xi32>
    %570 = arith.cmpi eq, %0, %569 : vector<2x32xi32>
    %571 = arith.extui %570 : vector<2x32xi1> to vector<2x32xi32>
    %572 = arith.sitofp %571 : vector<2x32xi32> to vector<2x32xf32>
    %c0_253 = arith.constant 0 : index
    %c4_254 = arith.constant 4 : index
    %573 = vector.load %arg1[%c0_253, %c4_254] : memref<2x8xf32, #tpu.memory_space<vmem>>, vector<2x1xf32>
    %cst_255 = arith.constant 5.000000e-01 : f32
    %574 = vector.broadcast %cst_255 : f32 to vector<2x1xf32>
    %575 = arith.cmpf ogt, %573, %574 : vector<2x1xf32>
    %c4_256 = arith.constant 4 : index
    %c0_257 = arith.constant 0 : index
    %c0_258 = arith.constant 0 : index
    %576 = vector.load %arg0[%c4_256, %c0_257, %c0_258] : memref<8x2x32xf32, #tpu.memory_space<vmem>>, vector<1x2x32xf32>
    %577 = vector.shape_cast %576 : vector<1x2x32xf32> to vector<2x32xf32>
    %578 = vector.shape_cast %575 : vector<2x1xi1> to vector<2x1xi1>
    %579 = vector.broadcast %578 : vector<2x1xi1> to vector<2x32xi1>
    %580 = arith.select %579, %572, %577 : vector<2x32xi1>, vector<2x32xf32>
    %c4_259 = arith.constant 4 : index
    %c0_260 = arith.constant 0 : index
    %c0_261 = arith.constant 0 : index
    %581 = vector.load %arg12[%c4_259, %c0_260, %c0_261] : memref<8x2x32xf32, #tpu.memory_space<vmem>>, vector<1x2x32xf32>
    %582 = vector.shape_cast %581 : vector<1x2x32xf32> to vector<2x32xf32>
    %583 = vector.shape_cast %580 : vector<2x32xf32> to vector<1x2x32xf32>
    tpu.vector_store %arg12[%c4_259, %c0_260, %c0_261], %583 {strides = array<i32>} : memref<8x2x32xf32, #tpu.memory_space<vmem>>, vector<1x2x32xf32>,
    %c4_262 = arith.constant 4 : index
    %c0_263 = arith.constant 0 : index
    %c0_264 = arith.constant 0 : index
    %584 = vector.load %arg0[%c4_262, %c0_263, %c0_264] : memref<8x2x32xf32, #tpu.memory_space<vmem>>, vector<1x2x32xf32>
    %585 = vector.shape_cast %584 : vector<1x2x32xf32> to vector<2x32xf32>
    %c0_265 = arith.constant 0 : index
    %c0_266 = arith.constant 0 : index
    %586 = vector.load %arg5[%c0_265, %c0_266] : memref<32x128xf32, #tpu.memory_space<vmem>>, vector<32x128xf32>
    %cst_267 = arith.constant dense<0.000000e+00> : vector<2x128xf32>
    %587 = tpu.matmul %585, %586, %cst_267 {dimension_numbers = #tpu.dot_dimension_numbers<[1], [0], [0], [1], [0, 0, 1, 1], [], []>} : vector<2x32xf32>, vector<32x128xf32>, vector<2x128xf32> -> vector<2x128xf32>
    %c0_268 = arith.constant 0 : index
    %c0_269 = arith.constant 0 : index
    %588 = vector.load %arg6[%c0_268, %c0_269] : memref<32x128xf32, #tpu.memory_space<vmem>>, vector<32x128xf32>
    %cst_270 = arith.constant dense<0.000000e+00> : vector<2x128xf32>
    %589 = tpu.matmul %550, %588, %cst_270 {dimension_numbers = #tpu.dot_dimension_numbers<[1], [0], [0], [1], [0, 0, 1, 1], [], []>} : vector<2x32xf32>, vector<32x128xf32>, vector<2x128xf32> -> vector<2x128xf32>
    %590 = arith.addf %587, %589 : vector<2x128xf32>
    %c0_271 = arith.constant 0 : index
    %c0_272 = arith.constant 0 : index
    %591 = vector.load %arg7[%c0_271, %c0_272] : memref<1x128xf32, #tpu.memory_space<vmem>>, vector<1x128xf32>
    %592 = vector.broadcast %591 : vector<1x128xf32> to vector<2x128xf32>
    %593 = arith.addf %590, %592 : vector<2x128xf32>
    %594 = vector.extract_strided_slice %593 {offsets = [0, 0], sizes = [2, 32], strides = [1, 1]} : vector<2x128xf32> to vector<2x32xf32>
    %595 = arith.negf %594 : vector<2x32xf32>
    %596 = math.exp %595 : vector<2x32xf32>
    %cst_273 = arith.constant 1.000000e+00 : f32
    %597 = vector.broadcast %cst_273 : f32 to vector<2x32xf32>
    %598 = arith.addf %597, %596 : vector<2x32xf32>
    %599 = arith.divf %597, %598 : vector<2x32xf32>
    %600 = vector.extract_strided_slice %593 {offsets = [0, 32], sizes = [2, 32], strides = [1, 1]} : vector<2x128xf32> to vector<2x32xf32>
    %601 = arith.negf %600 : vector<2x32xf32>
    %602 = math.exp %601 : vector<2x32xf32>
    %cst_274 = arith.constant 1.000000e+00 : f32
    %603 = vector.broadcast %cst_274 : f32 to vector<2x32xf32>
    %604 = arith.addf %603, %602 : vector<2x32xf32>
    %605 = arith.divf %603, %604 : vector<2x32xf32>
    %606 = vector.extract_strided_slice %593 {offsets = [0, 64], sizes = [2, 32], strides = [1, 1]} : vector<2x128xf32> to vector<2x32xf32>
    %607 = math.tanh %606 : vector<2x32xf32>
    %608 = vector.extract_strided_slice %593 {offsets = [0, 96], sizes = [2, 32], strides = [1, 1]} : vector<2x128xf32> to vector<2x32xf32>
    %609 = arith.negf %608 : vector<2x32xf32>
    %610 = math.exp %609 : vector<2x32xf32>
    %cst_275 = arith.constant 1.000000e+00 : f32
    %611 = vector.broadcast %cst_275 : f32 to vector<2x32xf32>
    %612 = arith.addf %611, %610 : vector<2x32xf32>
    %613 = arith.divf %611, %612 : vector<2x32xf32>
    %614 = arith.mulf %605, %548 : vector<2x32xf32>
    %615 = arith.mulf %599, %607 : vector<2x32xf32>
    %616 = arith.addf %614, %615 : vector<2x32xf32>
    %617 = math.tanh %616 : vector<2x32xf32>
    %618 = arith.mulf %613, %617 : vector<2x32xf32>
    %c0_276 = arith.constant 0 : index
    %c0_277 = arith.constant 0 : index
    %619 = vector.load %arg8[%c0_276, %c0_277] : memref<32x32xf32, #tpu.memory_space<vmem>>, vector<32x32xf32>
    %cst_278 = arith.constant dense<0.000000e+00> : vector<2x32xf32>
    %620 = tpu.matmul %618, %619, %cst_278 {dimension_numbers = #tpu.dot_dimension_numbers<[1], [0], [0], [1], [0, 0, 1, 1], [], []>} : vector<2x32xf32>, vector<32x32xf32>, vector<2x32xf32> -> vector<2x32xf32>
    %c0_279 = arith.constant 0 : index
    %c0_280 = arith.constant 0 : index
    %621 = vector.load %arg9[%c0_279, %c0_280] : memref<1x32xf32, #tpu.memory_space<vmem>>, vector<1x32xf32>
    %622 = vector.broadcast %621 : vector<1x32xf32> to vector<2x32xf32>
    %623 = arith.addf %620, %622 : vector<2x32xf32>
    %c5_281 = arith.constant 5 : index
    %c0_282 = arith.constant 0 : index
    %c0_283 = arith.constant 0 : index
    %624 = vector.load %arg11[%c5_281, %c0_282, %c0_283] : memref<8x2x32xf32, #tpu.memory_space<vmem>>, vector<1x2x32xf32>
    %625 = vector.shape_cast %624 : vector<1x2x32xf32> to vector<2x32xf32>
    %626 = arith.addf %623, %625 : vector<2x32xf32>
    %cst_284 = arith.constant 1.34985876 : f32
    %627 = vector.broadcast %cst_284 : f32 to vector<2x32xf32>
    %628 = arith.mulf %626, %627 : vector<2x32xf32>
    %cst_285 = arith.constant dense<0xFF800000> : vector<2xf32>
    %629 = vector.multi_reduction <maximumf>, %628, %cst_285 [1] : vector<2x32xf32> to vector<2xf32>
    %630 = vector.shape_cast %629 : vector<2xf32> to vector<2x1xf32>
    %631 = vector.broadcast %630 : vector<2x1xf32> to vector<2x32xf32>
    %632 = arith.cmpf oeq, %628, %631 : vector<2x32xf32>
    %c32_i32_286 = arith.constant 32 : i32
    %633 = vector.broadcast %c32_i32_286 : i32 to vector<2x32xi32>
    %634 = arith.select %632, %0, %633 : vector<2x32xi1>, vector<2x32xi32>
    %cst_287 = arith.constant dense<2147483647> : vector<2xi32>
    %635 = vector.multi_reduction <minsi>, %634, %cst_287 [1] : vector<2x32xi32> to vector<2xi32>
    %636 = vector.shape_cast %635 : vector<2xi32> to vector<2x1xi32>
    %637 = vector.broadcast %636 : vector<2x1xi32> to vector<2x32xi32>
    %638 = arith.cmpi eq, %0, %637 : vector<2x32xi32>
    %639 = arith.extui %638 : vector<2x32xi1> to vector<2x32xi32>
    %640 = arith.sitofp %639 : vector<2x32xi32> to vector<2x32xf32>
    %c0_288 = arith.constant 0 : index
    %c5_289 = arith.constant 5 : index
    %641 = vector.load %arg1[%c0_288, %c5_289] : memref<2x8xf32, #tpu.memory_space<vmem>>, vector<2x1xf32>
    %cst_290 = arith.constant 5.000000e-01 : f32
    %642 = vector.broadcast %cst_290 : f32 to vector<2x1xf32>
    %643 = arith.cmpf ogt, %641, %642 : vector<2x1xf32>
    %c5_291 = arith.constant 5 : index
    %c0_292 = arith.constant 0 : index
    %c0_293 = arith.constant 0 : index
    %644 = vector.load %arg0[%c5_291, %c0_292, %c0_293] : memref<8x2x32xf32, #tpu.memory_space<vmem>>, vector<1x2x32xf32>
    %645 = vector.shape_cast %644 : vector<1x2x32xf32> to vector<2x32xf32>
    %646 = vector.shape_cast %643 : vector<2x1xi1> to vector<2x1xi1>
    %647 = vector.broadcast %646 : vector<2x1xi1> to vector<2x32xi1>
    %648 = arith.select %647, %640, %645 : vector<2x32xi1>, vector<2x32xf32>
    %c5_294 = arith.constant 5 : index
    %c0_295 = arith.constant 0 : index
    %c0_296 = arith.constant 0 : index
    %649 = vector.load %arg12[%c5_294, %c0_295, %c0_296] : memref<8x2x32xf32, #tpu.memory_space<vmem>>, vector<1x2x32xf32>
    %650 = vector.shape_cast %649 : vector<1x2x32xf32> to vector<2x32xf32>
    %651 = vector.shape_cast %648 : vector<2x32xf32> to vector<1x2x32xf32>
    tpu.vector_store %arg12[%c5_294, %c0_295, %c0_296], %651 {strides = array<i32>} : memref<8x2x32xf32, #tpu.memory_space<vmem>>, vector<1x2x32xf32>,
    %c5_297 = arith.constant 5 : index
    %c0_298 = arith.constant 0 : index
    %c0_299 = arith.constant 0 : index
    %652 = vector.load %arg0[%c5_297, %c0_298, %c0_299] : memref<8x2x32xf32, #tpu.memory_space<vmem>>, vector<1x2x32xf32>
    %653 = vector.shape_cast %652 : vector<1x2x32xf32> to vector<2x32xf32>
    %c0_300 = arith.constant 0 : index
    %c0_301 = arith.constant 0 : index
    %654 = vector.load %arg5[%c0_300, %c0_301] : memref<32x128xf32, #tpu.memory_space<vmem>>, vector<32x128xf32>
    %cst_302 = arith.constant dense<0.000000e+00> : vector<2x128xf32>
    %655 = tpu.matmul %653, %654, %cst_302 {dimension_numbers = #tpu.dot_dimension_numbers<[1], [0], [0], [1], [0, 0, 1, 1], [], []>} : vector<2x32xf32>, vector<32x128xf32>, vector<2x128xf32> -> vector<2x128xf32>
    %c0_303 = arith.constant 0 : index
    %c0_304 = arith.constant 0 : index
    %656 = vector.load %arg6[%c0_303, %c0_304] : memref<32x128xf32, #tpu.memory_space<vmem>>, vector<32x128xf32>
    %cst_305 = arith.constant dense<0.000000e+00> : vector<2x128xf32>
    %657 = tpu.matmul %618, %656, %cst_305 {dimension_numbers = #tpu.dot_dimension_numbers<[1], [0], [0], [1], [0, 0, 1, 1], [], []>} : vector<2x32xf32>, vector<32x128xf32>, vector<2x128xf32> -> vector<2x128xf32>
    %658 = arith.addf %655, %657 : vector<2x128xf32>
    %c0_306 = arith.constant 0 : index
    %c0_307 = arith.constant 0 : index
    %659 = vector.load %arg7[%c0_306, %c0_307] : memref<1x128xf32, #tpu.memory_space<vmem>>, vector<1x128xf32>
    %660 = vector.broadcast %659 : vector<1x128xf32> to vector<2x128xf32>
    %661 = arith.addf %658, %660 : vector<2x128xf32>
    %662 = vector.extract_strided_slice %661 {offsets = [0, 0], sizes = [2, 32], strides = [1, 1]} : vector<2x128xf32> to vector<2x32xf32>
    %663 = arith.negf %662 : vector<2x32xf32>
    %664 = math.exp %663 : vector<2x32xf32>
    %cst_308 = arith.constant 1.000000e+00 : f32
    %665 = vector.broadcast %cst_308 : f32 to vector<2x32xf32>
    %666 = arith.addf %665, %664 : vector<2x32xf32>
    %667 = arith.divf %665, %666 : vector<2x32xf32>
    %668 = vector.extract_strided_slice %661 {offsets = [0, 32], sizes = [2, 32], strides = [1, 1]} : vector<2x128xf32> to vector<2x32xf32>
    %669 = arith.negf %668 : vector<2x32xf32>
    %670 = math.exp %669 : vector<2x32xf32>
    %cst_309 = arith.constant 1.000000e+00 : f32
    %671 = vector.broadcast %cst_309 : f32 to vector<2x32xf32>
    %672 = arith.addf %671, %670 : vector<2x32xf32>
    %673 = arith.divf %671, %672 : vector<2x32xf32>
    %674 = vector.extract_strided_slice %661 {offsets = [0, 64], sizes = [2, 32], strides = [1, 1]} : vector<2x128xf32> to vector<2x32xf32>
    %675 = math.tanh %674 : vector<2x32xf32>
    %676 = vector.extract_strided_slice %661 {offsets = [0, 96], sizes = [2, 32], strides = [1, 1]} : vector<2x128xf32> to vector<2x32xf32>
    %677 = arith.negf %676 : vector<2x32xf32>
    %678 = math.exp %677 : vector<2x32xf32>
    %cst_310 = arith.constant 1.000000e+00 : f32
    %679 = vector.broadcast %cst_310 : f32 to vector<2x32xf32>
    %680 = arith.addf %679, %678 : vector<2x32xf32>
    %681 = arith.divf %679, %680 : vector<2x32xf32>
    %682 = arith.mulf %673, %616 : vector<2x32xf32>
    %683 = arith.mulf %667, %675 : vector<2x32xf32>
    %684 = arith.addf %682, %683 : vector<2x32xf32>
    %685 = math.tanh %684 : vector<2x32xf32>
    %686 = arith.mulf %681, %685 : vector<2x32xf32>
    %c0_311 = arith.constant 0 : index
    %c0_312 = arith.constant 0 : index
    %687 = vector.load %arg8[%c0_311, %c0_312] : memref<32x32xf32, #tpu.memory_space<vmem>>, vector<32x32xf32>
    %cst_313 = arith.constant dense<0.000000e+00> : vector<2x32xf32>
    %688 = tpu.matmul %686, %687, %cst_313 {dimension_numbers = #tpu.dot_dimension_numbers<[1], [0], [0], [1], [0, 0, 1, 1], [], []>} : vector<2x32xf32>, vector<32x32xf32>, vector<2x32xf32> -> vector<2x32xf32>
    %c0_314 = arith.constant 0 : index
    %c0_315 = arith.constant 0 : index
    %689 = vector.load %arg9[%c0_314, %c0_315] : memref<1x32xf32, #tpu.memory_space<vmem>>, vector<1x32xf32>
    %690 = vector.broadcast %689 : vector<1x32xf32> to vector<2x32xf32>
    %691 = arith.addf %688, %690 : vector<2x32xf32>
    %c6_316 = arith.constant 6 : index
    %c0_317 = arith.constant 0 : index
    %c0_318 = arith.constant 0 : index
    %692 = vector.load %arg11[%c6_316, %c0_317, %c0_318] : memref<8x2x32xf32, #tpu.memory_space<vmem>>, vector<1x2x32xf32>
    %693 = vector.shape_cast %692 : vector<1x2x32xf32> to vector<2x32xf32>
    %694 = arith.addf %691, %693 : vector<2x32xf32>
    %cst_319 = arith.constant 1.34985876 : f32
    %695 = vector.broadcast %cst_319 : f32 to vector<2x32xf32>
    %696 = arith.mulf %694, %695 : vector<2x32xf32>
    %cst_320 = arith.constant dense<0xFF800000> : vector<2xf32>
    %697 = vector.multi_reduction <maximumf>, %696, %cst_320 [1] : vector<2x32xf32> to vector<2xf32>
    %698 = vector.shape_cast %697 : vector<2xf32> to vector<2x1xf32>
    %699 = vector.broadcast %698 : vector<2x1xf32> to vector<2x32xf32>
    %700 = arith.cmpf oeq, %696, %699 : vector<2x32xf32>
    %c32_i32_321 = arith.constant 32 : i32
    %701 = vector.broadcast %c32_i32_321 : i32 to vector<2x32xi32>
    %702 = arith.select %700, %0, %701 : vector<2x32xi1>, vector<2x32xi32>
    %cst_322 = arith.constant dense<2147483647> : vector<2xi32>
    %703 = vector.multi_reduction <minsi>, %702, %cst_322 [1] : vector<2x32xi32> to vector<2xi32>
    %704 = vector.shape_cast %703 : vector<2xi32> to vector<2x1xi32>
    %705 = vector.broadcast %704 : vector<2x1xi32> to vector<2x32xi32>
    %706 = arith.cmpi eq, %0, %705 : vector<2x32xi32>
    %707 = arith.extui %706 : vector<2x32xi1> to vector<2x32xi32>
    %708 = arith.sitofp %707 : vector<2x32xi32> to vector<2x32xf32>
    %c0_323 = arith.constant 0 : index
    %c6_324 = arith.constant 6 : index
    %709 = vector.load %arg1[%c0_323, %c6_324] : memref<2x8xf32, #tpu.memory_space<vmem>>, vector<2x1xf32>
    %cst_325 = arith.constant 5.000000e-01 : f32
    %710 = vector.broadcast %cst_325 : f32 to vector<2x1xf32>
    %711 = arith.cmpf ogt, %709, %710 : vector<2x1xf32>
    %c6_326 = arith.constant 6 : index
    %c0_327 = arith.constant 0 : index
    %c0_328 = arith.constant 0 : index
    %712 = vector.load %arg0[%c6_326, %c0_327, %c0_328] : memref<8x2x32xf32, #tpu.memory_space<vmem>>, vector<1x2x32xf32>
    %713 = vector.shape_cast %712 : vector<1x2x32xf32> to vector<2x32xf32>
    %714 = vector.shape_cast %711 : vector<2x1xi1> to vector<2x1xi1>
    %715 = vector.broadcast %714 : vector<2x1xi1> to vector<2x32xi1>
    %716 = arith.select %715, %708, %713 : vector<2x32xi1>, vector<2x32xf32>
    %c6_329 = arith.constant 6 : index
    %c0_330 = arith.constant 0 : index
    %c0_331 = arith.constant 0 : index
    %717 = vector.load %arg12[%c6_329, %c0_330, %c0_331] : memref<8x2x32xf32, #tpu.memory_space<vmem>>, vector<1x2x32xf32>
    %718 = vector.shape_cast %717 : vector<1x2x32xf32> to vector<2x32xf32>
    %719 = vector.shape_cast %716 : vector<2x32xf32> to vector<1x2x32xf32>
    tpu.vector_store %arg12[%c6_329, %c0_330, %c0_331], %719 {strides = array<i32>} : memref<8x2x32xf32, #tpu.memory_space<vmem>>, vector<1x2x32xf32>,
    %c6_332 = arith.constant 6 : index
    %c0_333 = arith.constant 0 : index
    %c0_334 = arith.constant 0 : index
    %720 = vector.load %arg0[%c6_332, %c0_333, %c0_334] : memref<8x2x32xf32, #tpu.memory_space<vmem>>, vector<1x2x32xf32>
    %721 = vector.shape_cast %720 : vector<1x2x32xf32> to vector<2x32xf32>
    %c0_335 = arith.constant 0 : index
    %c0_336 = arith.constant 0 : index
    %722 = vector.load %arg5[%c0_335, %c0_336] : memref<32x128xf32, #tpu.memory_space<vmem>>, vector<32x128xf32>
    %cst_337 = arith.constant dense<0.000000e+00> : vector<2x128xf32>
    %723 = tpu.matmul %721, %722, %cst_337 {dimension_numbers = #tpu.dot_dimension_numbers<[1], [0], [0], [1], [0, 0, 1, 1], [], []>} : vector<2x32xf32>, vector<32x128xf32>, vector<2x128xf32> -> vector<2x128xf32>
    %c0_338 = arith.constant 0 : index
    %c0_339 = arith.constant 0 : index
    %724 = vector.load %arg6[%c0_338, %c0_339] : memref<32x128xf32, #tpu.memory_space<vmem>>, vector<32x128xf32>
    %cst_340 = arith.constant dense<0.000000e+00> : vector<2x128xf32>
    %725 = tpu.matmul %686, %724, %cst_340 {dimension_numbers = #tpu.dot_dimension_numbers<[1], [0], [0], [1], [0, 0, 1, 1], [], []>} : vector<2x32xf32>, vector<32x128xf32>, vector<2x128xf32> -> vector<2x128xf32>
    %726 = arith.addf %723, %725 : vector<2x128xf32>
    %c0_341 = arith.constant 0 : index
    %c0_342 = arith.constant 0 : index
    %727 = vector.load %arg7[%c0_341, %c0_342] : memref<1x128xf32, #tpu.memory_space<vmem>>, vector<1x128xf32>
    %728 = vector.broadcast %727 : vector<1x128xf32> to vector<2x128xf32>
    %729 = arith.addf %726, %728 : vector<2x128xf32>
    %730 = vector.extract_strided_slice %729 {offsets = [0, 0], sizes = [2, 32], strides = [1, 1]} : vector<2x128xf32> to vector<2x32xf32>
    %731 = arith.negf %730 : vector<2x32xf32>
    %732 = math.exp %731 : vector<2x32xf32>
    %cst_343 = arith.constant 1.000000e+00 : f32
    %733 = vector.broadcast %cst_343 : f32 to vector<2x32xf32>
    %734 = arith.addf %733, %732 : vector<2x32xf32>
    %735 = arith.divf %733, %734 : vector<2x32xf32>
    %736 = vector.extract_strided_slice %729 {offsets = [0, 32], sizes = [2, 32], strides = [1, 1]} : vector<2x128xf32> to vector<2x32xf32>
    %737 = arith.negf %736 : vector<2x32xf32>
    %738 = math.exp %737 : vector<2x32xf32>
    %cst_344 = arith.constant 1.000000e+00 : f32
    %739 = vector.broadcast %cst_344 : f32 to vector<2x32xf32>
    %740 = arith.addf %739, %738 : vector<2x32xf32>
    %741 = arith.divf %739, %740 : vector<2x32xf32>
    %742 = vector.extract_strided_slice %729 {offsets = [0, 64], sizes = [2, 32], strides = [1, 1]} : vector<2x128xf32> to vector<2x32xf32>
    %743 = math.tanh %742 : vector<2x32xf32>
    %744 = vector.extract_strided_slice %729 {offsets = [0, 96], sizes = [2, 32], strides = [1, 1]} : vector<2x128xf32> to vector<2x32xf32>
    %745 = arith.negf %744 : vector<2x32xf32>
    %746 = math.exp %745 : vector<2x32xf32>
    %cst_345 = arith.constant 1.000000e+00 : f32
    %747 = vector.broadcast %cst_345 : f32 to vector<2x32xf32>
    %748 = arith.addf %747, %746 : vector<2x32xf32>
    %749 = arith.divf %747, %748 : vector<2x32xf32>
    %750 = arith.mulf %741, %684 : vector<2x32xf32>
    %751 = arith.mulf %735, %743 : vector<2x32xf32>
    %752 = arith.addf %750, %751 : vector<2x32xf32>
    %753 = math.tanh %752 : vector<2x32xf32>
    %754 = arith.mulf %749, %753 : vector<2x32xf32>
    %c0_346 = arith.constant 0 : index
    %c0_347 = arith.constant 0 : index
    %755 = vector.load %arg8[%c0_346, %c0_347] : memref<32x32xf32, #tpu.memory_space<vmem>>, vector<32x32xf32>
    %cst_348 = arith.constant dense<0.000000e+00> : vector<2x32xf32>
    %756 = tpu.matmul %754, %755, %cst_348 {dimension_numbers = #tpu.dot_dimension_numbers<[1], [0], [0], [1], [0, 0, 1, 1], [], []>} : vector<2x32xf32>, vector<32x32xf32>, vector<2x32xf32> -> vector<2x32xf32>
    %c0_349 = arith.constant 0 : index
    %c0_350 = arith.constant 0 : index
    %757 = vector.load %arg9[%c0_349, %c0_350] : memref<1x32xf32, #tpu.memory_space<vmem>>, vector<1x32xf32>
    %758 = vector.broadcast %757 : vector<1x32xf32> to vector<2x32xf32>
    %759 = arith.addf %756, %758 : vector<2x32xf32>
    %c7_351 = arith.constant 7 : index
    %c0_352 = arith.constant 0 : index
    %c0_353 = arith.constant 0 : index
    %760 = vector.load %arg11[%c7_351, %c0_352, %c0_353] : memref<8x2x32xf32, #tpu.memory_space<vmem>>, vector<1x2x32xf32>
    %761 = vector.shape_cast %760 : vector<1x2x32xf32> to vector<2x32xf32>
    %762 = arith.addf %759, %761 : vector<2x32xf32>
    %cst_354 = arith.constant 1.34985876 : f32
    %763 = vector.broadcast %cst_354 : f32 to vector<2x32xf32>
    %764 = arith.mulf %762, %763 : vector<2x32xf32>
    %cst_355 = arith.constant dense<0xFF800000> : vector<2xf32>
    %765 = vector.multi_reduction <maximumf>, %764, %cst_355 [1] : vector<2x32xf32> to vector<2xf32>
    %766 = vector.shape_cast %765 : vector<2xf32> to vector<2x1xf32>
    %767 = vector.broadcast %766 : vector<2x1xf32> to vector<2x32xf32>
    %768 = arith.cmpf oeq, %764, %767 : vector<2x32xf32>
    %c32_i32_356 = arith.constant 32 : i32
    %769 = vector.broadcast %c32_i32_356 : i32 to vector<2x32xi32>
    %770 = arith.select %768, %0, %769 : vector<2x32xi1>, vector<2x32xi32>
    %cst_357 = arith.constant dense<2147483647> : vector<2xi32>
    %771 = vector.multi_reduction <minsi>, %770, %cst_357 [1] : vector<2x32xi32> to vector<2xi32>
    %772 = vector.shape_cast %771 : vector<2xi32> to vector<2x1xi32>
    %773 = vector.broadcast %772 : vector<2x1xi32> to vector<2x32xi32>
    %774 = arith.cmpi eq, %0, %773 : vector<2x32xi32>
    %775 = arith.extui %774 : vector<2x32xi1> to vector<2x32xi32>
    %776 = arith.sitofp %775 : vector<2x32xi32> to vector<2x32xf32>
    %c0_358 = arith.constant 0 : index
    %c7_359 = arith.constant 7 : index
    %777 = vector.load %arg1[%c0_358, %c7_359] : memref<2x8xf32, #tpu.memory_space<vmem>>, vector<2x1xf32>
    %cst_360 = arith.constant 5.000000e-01 : f32
    %778 = vector.broadcast %cst_360 : f32 to vector<2x1xf32>
    %779 = arith.cmpf ogt, %777, %778 : vector<2x1xf32>
    %c7_361 = arith.constant 7 : index
    %c0_362 = arith.constant 0 : index
    %c0_363 = arith.constant 0 : index
    %780 = vector.load %arg0[%c7_361, %c0_362, %c0_363] : memref<8x2x32xf32, #tpu.memory_space<vmem>>, vector<1x2x32xf32>
    %781 = vector.shape_cast %780 : vector<1x2x32xf32> to vector<2x32xf32>
    %782 = vector.shape_cast %779 : vector<2x1xi1> to vector<2x1xi1>
    %783 = vector.broadcast %782 : vector<2x1xi1> to vector<2x32xi1>
    %784 = arith.select %783, %776, %781 : vector<2x32xi1>, vector<2x32xf32>
    %c7_364 = arith.constant 7 : index
    %c0_365 = arith.constant 0 : index
    %c0_366 = arith.constant 0 : index
    %785 = vector.load %arg12[%c7_364, %c0_365, %c0_366] : memref<8x2x32xf32, #tpu.memory_space<vmem>>, vector<1x2x32xf32>
    %786 = vector.shape_cast %785 : vector<1x2x32xf32> to vector<2x32xf32>
    %787 = vector.shape_cast %784 : vector<2x32xf32> to vector<1x2x32xf32>
    tpu.vector_store %arg12[%c7_364, %c0_365, %c0_366], %787 {strides = array<i32>} : memref<8x2x32xf32, #tpu.memory_space<vmem>>, vector<1x2x32xf32>,
    return
  }
}

</mosaic_0001>

<bundles_post_ra>
// kernel: seq2seq_forward.1
= control target key start
LH: loop header
LB: loop body
LE: loop exit
PB: predicated region body
PF: predicated region fallthrough
CT: control target
= control target key end

     0   :  { %v4500_v0 = vmov 0.0   ;;  %vm52_vm0 = vcmask 261120   ;;  %vm4501_vm1 = vmmov 0   ;;  %s4502_s21 = smov 64   ;;  %vm1460_vm2 = vcmask 254976   ;;  %s5413_s3 = inlined_call_operand.vmem [shape: f32[32,128], index: 3, kind: input, shape index: {}]   ;;  %s5414_s2 = inlined_call_operand.vmem [shape: f32[32,128], index: 2, kind: input, shape index: {}]   ;;  %s5415_s0 = inlined_call_operand.vmem [shape: f32[8,2,32], index: 0, kind: input, shape index: {}]   ;;  %s5416_s4 = inlined_call_operand.vmem [shape: f32[1,128], index: 4, kind: input, shape index: {}]   ;;  %s5417_s5 = inlined_call_operand.vmem [shape: f32[32,128], index: 5, kind: input, shape index: {}]   ;;  %s5418_s6 = inlined_call_operand.vmem [shape: f32[32,128], index: 6, kind: input, shape index: {}]   ;;  %s5419_s7 = inlined_call_operand.vmem [shape: f32[1,128], index: 7, kind: input, shape index: {}]   ;;  %s5420_s8 = inlined_call_operand.vmem [shape: f32[32,32], index: 8, kind: input, shape index: {}]   ;;  %s5421_s10 = inlined_call_operand.vmem [shape: f32[2,32], index: 10, kind: input, shape index: {}]   ;;  %s5422_s11 = inlined_call_operand.vmem [shape: f32[8,2,32], index: 11, kind: input, shape index: {}]   ;;  %s5423_s9 = inlined_call_operand.vmem [shape: f32[1,32], index: 9, kind: input, shape index: {}]   ;;  %s5424_s1 = inlined_call_operand.vmem [shape: f32[2,8], index: 1, kind: input, shape index: {}]   ;;  %s5425_s12 = inlined_call_operand.vmem [shape: f32[8,2,32], index: 12, kind: output, shape index: {}]  }
   0x1   :  { %3951 = vmatprep.subr.mxu0 %v4500_v0  ;;  %3962 = vmatprep.subr.mxu1 %v4500_v0  ;;  %v4582_v1 = vld [vmem:[%s5413_s3 + $0x18] sm:$0xff]  ;;  %v4592_v3 = vld [vmem:[%s5413_s3 + $0x10] sm:$0xff]  ;;  %v4606_v5 = vld [vmem:[%s5413_s3 + $0x8] sm:$0xff] }
   0x2   :  { %v4587_v2 = vld [vmem:[%s5414_s2 + $0x18] sm:$0xff]  ;;  %3952 = vmatpush3.msra.mxu0 %v4582_v1  ;;  %v4599_v4 = vld [vmem:[%s5414_s2 + $0x10] sm:$0xff]  ;;  %v4611_v6 = vld [vmem:[%s5414_s2 + $0x8] sm:$0xff]  ;;  %3959 = vmatprep.mubr.msk.f32.mxu0 %vm4501_vm1, %v4500_v0 }
   0x3   :  { %3963 = vmatpush3.msra.mxu1 %v4587_v2  ;;  %3953 = vmatprep.subr.mxu0 %v4500_v0  ;;  %v4620_v7 = vld [vmem:[%s5413_s3] sm:$0xff] }
   0x4   :  { %3964 = vmatprep.subr.mxu1 %v4500_v0  ;;  %3954 = vmatpush3.msra.mxu0 %v4592_v3  ;;  %v4627_v8 = vld [vmem:[%s5414_s2] sm:$0xff] }
   0x5   :  { %3965 = vmatpush3.msra.mxu1 %v4599_v4  ;;  %3955 = vmatprep.subr.mxu0 %v4500_v0  ;;  %v43_v9 = vld [vmem:[%s5415_s0] sm:$0x3]  ;;  %v3661_v27 = vld [vmem:[%s5415_s0 + $0x2] sm:$0x3]  ;;  %v3665_v48 = vld [vmem:[%s5415_s0 + $0x4] sm:$0x3] }
   0x6   :  { %3966 = vmatprep.subr.mxu1 %v4500_v0  ;;  %3956 = vmatpush3.msra.mxu0 %v4606_v5  ;;  %v4667_v12 = vld [vmem:[%s5416_s4] ss:$0 sm:$0xff]  ;;  %s4503_s4 = smov 32  }
   0x7   :  { %3967 = vmatpush3.msra.mxu1 %v4611_v6  ;;  %3957 = vmatprep.subr.mxu0 %v4500_v0 }
   0x8   :  { %3968 = vmatprep.subr.mxu1 %v4500_v0  ;;  %3958 = vmatpush3.msra.mxu0 %v4620_v7 }
   0x9   :  { %3969 = vmatpush3.msra.mxu1 %v4627_v8  ;;  %3970 = vmatprep.mubr.msk.f32.mxu1 %vm4501_vm1, %v4500_v0 }
   0xa   :  { %3960 = vmatmul.mubr.f32.vlgmr.msra.gmra.mxu0 %v4500_v0  ;;  %3971 = vmatmul.mubr.msk.f32.vlgmr.msra.gmra.mxu1 %vm52_vm0, %v43_v9 }
   0xb   :  { %3984 = vmatprep.subr.mxu1 %v4500_v0  ;;  %3973 = vmatprep.subr.mxu0 %v4500_v0 }
   0xc   :  { %3985 = vmatpush3.msra.mxu1 %v4587_v2  ;;  %3974 = vmatpush3.msra.mxu0 %v4582_v1 }
   0xd   :  { %3986 = vmatprep.subr.mxu1 %v4500_v0  ;;  %3975 = vmatprep.subr.mxu0 %v4500_v0 }
   0xe   :  { %3987 = vmatpush3.msra.mxu1 %v4599_v4  ;;  %3976 = vmatpush3.msra.mxu0 %v4592_v3 }
   0xf   :  { %3988 = vmatprep.subr.mxu1 %v4500_v0  ;;  %3977 = vmatprep.subr.mxu0 %v4500_v0 }
  0x10   :  { %3989 = vmatpush3.msra.mxu1 %v4611_v6  ;;  %3978 = vmatpush3.msra.mxu0 %v4606_v5 }
  0x11   :  { %3990 = vmatprep.subr.mxu1 %v4500_v0  ;;  %3992 = vmatprep.mubr.msk.f32.mxu1 %vm4501_vm1, %v4500_v0 }
  0x12   :  { %3991 = vmatpush3.msra.mxu1 %v4627_v8  ;;  %3979 = vmatprep.subr.mxu0 %v4500_v0 }
  0x13   :  { %3980 = vmatpush3.msra.mxu0 %v4620_v7  ;;  %3981 = vmatprep.mubr.msk.f32.mxu0 %vm4501_vm1, %v4500_v0 }
  0x14   :  { %4006 = vmatprep.subr.mxu1 %v4500_v0  ;;  %3995 = vmatprep.subr.mxu0 %v4500_v0 }
  0x15   :  { %3993 = vmatmul.mubr.msk.f32.vlgmr.msra.gmra.mxu1 %vm52_vm0, %v3661_v27 }
  0x16   :  { %4007 = vmatpush3.msra.mxu1 %v4587_v2  ;;  %4014 = vmatprep.mubr.msk.f32.mxu1 %vm4501_vm1, %v4500_v0 }
  0x17   :  { %4008 = vmatprep.subr.mxu1 %v4500_v0 }
  0x18   :  { %4009 = vmatpush3.msra.mxu1 %v4599_v4 }
  0x19   :  { %4010 = vmatprep.subr.mxu1 %v4500_v0 }
  0x1a   :  { %4011 = vmatpush3.msra.mxu1 %v4611_v6 }
  0x1b   :  { %4012 = vmatprep.subr.mxu1 %v4500_v0 }
  0x1c   :  { %4013 = vmatpush3.msra.mxu1 %v4627_v8 }
  0x1d   :  { %4028 = vmatprep.subr.mxu1 %v4500_v0  ;;  %4015 = vmatmul.mubr.msk.f32.vlgmr.msra.gmra.mxu1 %vm52_vm0, %v3665_v48 }
  0x1e   :  { %4029 = vmatpush3.msra.mxu1 %v4587_v2  ;;  %4036 = vmatprep.mubr.msk.f32.mxu1 %vm4501_vm1, %v4500_v0 }
  0x1f   :  { %4030 = vmatprep.subr.mxu1 %v4500_v0 }
  0x20   :  { %4031 = vmatpush3.msra.mxu1 %v4599_v4 }
  0x21   :  { %4032 = vmatprep.subr.mxu1 %v4500_v0 }
  0x22   :  { %4033 = vmatpush3.msra.mxu1 %v4611_v6 }
  0x23   :  { %4034 = vmatprep.subr.mxu1 %v4500_v0 }
  0x24   :  { %4035 = vmatpush3.msra.mxu1 %v4627_v8 }
  0x25   :  { %4050 = vmatprep.subr.mxu1 %v4500_v0 }
  0xca   :  { %v122_v10 = vpop.f32.mrf.mxu0  ;;  %v195_v11 = vpop.f32.mrf.mxu1 }
  0xcb   :  { %v196_v13 = vadd.f32 %v195_v11, %v122_v10 }
  0xcc   :  { %v3961_v14 = vpop.f32.mrf.mxu0  ;;  %v3972_v15 = vpop.f32.mrf.mxu1 }
  0xcd   :  { %v206_v16 = vadd.f32 %v4667_v12, %v196_v13  ;;  %v3669_v15 = vld [vmem:[%s5415_s0 + $0x6] sm:$0x3] }
  0xce   :  { %4037 = vmatmul.mubr.msk.f32.vlgmr.msra.gmra.mxu1 %vm52_vm0, %v3669_v15 }
  0xcf   :  { %4379 = vtanh.f32 %v206_v16  ;;  %v3660_v18 = vmul.f32 -1.442695, %v206_v16  ;;  %4051 = vmatpush3.msra.mxu1 %v4587_v2  ;;  %4058 = vmatprep.mubr.msk.f32.mxu1 %vm4501_vm1, %v4500_v0 }
  0xd0   :  { %4052 = vmatprep.subr.mxu1 %v4500_v0 }
  0xd1   :  { %4381 = vpow2.f32 %v3660_v18  ;;  %4053 = vmatpush3.msra.mxu1 %v4599_v4 }
  0xd2   :  { %4054 = vmatprep.subr.mxu1 %v4500_v0 }
  0xd3   :  { %4055 = vmatpush3.msra.mxu1 %v4611_v6 }
  0xd4   :  { %4056 = vmatprep.subr.mxu1 %v4500_v0 }
  0xd5   :  { %v377_v31 = vpop.f32.mrf.mxu1  ;;  %4057 = vmatpush3.msra.mxu1 %v4627_v8 }
  0xd6   :  { %4072 = vmatprep.subr.mxu1 %v4500_v0 }
  0xd7   :  { %v3994_v32 = vpop.f32.mrf.mxu1 }
  0xdc   :  { %v4380_v17 = vpop.eup %4379 }
  0xdd   :  { %216 = vrot.lane.b32.xlu0 %v4380_v17, %s4502_s21  ;;  %v552_v52 = vpop.f32.mrf.mxu1 }
  0xde   :  { %v4382_v19 = vpop.eup %4381 }
  0xdf   :  { %v210_v20 = vadd.f32 1.0, %v4382_v19  ;;  %v4016_v53 = vpop.f32.mrf.mxu1 }
  0xe1   :  { %4383 = vrcp.f32 %v210_v20 }
  0xee   :  { %v4384_v21 = vpop.eup %4383 }
  0xef   :  { %v214_v24 = vmul.f32 0.0, %v4384_v21 }
 0x14f   :  { %v217_v22 = vpop.permute.xlu0 %216 }
 0x150   :  { %v219_v23 = vmul.f32 %v4384_v21, %v217_v22 }
 0x152   :  { %221 = vrot.lane.b32.xlu0 %v219_v23, %s4503_s4 }
 0x18e   :  { %v727_v19 = vpop.f32.mrf.mxu1 }
 0x190   :  { %v4038_v20 = vpop.f32.mrf.mxu1 }
 0x1c4   :  { %v222_v25 = vpop.permute.xlu0 %221 }
 0x1c5   :  { %v224_v26 = vadd.f32 %v222_v25, %v214_v24 }
 0x1c7   :  { %4385 = vtanh.f32 %v224_v26 }
 0x1d4   :  { %v4386_v28 = vpop.eup %4385 }
 0x1d5   :  { %227 = vrot.lane.b32.xlu1 %v4386_v28, %s4502_s21 }
 0x247   :  { %v228_v29 = vpop.permute.xlu1 %227 }
 0x248   :  { %v230_v30 = vmul.f32 %v4384_v21, %v228_v29 }
 0x24a   :  { %234 = vrot.lane.b32.xlu1 %v230_v30, %s4503_s4 }
 0x2bc   :  { %v235_v33 = vpop.permute.xlu1 %234 }
 0x2bd   :  { %3982 = vmatmul.mubr.msk.f32.vlgmr.msra.gmra.mxu0 %vm52_vm0, %v235_v33 }
 0x2be   :  { %3996 = vmatpush3.msra.mxu0 %v4582_v1  ;;  %4003 = vmatprep.mubr.msk.f32.mxu0 %vm4501_vm1, %v4500_v0 }
 0x2bf   :  { %3997 = vmatprep.subr.mxu0 %v4500_v0 }
 0x2c0   :  { %3998 = vmatpush3.msra.mxu0 %v4592_v3 }
 0x2c1   :  { %3999 = vmatprep.subr.mxu0 %v4500_v0 }
 0x2c2   :  { %4000 = vmatpush3.msra.mxu0 %v4606_v5 }
 0x2c3   :  { %4001 = vmatprep.subr.mxu0 %v4500_v0 }
 0x2c4   :  { %4002 = vmatpush3.msra.mxu0 %v4620_v7 }
 0x2c5   :  { %4017 = vmatprep.subr.mxu0 %v4500_v0 }
 0x37d   :  { %v304_v34 = vpop.f32.mrf.mxu0 }
 0x37e   :  { %v378_v35 = vadd.f32 %v377_v31, %v304_v34 }
 0x37f   :  { %v3983_v36 = vpop.f32.mrf.mxu0 }
 0x380   :  { %v381_v37 = vadd.f32 %v4667_v12, %v378_v35  ;;  %v3673_v36 = vld [vmem:[%s5415_s0 + $0x8] sm:$0x3] }
 0x381   :  { %4059 = vmatmul.mubr.msk.f32.vlgmr.msra.gmra.mxu1 %vm52_vm0, %v3673_v36 }
 0x382   :  { %4387 = vtanh.f32 %v381_v37  ;;  %v3664_v39 = vmul.f32 -1.442695, %v381_v37  ;;  %4073 = vmatpush3.msra.mxu1 %v4587_v2  ;;  %4080 = vmatprep.mubr.msk.f32.mxu1 %vm4501_vm1, %v4500_v0 }
 0x383   :  { %4074 = vmatprep.subr.mxu1 %v4500_v0 }
 0x384   :  { %4389 = vpow2.f32 %v3664_v39  ;;  %4075 = vmatpush3.msra.mxu1 %v4599_v4 }
 0x385   :  { %4076 = vmatprep.subr.mxu1 %v4500_v0 }
 0x386   :  { %4077 = vmatpush3.msra.mxu1 %v4611_v6 }
 0x387   :  { %4078 = vmatprep.subr.mxu1 %v4500_v0 }
 0x388   :  { %4079 = vmatpush3.msra.mxu1 %v4627_v8 }
 0x389   :  { %4094 = vmatprep.subr.mxu1 %v4500_v0 }
 0x38f   :  { %v4388_v38 = vpop.eup %4387 }
 0x390   :  { %391 = vrot.lane.b32.xlu0 %v4388_v38, %s4502_s21 }
 0x391   :  { %v4390_v40 = vpop.eup %4389 }
 0x392   :  { %v385_v41 = vadd.f32 1.0, %v4390_v40 }
 0x394   :  { %4391 = vrcp.f32 %v385_v41 }
 0x3a1   :  { %v4392_v42 = vpop.eup %4391 }
 0x3a2   :  { %v389_v45 = vmul.f32 %v4392_v42, %v224_v26 }
 0x402   :  { %v392_v43 = vpop.permute.xlu0 %391 }
 0x403   :  { %v394_v44 = vmul.f32 %v4392_v42, %v392_v43 }
 0x405   :  { %396 = vrot.lane.b32.xlu1 %v394_v44, %s4503_s4 }
 0x441   :  { %v902_v40 = vpop.f32.mrf.mxu1 }
 0x443   :  { %v4060_v41 = vpop.f32.mrf.mxu1 }
 0x477   :  { %v397_v46 = vpop.permute.xlu1 %396 }
 0x478   :  { %v399_v47 = vadd.f32 %v397_v46, %v389_v45 }
 0x47a   :  { %4393 = vtanh.f32 %v399_v47 }
 0x487   :  { %v4394_v49 = vpop.eup %4393 }
 0x488   :  { %402 = vrot.lane.b32.xlu0 %v4394_v49, %s4502_s21 }
 0x4fa   :  { %v403_v50 = vpop.permute.xlu0 %402 }
 0x4fb   :  { %v405_v51 = vmul.f32 %v4392_v42, %v403_v50 }
 0x4fd   :  { %409 = vrot.lane.b32.xlu1 %v405_v51, %s4503_s4 }
 0x56f   :  { %v410_v54 = vpop.permute.xlu1 %409 }
 0x570   :  { %4004 = vmatmul.mubr.msk.f32.vlgmr.msra.gmra.mxu0 %vm52_vm0, %v410_v54 }
 0x571   :  { %4018 = vmatpush3.msra.mxu0 %v4582_v1  ;;  %4025 = vmatprep.mubr.msk.f32.mxu0 %vm4501_vm1, %v4500_v0 }
 0x572   :  { %4019 = vmatprep.subr.mxu0 %v4500_v0 }
 0x573   :  { %4020 = vmatpush3.msra.mxu0 %v4592_v3 }
 0x574   :  { %4021 = vmatprep.subr.mxu0 %v4500_v0 }
 0x575   :  { %4022 = vmatpush3.msra.mxu0 %v4606_v5 }
 0x576   :  { %4023 = vmatprep.subr.mxu0 %v4500_v0 }
 0x577   :  { %4024 = vmatpush3.msra.mxu0 %v4620_v7 }
 0x578   :  { %4039 = vmatprep.subr.mxu0 %v4500_v0 }
 0x630   :  { %v479_v55 = vpop.f32.mrf.mxu0 }
 0x631   :  { %v553_v56 = vadd.f32 %v552_v52, %v479_v55 }
 0x632   :  { %v4005_v57 = vpop.f32.mrf.mxu0 }
 0x633   :  { %v556_v58 = vadd.f32 %v4667_v12, %v553_v56  ;;  %v3677_v57 = vld [vmem:[%s5415_s0 + $0xa] sm:$0x3] }
 0x634   :  { %4081 = vmatmul.mubr.msk.f32.vlgmr.msra.gmra.mxu1 %vm52_vm0, %v3677_v57 }
 0x635   :  { %4395 = vtanh.f32 %v556_v58  ;;  %v3668_v60 = vmul.f32 -1.442695, %v556_v58  ;;  %4095 = vmatpush3.msra.mxu1 %v4587_v2  ;;  %4102 = vmatprep.mubr.msk.f32.mxu1 %vm4501_vm1, %v4500_v0 }
 0x636   :  { %4096 = vmatprep.subr.mxu1 %v4500_v0 }
 0x637   :  { %4397 = vpow2.f32 %v3668_v60  ;;  %4097 = vmatpush3.msra.mxu1 %v4599_v4 }
 0x638   :  { %4098 = vmatprep.subr.mxu1 %v4500_v0 }
 0x639   :  { %4099 = vmatpush3.msra.mxu1 %v4611_v6 }
 0x63a   :  { %4100 = vmatprep.subr.mxu1 %v4500_v0 }
 0x63b   :  { %4101 = vmatpush3.msra.mxu1 %v4627_v8 }
 0x63c   :  { %4116 = vmatprep.subr.mxu1 %v4500_v0 }
 0x642   :  { %v4396_v59 = vpop.eup %4395 }
 0x643   :  { %566 = vrot.lane.b32.xlu0 %v4396_v59, %s4502_s21 }
 0x644   :  { %v4398_v61 = vpop.eup %4397 }
 0x645   :  { %v560_v62 = vadd.f32 1.0, %v4398_v61 }
 0x647   :  { %4399 = vrcp.f32 %v560_v62 }
 0x654   :  { %v4400_v63 = vpop.eup %4399 }
 0x655   :  { %v564_v11 = vmul.f32 %v4400_v63, %v399_v47 }
 0x6b5   :  { %v567_v9 = vpop.permute.xlu0 %566 }
 0x6b6   :  { %v569_v10 = vmul.f32 %v4400_v63, %v567_v9 }
 0x6b8   :  { %571 = vrot.lane.b32.xlu1 %v569_v10, %s4503_s4 }
 0x6f4   :  { %v1077_v61 = vpop.f32.mrf.mxu1 }
 0x6f6   :  { %v4082_v62 = vpop.f32.mrf.mxu1 }
 0x6f7   :  { %v4901_v62 = vld [vmem:[%s5418_s6 + $0x8] sm:$0xff] }
 0x72a   :  { %v572_v13 = vpop.permute.xlu1 %571 }
 0x72b   :  { %v574_v14 = vadd.f32 %v572_v13, %v564_v11 }
 0x72d   :  { %4401 = vtanh.f32 %v574_v14 }
 0x73a   :  { %v4402_v16 = vpop.eup %4401 }
 0x73b   :  { %577 = vrot.lane.b32.xlu0 %v4402_v16, %s4502_s21 }
 0x7ad   :  { %v578_v17 = vpop.permute.xlu0 %577 }
 0x7ae   :  { %v580_v18 = vmul.f32 %v4400_v63, %v578_v17 }
 0x7b0   :  { %584 = vrot.lane.b32.xlu1 %v580_v18, %s4503_s4 }
 0x822   :  { %v585_v21 = vpop.permute.xlu1 %584 }
 0x823   :  { %4026 = vmatmul.mubr.msk.f32.vlgmr.msra.gmra.mxu0 %vm52_vm0, %v585_v21 }
 0x824   :  { %4040 = vmatpush3.msra.mxu0 %v4582_v1  ;;  %4047 = vmatprep.mubr.msk.f32.mxu0 %vm4501_vm1, %v4500_v0 }
 0x825   :  { %4041 = vmatprep.subr.mxu0 %v4500_v0 }
 0x826   :  { %4042 = vmatpush3.msra.mxu0 %v4592_v3 }
 0x827   :  { %4043 = vmatprep.subr.mxu0 %v4500_v0 }
 0x828   :  { %4044 = vmatpush3.msra.mxu0 %v4606_v5 }
 0x829   :  { %4045 = vmatprep.subr.mxu0 %v4500_v0 }
 0x82a   :  { %4046 = vmatpush3.msra.mxu0 %v4620_v7 }
 0x82b   :  { %4061 = vmatprep.subr.mxu0 %v4500_v0 }
 0x8e3   :  { %v654_v22 = vpop.f32.mrf.mxu0 }
 0x8e4   :  { %v728_v23 = vadd.f32 %v727_v19, %v654_v22 }
 0x8e5   :  { %v4027_v24 = vpop.f32.mrf.mxu0 }
 0x8e6   :  { %v731_v25 = vadd.f32 %v4667_v12, %v728_v23  ;;  %v3681_v24 = vld [vmem:[%s5415_s0 + $0xc] sm:$0x3] }
 0x8e7   :  { %4103 = vmatmul.mubr.msk.f32.vlgmr.msra.gmra.mxu1 %vm52_vm0, %v3681_v24 }
 0x8e8   :  { %4403 = vtanh.f32 %v731_v25  ;;  %v3672_v27 = vmul.f32 -1.442695, %v731_v25  ;;  %4117 = vmatpush3.msra.mxu1 %v4587_v2  ;;  %4124 = vmatprep.mubr.msk.f32.mxu1 %vm4501_vm1, %v4500_v0 }
 0x8e9   :  { %4118 = vmatprep.subr.mxu1 %v4500_v0 }
 0x8ea   :  { %4405 = vpow2.f32 %v3672_v27  ;;  %4119 = vmatpush3.msra.mxu1 %v4599_v4 }
 0x8eb   :  { %4120 = vmatprep.subr.mxu1 %v4500_v0 }
 0x8ec   :  { %4121 = vmatpush3.msra.mxu1 %v4611_v6 }
 0x8ed   :  { %4122 = vmatprep.subr.mxu1 %v4500_v0 }
 0x8ee   :  { %4123 = vmatpush3.msra.mxu1 %v4627_v8 }
 0x8ef   :  { %4138 = vmatprep.subr.mxu1 %v4500_v0 }
 0x8f5   :  { %v4404_v26 = vpop.eup %4403 }
 0x8f6   :  { %741 = vrot.lane.b32.xlu0 %v4404_v26, %s4502_s21 }
 0x8f7   :  { %v4406_v28 = vpop.eup %4405 }
 0x8f8   :  { %v735_v29 = vadd.f32 1.0, %v4406_v28 }
 0x8fa   :  { %4407 = vrcp.f32 %v735_v29 }
 0x907   :  { %v4408_v30 = vpop.eup %4407 }
 0x908   :  { %v739_v33 = vmul.f32 %v4408_v30, %v574_v14 }
 0x968   :  { %v742_v31 = vpop.permute.xlu0 %741 }
 0x969   :  { %v744_v32 = vmul.f32 %v4408_v30, %v742_v31 }
 0x96b   :  { %746 = vrot.lane.b32.xlu1 %v744_v32, %s4503_s4 }
 0x9a7   :  { %v1252_v27 = vpop.f32.mrf.mxu1 }
 0x9a9   :  { %v4104_v28 = vpop.f32.mrf.mxu1 }
 0x9dd   :  { %v747_v34 = vpop.permute.xlu1 %746 }
 0x9de   :  { %v749_v35 = vadd.f32 %v747_v34, %v739_v33 }
 0x9e0   :  { %4409 = vtanh.f32 %v749_v35 }
 0x9ed   :  { %v4410_v37 = vpop.eup %4409 }
 0x9ee   :  { %752 = vrot.lane.b32.xlu0 %v4410_v37, %s4502_s21  ;;  %v3685_v37 = vld [vmem:[%s5415_s0 + $0xe] sm:$0x3] }
 0x9ef   :  { %4125 = vmatmul.mubr.msk.f32.vlgmr.msra.gmra.mxu1 %vm52_vm0, %v3685_v37 }
 0x9f0   :  { %4146 = vmatprep.mubr.msk.f32.mxu1 %vm4501_vm1, %v4500_v0 }
 0xa60   :  { %v753_v38 = vpop.permute.xlu0 %752 }
 0xa61   :  { %v755_v39 = vmul.f32 %v4408_v30, %v753_v38 }
 0xa63   :  { %759 = vrot.lane.b32.xlu1 %v755_v39, %s4503_s4 }
 0xaaf   :  { %v1427_v41 = vpop.f32.mrf.mxu1 }
 0xad5   :  { %v760_v42 = vpop.permute.xlu1 %759 }
 0xad6   :  { %4048 = vmatmul.mubr.msk.f32.vlgmr.msra.gmra.mxu0 %vm52_vm0, %v760_v42  ;;  %v4126_v42 = vpop.f32.mrf.mxu1 }
 0xad7   :  { %4062 = vmatpush3.msra.mxu0 %v4582_v1  ;;  %4069 = vmatprep.mubr.msk.f32.mxu0 %vm4501_vm1, %v4500_v0 }
 0xad8   :  { %4063 = vmatprep.subr.mxu0 %v4500_v0 }
 0xad9   :  { %4064 = vmatpush3.msra.mxu0 %v4592_v3 }
 0xada   :  { %4065 = vmatprep.subr.mxu0 %v4500_v0 }
 0xadb   :  { %4066 = vmatpush3.msra.mxu0 %v4606_v5 }
 0xadc   :  { %4067 = vmatprep.subr.mxu0 %v4500_v0 }
 0xadd   :  { %4068 = vmatpush3.msra.mxu0 %v4620_v7 }
 0xade   :  { %4083 = vmatprep.subr.mxu0 %v4500_v0 }
 0xb96   :  { %v829_v43 = vpop.f32.mrf.mxu0 }
 0xb97   :  { %v903_v44 = vadd.f32 %v902_v40, %v829_v43 }
 0xb98   :  { %v4049_v45 = vpop.f32.mrf.mxu0 }
 0xb99   :  { %v906_v46 = vadd.f32 %v4667_v12, %v903_v44 }
 0xb9b   :  { %4411 = vtanh.f32 %v906_v46  ;;  %v3676_v48 = vmul.f32 -1.442695, %v906_v46 }
 0xb9d   :  { %4413 = vpow2.f32 %v3676_v48 }
 0xba8   :  { %v4412_v47 = vpop.eup %4411 }
 0xba9   :  { %916 = vrot.lane.b32.xlu0 %v4412_v47, %s4502_s21 }
 0xbaa   :  { %v4414_v49 = vpop.eup %4413 }
 0xbab   :  { %v910_v50 = vadd.f32 1.0, %v4414_v49 }
 0xbad   :  { %4415 = vrcp.f32 %v910_v50 }
 0xbba   :  { %v4416_v51 = vpop.eup %4415 }
 0xbbb   :  { %v914_v54 = vmul.f32 %v4416_v51, %v749_v35 }
 0xc1b   :  { %v917_v52 = vpop.permute.xlu0 %916 }
 0xc1c   :  { %v919_v53 = vmul.f32 %v4416_v51, %v917_v52 }
 0xc1e   :  { %921 = vrot.lane.b32.xlu1 %v919_v53, %s4503_s4 }
 0xc90   :  { %v922_v55 = vpop.permute.xlu1 %921 }
 0xc91   :  { %v924_v56 = vadd.f32 %v922_v55, %v914_v54 }
 0xc93   :  { %4417 = vtanh.f32 %v924_v56 }
 0xca0   :  { %v4418_v58 = vpop.eup %4417 }
 0xca1   :  { %927 = vrot.lane.b32.xlu0 %v4418_v58, %s4502_s21  ;;  %v4877_v58 = vld [vmem:[%s5418_s6 + $0x18] sm:$0xff] }
 0xd13   :  { %v928_v59 = vpop.permute.xlu0 %927 }
 0xd14   :  { %v930_v60 = vmul.f32 %v4416_v51, %v928_v59  ;;  %v4882_v59 = vld [vmem:[%s5417_s5 + $0x10] sm:$0xff] }
 0xd16   :  { %934 = vrot.lane.b32.xlu1 %v930_v60, %s4503_s4  ;;  %v4889_v60 = vld [vmem:[%s5418_s6 + $0x10] sm:$0xff] }
 0xd88   :  { %v935_v63 = vpop.permute.xlu1 %934 }
 0xd89   :  { %4070 = vmatmul.mubr.msk.f32.vlgmr.msra.gmra.mxu0 %vm52_vm0, %v935_v63  ;;  %v4910_v63 = vld [vmem:[%s5417_s5] sm:$0xff] }
 0xd8a   :  { %4084 = vmatpush3.msra.mxu0 %v4582_v1  ;;  %4091 = vmatprep.mubr.msk.f32.mxu0 %vm4501_vm1, %v4500_v0 }
 0xd8b   :  { %4085 = vmatprep.subr.mxu0 %v4500_v0 }
 0xd8c   :  { %4086 = vmatpush3.msra.mxu0 %v4592_v3 }
 0xd8d   :  { %4087 = vmatprep.subr.mxu0 %v4500_v0 }
 0xd8e   :  { %4088 = vmatpush3.msra.mxu0 %v4606_v5 }
 0xd8f   :  { %4089 = vmatprep.subr.mxu0 %v4500_v0 }
 0xd90   :  { %4090 = vmatpush3.msra.mxu0 %v4620_v7 }
 0xd91   :  { %4105 = vmatprep.subr.mxu0 %v4500_v0 }
 0xe49   :  { %v1004_v9 = vpop.f32.mrf.mxu0 }
 0xe4a   :  { %v1078_v10 = vadd.f32 %v1077_v61, %v1004_v9  ;;  %v4896_v61 = vld [vmem:[%s5417_s5 + $0x8] sm:$0xff]  ;;  %v4915_v9 = vld [vmem:[%s5418_s6] sm:$0xff] }
 0xe4b   :  { %v4071_v11 = vpop.f32.mrf.mxu0 }
 0xe4c   :  { %v1081_v13 = vadd.f32 %v4667_v12, %v1078_v10  ;;  %v1493_v10 = vld [vmem:[%s5415_s0] sm:$0x3] }
 0xe4e   :  { %4419 = vtanh.f32 %v1081_v13  ;;  %v3680_v15 = vmul.f32 -1.442695, %v1081_v13 }
 0xe50   :  { %4421 = vpow2.f32 %v3680_v15 }
 0xe5b   :  { %v4420_v14 = vpop.eup %4419 }
 0xe5c   :  { %1091 = vrot.lane.b32.xlu0 %v4420_v14, %s4502_s21 }
 0xe5d   :  { %v4422_v16 = vpop.eup %4421 }
 0xe5e   :  { %v1085_v17 = vadd.f32 1.0, %v4422_v16 }
 0xe60   :  { %4423 = vrcp.f32 %v1085_v17 }
 0xe6d   :  { %v4424_v18 = vpop.eup %4423 }
 0xe6e   :  { %v1089_v21 = vmul.f32 %v4424_v18, %v924_v56 }
 0xece   :  { %v1092_v19 = vpop.permute.xlu0 %1091 }
 0xecf   :  { %v1094_v20 = vmul.f32 %v4424_v18, %v1092_v19  ;;  %v4947_v19 = vld [vmem:[%s5419_s7] ss:$0 sm:$0xff] }
 0xed1   :  { %1096 = vrot.lane.b32.xlu1 %v1094_v20, %s4503_s4 }
 0xf43   :  { %v1097_v22 = vpop.permute.xlu1 %1096 }
 0xf44   :  { %v1099_v23 = vadd.f32 %v1097_v22, %v1089_v21 }
 0xf46   :  { %4425 = vtanh.f32 %v1099_v23 }
 0xf53   :  { %v4426_v25 = vpop.eup %4425 }
 0xf54   :  { %1102 = vrot.lane.b32.xlu0 %v4426_v25, %s4502_s21 }
 0xfc6   :  { %v1103_v2 = vpop.permute.xlu0 %1102 }
 0xfc7   :  { %v1105_v26 = vmul.f32 %v4424_v18, %v1103_v2 }
 0xfc9   :  { %1109 = vrot.lane.b32.xlu1 %v1105_v26, %s4503_s4 }
0x103b   :  { %v1110_v4 = vpop.permute.xlu1 %1109 }
0x103c   :  { %4092 = vmatmul.mubr.msk.f32.vlgmr.msra.gmra.mxu0 %vm52_vm0, %v1110_v4 }
0x103d   :  { %4106 = vmatpush3.msra.mxu0 %v4582_v1  ;;  %4113 = vmatprep.mubr.msk.f32.mxu0 %vm4501_vm1, %v4500_v0 }
0x103e   :  { %4107 = vmatprep.subr.mxu0 %v4500_v0 }
0x103f   :  { %4108 = vmatpush3.msra.mxu0 %v4592_v3 }
0x1040   :  { %4109 = vmatprep.subr.mxu0 %v4500_v0 }
0x1041   :  { %4110 = vmatpush3.msra.mxu0 %v4606_v5 }
0x1042   :  { %4111 = vmatprep.subr.mxu0 %v4500_v0 }
0x1043   :  { %4112 = vmatpush3.msra.mxu0 %v4620_v7 }
0x1044   :  { %4127 = vmatprep.subr.mxu0 %v4500_v0 }
0x10fc   :  { %v1179_v6 = vpop.f32.mrf.mxu0 }
0x10fd   :  { %v1253_v8 = vadd.f32 %v1252_v27, %v1179_v6 }
0x10fe   :  { %v4093_v1 = vpop.f32.mrf.mxu0 }
0x10ff   :  { %v1256_v29 = vadd.f32 %v4667_v12, %v1253_v8  ;;  %v4959_v1 = vld [vmem:[%s5420_s8 + $0x18] sm:$0xff] }
0x1101   :  { %4427 = vtanh.f32 %v1256_v29  ;;  %v3684_v3 = vmul.f32 -1.442695, %v1256_v29  ;;  %v4964_v29 = vld [vmem:[%s5420_s8 + $0x10] sm:$0xff] }
0x1103   :  { %4429 = vpow2.f32 %v3684_v3  ;;  %v4978_v3 = vld [vmem:[%s5420_s8] sm:$0xff] }
0x110e   :  { %v4428_v30 = vpop.eup %4427 }
0x110f   :  { %1266 = vrot.lane.b32.xlu0 %v4428_v30, %s4502_s21  ;;  %v4971_v30 = vld [vmem:[%s5420_s8 + $0x8] sm:$0xff] }
0x1110   :  { %v4430_v31 = vpop.eup %4429 }
0x1111   :  { %v1260_v32 = vadd.f32 1.0, %v4430_v31 }
0x1113   :  { %4431 = vrcp.f32 %v1260_v32 }
0x1120   :  { %v4432_v5 = vpop.eup %4431 }
0x1121   :  { %v1264_v7 = vmul.f32 %v4432_v5, %v1099_v23 }
0x1181   :  { %v1267_v33 = vpop.permute.xlu0 %1266 }
0x1182   :  { %v1269_v34 = vmul.f32 %v4432_v5, %v1267_v33 }
0x1184   :  { %1271 = vrot.lane.b32.xlu1 %v1269_v34, %s4503_s4  ;;  %v3700_v34 = vld [vmem:[%s5415_s0 + $0x2] sm:$0x3] }
0x11f6   :  { %v1272_v35 = vpop.permute.xlu1 %1271 }
0x11f7   :  { %v1274_v36 = vadd.f32 %v1272_v35, %v1264_v7 }
0x11f9   :  { %4433 = vtanh.f32 %v1274_v36 }
0x1206   :  { %v4434_v38 = vpop.eup %4433 }
0x1207   :  { %1277 = vrot.lane.b32.xlu0 %v4434_v38, %s4502_s21 }
0x1279   :  { %v1278_v39 = vpop.permute.xlu0 %1277 }
0x127a   :  { %v1280_v40 = vmul.f32 %v4432_v5, %v1278_v39 }
0x127c   :  { %1284 = vrot.lane.b32.xlu1 %v1280_v40, %s4503_s4 }
0x12ee   :  { %v1285_v43 = vpop.permute.xlu1 %1284 }
0x12ef   :  { %4114 = vmatmul.mubr.msk.f32.vlgmr.msra.gmra.mxu0 %vm52_vm0, %v1285_v43 }
0x12f0   :  { %4135 = vmatprep.mubr.msk.f32.mxu0 %vm4501_vm1, %v4500_v0  ;;  %4128 = vmatpush3.msra.mxu0 %v4877_v58 }
0x12f1   :  { %4129 = vmatprep.subr.mxu0 %v4500_v0 }
0x12f2   :  { %4130 = vmatpush3.msra.mxu0 %v4889_v60 }
0x12f3   :  { %4131 = vmatprep.subr.mxu0 %v4500_v0 }
0x12f4   :  { %4132 = vmatpush3.msra.mxu0 %v4901_v62 }
0x12f5   :  { %4133 = vmatprep.subr.mxu0 %v4500_v0 }
0x12f6   :  { %4134 = vmatpush3.msra.mxu0 %v4915_v9 }
0x12f7   :  { %4149 = vmatprep.subr.mxu0 %v4500_v0 }
0x13af   :  { %v1354_v44 = vpop.f32.mrf.mxu0 }
0x13b0   :  { %v1428_v45 = vadd.f32 %v1427_v41, %v1354_v44 }
0x13b1   :  { %v4115_v46 = vpop.f32.mrf.mxu0 }
0x13b2   :  { %v1431_v47 = vadd.f32 %v4667_v12, %v1428_v45  ;;  %v4872_v12 = vld [vmem:[%s5417_s5 + $0x18] sm:$0xff] }
0x13b3   :  { %4139 = vmatpush3.msra.mxu1 %v4872_v12 }
0x13b4   :  { %4435 = vtanh.f32 %v1431_v47  ;;  %v3688_v49 = vmul.f32 -1.442695, %v1431_v47  ;;  %4140 = vmatprep.subr.mxu1 %v4500_v0 }
0x13b5   :  { %4141 = vmatpush3.msra.mxu1 %v4882_v59 }
0x13b6   :  { %4437 = vpow2.f32 %v3688_v49  ;;  %4142 = vmatprep.subr.mxu1 %v4500_v0 }
0x13b7   :  { %4143 = vmatpush3.msra.mxu1 %v4896_v61 }
0x13b8   :  { %4144 = vmatprep.subr.mxu1 %v4500_v0 }
0x13b9   :  { %4145 = vmatpush3.msra.mxu1 %v4910_v63 }
0x13ba   :  { %4147 = vmatmul.mubr.msk.f32.vlgmr.msra.gmra.mxu1 %vm52_vm0, %v1493_v10  ;;  %4160 = vmatprep.subr.mxu1 %v4500_v0 }
0x13bb   :  { %4168 = vmatprep.mubr.msk.f32.mxu1 %vm4501_vm1, %v4500_v0  ;;  %4161 = vmatpush3.msra.mxu1 %v4877_v58 }
0x13bc   :  { %4162 = vmatprep.subr.mxu1 %v4500_v0 }
0x13bd   :  { %4163 = vmatpush3.msra.mxu1 %v4889_v60 }
0x13be   :  { %4164 = vmatprep.subr.mxu1 %v4500_v0 }
0x13bf   :  { %4165 = vmatpush3.msra.mxu1 %v4901_v62 }
0x13c0   :  { %4166 = vmatprep.subr.mxu1 %v4500_v0 }
0x13c1   :  { %v4436_v48 = vpop.eup %4435  ;;  %4167 = vmatpush3.msra.mxu1 %v4915_v9 }
0x13c2   :  { %1441 = vrot.lane.b32.xlu0 %v4436_v48, %s4502_s21  ;;  %4182 = vmatprep.subr.mxu1 %v4500_v0 }
0x13c3   :  { %v4438_v50 = vpop.eup %4437 }
0x13c4   :  { %v1435_v51 = vadd.f32 1.0, %v4438_v50 }
0x13c6   :  { %4439 = vrcp.f32 %v1435_v51 }
0x13d3   :  { %v4440_v52 = vpop.eup %4439 }
0x13d4   :  { %v1439_v55 = vmul.f32 %v4440_v52, %v1274_v36 }
0x1434   :  { %v1442_v53 = vpop.permute.xlu0 %1441 }
0x1435   :  { %v1444_v54 = vmul.f32 %v4440_v52, %v1442_v53 }
0x1437   :  { %1446 = vrot.lane.b32.xlu1 %v1444_v54, %s4503_s4 }
0x147a   :  { %v1646_v15 = vpop.f32.mrf.mxu1 }
0x147c   :  { %v4148_v16 = vpop.f32.mrf.mxu1 }
0x14a9   :  { %v1447_v56 = vpop.permute.xlu1 %1446 }
0x14aa   :  { %v4866_v57 = vadd.f32 %v1447_v56, %v1439_v55  ;;  %v3711_v56 = vld [vmem:[%s5415_s0 + $0x4] sm:$0x3] }
0x14ac   :  { %4441 = vtanh.f32 %v4866_v57 }
0x14b9   :  { %v4442_v11 = vpop.eup %4441 }
0x14ba   :  { %1452 = vrot.lane.b32.xlu0 %v4442_v11, %s4502_s21 }
0x152c   :  { %v1453_v13 = vpop.permute.xlu0 %1452 }
0x152d   :  { %v1455_v14 = vmul.f32 %v4440_v52, %v1453_v13 }
0x152f   :  { %1503 = vrot.lane.b32.xlu1 %v1455_v14, %s4503_s4 }
0x15a1   :  { %v1504_v17 = vpop.permute.xlu1 %1503 }
0x15a2   :  { %4136 = vmatmul.mubr.msk.f32.vlgmr.msra.gmra.mxu0 %vm52_vm0, %v1504_v17 }
0x15a3   :  { %4157 = vmatprep.mubr.msk.f32.mxu0 %vm4501_vm1, %v4500_v0  ;;  %4150 = vmatpush3.msra.mxu0 %v4959_v1 }
0x15a4   :  { %4151 = vmatprep.subr.mxu0 %v4500_v0 }
0x15a5   :  { %4152 = vmatpush3.msra.mxu0 %v4964_v29 }
0x15a6   :  { %4153 = vmatprep.subr.mxu0 %v4500_v0 }
0x15a7   :  { %4154 = vmatpush3.msra.mxu0 %v4971_v30 }
0x15a8   :  { %4155 = vmatprep.subr.mxu0 %v4500_v0 }
0x15a9   :  { %4156 = vmatpush3.msra.mxu0 %v4978_v3 }
0x15aa   :  { %4171 = vmatprep.subr.mxu0 %v4500_v0 }
0x1662   :  { %v1573_v18 = vpop.f32.mrf.mxu0 }
0x1663   :  { %v1647_v20 = vadd.f32 %v1646_v15, %v1573_v18 }
0x1664   :  { %v4137_v21 = vpop.f32.mrf.mxu0 }
0x1665   :  { %v1657_v22 = vadd.f32 %v4947_v19, %v1647_v20 }
0x1667   :  { %4443 = vtanh.f32 %v1657_v22  ;;  %v3693_v24 = vmul.f32 -1.442695, %v1657_v22 }
0x1669   :  { %4445 = vpow2.f32 %v3693_v24 }
0x1674   :  { %v4444_v23 = vpop.eup %4443 }
0x1675   :  { %1667 = vrot.lane.b32.xlu0 %v4444_v23, %s4502_s21 }
0x1676   :  { %v4446_v25 = vpop.eup %4445 }
0x1677   :  { %v1661_v2 = vadd.f32 1.0, %v4446_v25 }
0x1679   :  { %4447 = vrcp.f32 %v1661_v2 }
0x1686   :  { %v4448_v26 = vpop.eup %4447 }
0x1687   :  { %v1665_v4 = vmul.f32 %v4448_v26, %v4866_v57 }
0x16e7   :  { %v1668_v27 = vpop.permute.xlu0 %1667 }
0x16e8   :  { %v1670_v28 = vmul.f32 %v4448_v26, %v1668_v27 }
0x16ea   :  { %1672 = vrot.lane.b32.xlu1 %v1670_v28, %s4503_s4 }
0x175c   :  { %v1673_v6 = vpop.permute.xlu1 %1672 }
0x175d   :  { %v4953_v8 = vadd.f32 %v1673_v6, %v1665_v4 }
0x175f   :  { %4449 = vtanh.f32 %v4953_v8 }
0x176c   :  { %v4450_v31 = vpop.eup %4449 }
0x176d   :  { %1678 = vrot.lane.b32.xlu0 %v4450_v31, %s4502_s21  ;;  %v3722_v31 = vld [vmem:[%s5415_s0 + $0x6] sm:$0x3] }
0x17df   :  { %v1679_v32 = vpop.permute.xlu0 %1678 }
0x17e0   :  { %v1681_v5 = vmul.f32 %v4448_v26, %v1679_v32 }
0x17e2   :  { %1694 = vrot.lane.b32.xlu1 %v1681_v5, %s4503_s4 }
0x1854   :  { %v1695_v33 = vpop.permute.xlu1 %1694 }
0x1855   :  { %4158 = vmatmul.mubr.msk.f32.vlgmr.msra.gmra.mxu0 %vm52_vm0, %v1695_v33  ;;  %4169 = vmatmul.mubr.msk.f32.vlgmr.msra.gmra.mxu1 %vm52_vm0, %v1695_v33 }
0x1856   :  { %4172 = vmatpush3.msra.mxu0 %v4872_v12  ;;  %4179 = vmatprep.mubr.msk.f32.mxu0 %vm4501_vm1, %v4500_v0 }
0x1857   :  { %4173 = vmatprep.subr.mxu0 %v4500_v0  ;;  %4183 = vmatpush3.msra.mxu1 %v4959_v1 }
0x1858   :  { %4174 = vmatpush3.msra.mxu0 %v4882_v59  ;;  %4184 = vmatprep.subr.mxu1 %v4500_v0 }
0x1859   :  { %4175 = vmatprep.subr.mxu0 %v4500_v0  ;;  %4185 = vmatpush3.msra.mxu1 %v4964_v29 }
0x185a   :  { %4176 = vmatpush3.msra.mxu0 %v4896_v61  ;;  %4186 = vmatprep.subr.mxu1 %v4500_v0 }
0x185b   :  { %4177 = vmatprep.subr.mxu0 %v4500_v0  ;;  %4187 = vmatpush3.msra.mxu1 %v4971_v30 }
0x185c   :  { %4178 = vmatpush3.msra.mxu0 %v4910_v63  ;;  %4188 = vmatprep.subr.mxu1 %v4500_v0 }
0x185d   :  { %4180 = vmatmul.mubr.msk.f32.vlgmr.msra.gmra.mxu0 %vm52_vm0, %v3700_v34  ;;  %4193 = vmatprep.subr.mxu0 %v4500_v0 }
0x185e   :  { %4194 = vmatpush3.msra.mxu0 %v4877_v58  ;;  %4189 = vmatpush3.msra.mxu1 %v4978_v3 }
0x185f   :  { %4195 = vmatprep.subr.mxu0 %v4500_v0  ;;  %4190 = vmatprep.mubr.msk.f32.mxu1 %vm4501_vm1, %v4500_v0 }
0x1860   :  { %4196 = vmatpush3.msra.mxu0 %v4889_v60  ;;  %4201 = vmatprep.mubr.msk.f32.mxu0 %vm4501_vm1, %v4500_v0 }
0x1861   :  { %4197 = vmatprep.subr.mxu0 %v4500_v0  ;;  %4204 = vmatprep.subr.mxu1 %v4500_v0 }
0x1862   :  { %4198 = vmatpush3.msra.mxu0 %v4901_v62 }
0x1863   :  { %4199 = vmatprep.subr.mxu0 %v4500_v0 }
0x1864   :  { %4200 = vmatpush3.msra.mxu0 %v4915_v9 }
0x1865   :  { %4215 = vmatprep.subr.mxu0 %v4500_v0 }
0x1915   :  { %v5022_v7 = vpop.f32.mrf.mxu0  ;;  %v1881_v35 = vpop.f32.mrf.mxu1 }
0x1917   :  { %v4159_v36 = vpop.f32.mrf.mxu0  ;;  %v4170_v37 = vpop.f32.mrf.mxu1 }
0x191d   :  { %v1954_v38 = vpop.f32.mrf.mxu0 }
0x191e   :  { %v1955_v39 = vadd.f32 %v1954_v38, %v1881_v35 }
0x191f   :  { %v4181_v40 = vpop.f32.mrf.mxu0 }
0x1920   :  { %v1965_v41 = vadd.f32 %v4947_v19, %v1955_v39 }
0x1922   :  { %4451 = vtanh.f32 %v1965_v41  ;;  %v3704_v43 = vmul.f32 -1.442695, %v1965_v41 }
0x1924   :  { %4453 = vpow2.f32 %v3704_v43 }
0x192f   :  { %v4452_v42 = vpop.eup %4451 }
0x1930   :  { %1975 = vrot.lane.b32.xlu0 %v4452_v42, %s4502_s21 }
0x1931   :  { %v4454_v44 = vpop.eup %4453 }
0x1932   :  { %v1969_v45 = vadd.f32 1.0, %v4454_v44 }
0x1934   :  { %4455 = vrcp.f32 %v1969_v45 }
0x1941   :  { %v4456_v46 = vpop.eup %4455 }
0x1942   :  { %v1973_v49 = vmul.f32 %v4456_v46, %v4953_v8 }
0x19a2   :  { %v1976_v47 = vpop.permute.xlu0 %1975 }
0x19a3   :  { %v1978_v48 = vmul.f32 %v4456_v46, %v1976_v47 }
0x19a5   :  { %1980 = vrot.lane.b32.xlu1 %v1978_v48, %s4503_s4 }
0x1a17   :  { %v1981_v50 = vpop.permute.xlu1 %1980 }
0x1a18   :  { %v1983_v51 = vadd.f32 %v1981_v50, %v1973_v49 }
0x1a1a   :  { %4457 = vtanh.f32 %v1983_v51 }
0x1a27   :  { %v4458_v52 = vpop.eup %4457 }
0x1a28   :  { %1986 = vrot.lane.b32.xlu0 %v4458_v52, %s4502_s21 }
0x1a9a   :  { %v1987_v53 = vpop.permute.xlu0 %1986 }
0x1a9b   :  { %v1989_v54 = vmul.f32 %v4456_v46, %v1987_v53  ;;  %v3733_v53 = vld [vmem:[%s5415_s0 + $0x8] sm:$0x3] }
0x1a9d   :  { %2002 = vrot.lane.b32.xlu1 %v1989_v54, %s4503_s4 }
0x1b0f   :  { %v2003_v55 = vpop.permute.xlu1 %2002 }
0x1b10   :  { %4191 = vmatmul.mubr.msk.f32.vlgmr.msra.gmra.mxu1 %vm52_vm0, %v2003_v55  ;;  %4202 = vmatmul.mubr.msk.f32.vlgmr.msra.gmra.mxu0 %vm52_vm0, %v2003_v55 }
0x1b11   :  { %4205 = vmatpush3.msra.mxu1 %v4872_v12  ;;  %4212 = vmatprep.mubr.msk.f32.mxu1 %vm4501_vm1, %v4500_v0 }
0x1b12   :  { %4206 = vmatprep.subr.mxu1 %v4500_v0  ;;  %4216 = vmatpush3.msra.mxu0 %v4959_v1 }
0x1b13   :  { %4207 = vmatpush3.msra.mxu1 %v4882_v59  ;;  %4217 = vmatprep.subr.mxu0 %v4500_v0 }
0x1b14   :  { %4208 = vmatprep.subr.mxu1 %v4500_v0  ;;  %4218 = vmatpush3.msra.mxu0 %v4964_v29 }
0x1b15   :  { %4209 = vmatpush3.msra.mxu1 %v4896_v61  ;;  %4219 = vmatprep.subr.mxu0 %v4500_v0 }
0x1b16   :  { %4210 = vmatprep.subr.mxu1 %v4500_v0  ;;  %4220 = vmatpush3.msra.mxu0 %v4971_v30 }
0x1b17   :  { %4211 = vmatpush3.msra.mxu1 %v4910_v63  ;;  %4221 = vmatprep.subr.mxu0 %v4500_v0 }
0x1b18   :  { %4213 = vmatmul.mubr.msk.f32.vlgmr.msra.gmra.mxu1 %vm52_vm0, %v3711_v56  ;;  %4226 = vmatprep.subr.mxu1 %v4500_v0 }
0x1b19   :  { %4227 = vmatpush3.msra.mxu1 %v4877_v58  ;;  %4222 = vmatpush3.msra.mxu0 %v4978_v3 }
0x1b1a   :  { %4228 = vmatprep.subr.mxu1 %v4500_v0  ;;  %4223 = vmatprep.mubr.msk.f32.mxu0 %vm4501_vm1, %v4500_v0 }
0x1b1b   :  { %4229 = vmatpush3.msra.mxu1 %v4889_v60  ;;  %4234 = vmatprep.mubr.msk.f32.mxu1 %vm4501_vm1, %v4500_v0 }
0x1b1c   :  { %4230 = vmatprep.subr.mxu1 %v4500_v0  ;;  %4237 = vmatprep.subr.mxu0 %v4500_v0 }
0x1b1d   :  { %4231 = vmatpush3.msra.mxu1 %v4901_v62 }
0x1b1e   :  { %4232 = vmatprep.subr.mxu1 %v4500_v0 }
0x1b1f   :  { %4233 = vmatpush3.msra.mxu1 %v4915_v9 }
0x1b20   :  { %4248 = vmatprep.subr.mxu1 %v4500_v0 }
0x1bd0   :  { %v5066_v57 = vpop.f32.mrf.mxu1  ;;  %v2189_v10 = vpop.f32.mrf.mxu0 }
0x1bd2   :  { %v4192_v11 = vpop.f32.mrf.mxu1  ;;  %v4203_v13 = vpop.f32.mrf.mxu0 }
0x1bd8   :  { %v2262_v14 = vpop.f32.mrf.mxu1 }
0x1bd9   :  { %v2263_v15 = vadd.f32 %v2262_v14, %v2189_v10 }
0x1bda   :  { %v4214_v16 = vpop.f32.mrf.mxu1 }
0x1bdb   :  { %v2273_v17 = vadd.f32 %v4947_v19, %v2263_v15 }
0x1bdd   :  { %4459 = vtanh.f32 %v2273_v17  ;;  %v3715_v20 = vmul.f32 -1.442695, %v2273_v17 }
0x1bdf   :  { %4461 = vpow2.f32 %v3715_v20 }
0x1bea   :  { %v4460_v18 = vpop.eup %4459 }
0x1beb   :  { %2283 = vrot.lane.b32.xlu0 %v4460_v18, %s4502_s21 }
0x1bec   :  { %v4462_v21 = vpop.eup %4461 }
0x1bed   :  { %v2277_v22 = vadd.f32 1.0, %v4462_v21 }
0x1bef   :  { %4463 = vrcp.f32 %v2277_v22 }
0x1bfc   :  { %v4464_v23 = vpop.eup %4463 }
0x1bfd   :  { %v2281_v2 = vmul.f32 %v4464_v23, %v1983_v51 }
0x1c5d   :  { %v2284_v24 = vpop.permute.xlu0 %2283 }
0x1c5e   :  { %v2286_v25 = vmul.f32 %v4464_v23, %v2284_v24 }
0x1c60   :  { %2288 = vrot.lane.b32.xlu1 %v2286_v25, %s4503_s4 }
0x1cd2   :  { %v2289_v26 = vpop.permute.xlu1 %2288 }
0x1cd3   :  { %v2291_v27 = vadd.f32 %v2289_v26, %v2281_v2 }
0x1cd5   :  { %4465 = vtanh.f32 %v2291_v27 }
0x1ce2   :  { %v4466_v28 = vpop.eup %4465 }
0x1ce3   :  { %2294 = vrot.lane.b32.xlu0 %v4466_v28, %s4502_s21 }
0x1d55   :  { %v2295_v4 = vpop.permute.xlu0 %2294 }
0x1d56   :  { %v2297_v6 = vmul.f32 %v4464_v23, %v2295_v4 }
0x1d58   :  { %2310 = vrot.lane.b32.xlu1 %v2297_v6, %s4503_s4  ;;  %v3744_v6 = vld [vmem:[%s5415_s0 + $0xa] sm:$0x3] }
0x1dca   :  { %v2311_v8 = vpop.permute.xlu1 %2310 }
0x1dcb   :  { %4224 = vmatmul.mubr.msk.f32.vlgmr.msra.gmra.mxu0 %vm52_vm0, %v2311_v8  ;;  %4235 = vmatmul.mubr.msk.f32.vlgmr.msra.gmra.mxu1 %vm52_vm0, %v2311_v8 }
0x1dcc   :  { %4238 = vmatpush3.msra.mxu0 %v4872_v12  ;;  %4245 = vmatprep.mubr.msk.f32.mxu0 %vm4501_vm1, %v4500_v0 }
0x1dcd   :  { %4239 = vmatprep.subr.mxu0 %v4500_v0  ;;  %4249 = vmatpush3.msra.mxu1 %v4959_v1 }
0x1dce   :  { %4240 = vmatpush3.msra.mxu0 %v4882_v59  ;;  %4250 = vmatprep.subr.mxu1 %v4500_v0 }
0x1dcf   :  { %4241 = vmatprep.subr.mxu0 %v4500_v0  ;;  %4251 = vmatpush3.msra.mxu1 %v4964_v29 }
0x1dd0   :  { %4242 = vmatpush3.msra.mxu0 %v4896_v61  ;;  %4252 = vmatprep.subr.mxu1 %v4500_v0 }
0x1dd1   :  { %4243 = vmatprep.subr.mxu0 %v4500_v0  ;;  %4253 = vmatpush3.msra.mxu1 %v4971_v30 }
0x1dd2   :  { %4244 = vmatpush3.msra.mxu0 %v4910_v63  ;;  %4254 = vmatprep.subr.mxu1 %v4500_v0 }
0x1dd3   :  { %4246 = vmatmul.mubr.msk.f32.vlgmr.msra.gmra.mxu0 %vm52_vm0, %v3722_v31  ;;  %4259 = vmatprep.subr.mxu0 %v4500_v0 }
0x1dd4   :  { %4260 = vmatpush3.msra.mxu0 %v4877_v58  ;;  %4255 = vmatpush3.msra.mxu1 %v4978_v3 }
0x1dd5   :  { %4261 = vmatprep.subr.mxu0 %v4500_v0  ;;  %4256 = vmatprep.mubr.msk.f32.mxu1 %vm4501_vm1, %v4500_v0 }
0x1dd6   :  { %4262 = vmatpush3.msra.mxu0 %v4889_v60  ;;  %4267 = vmatprep.mubr.msk.f32.mxu0 %vm4501_vm1, %v4500_v0 }
0x1dd7   :  { %4263 = vmatprep.subr.mxu0 %v4500_v0  ;;  %4270 = vmatprep.subr.mxu1 %v4500_v0 }
0x1dd8   :  { %4264 = vmatpush3.msra.mxu0 %v4901_v62 }
0x1dd9   :  { %4265 = vmatprep.subr.mxu0 %v4500_v0 }
0x1dda   :  { %4266 = vmatpush3.msra.mxu0 %v4915_v9 }
0x1ddb   :  { %4281 = vmatprep.subr.mxu0 %v4500_v0 }
0x1e8b   :  { %v5109_v32 = vpop.f32.mrf.mxu0  ;;  %v2497_v5 = vpop.f32.mrf.mxu1 }
0x1e8d   :  { %v4225_v33 = vpop.f32.mrf.mxu0  ;;  %v4236_v34 = vpop.f32.mrf.mxu1 }
0x1e93   :  { %v2570_v35 = vpop.f32.mrf.mxu0 }
0x1e94   :  { %v2571_v36 = vadd.f32 %v2570_v35, %v2497_v5 }
0x1e95   :  { %v4247_v37 = vpop.f32.mrf.mxu0 }
0x1e96   :  { %v2581_v38 = vadd.f32 %v4947_v19, %v2571_v36 }
0x1e98   :  { %4467 = vtanh.f32 %v2581_v38  ;;  %v3726_v40 = vmul.f32 -1.442695, %v2581_v38 }
0x1e9a   :  { %4469 = vpow2.f32 %v3726_v40 }
0x1ea5   :  { %v4468_v39 = vpop.eup %4467 }
0x1ea6   :  { %2591 = vrot.lane.b32.xlu0 %v4468_v39, %s4502_s21 }
0x1ea7   :  { %v4470_v41 = vpop.eup %4469 }
0x1ea8   :  { %v2585_v42 = vadd.f32 1.0, %v4470_v41 }
0x1eaa   :  { %4471 = vrcp.f32 %v2585_v42 }
0x1eb7   :  { %v4472_v43 = vpop.eup %4471 }
0x1eb8   :  { %v2589_v46 = vmul.f32 %v4472_v43, %v2291_v27 }
0x1f18   :  { %v2592_v44 = vpop.permute.xlu0 %2591 }
0x1f19   :  { %v2594_v45 = vmul.f32 %v4472_v43, %v2592_v44 }
0x1f1b   :  { %2596 = vrot.lane.b32.xlu1 %v2594_v45, %s4503_s4 }
0x1f8d   :  { %v2597_v47 = vpop.permute.xlu1 %2596 }
0x1f8e   :  { %v2599_v48 = vadd.f32 %v2597_v47, %v2589_v46 }
0x1f90   :  { %4473 = vtanh.f32 %v2599_v48 }
0x1f9d   :  { %v4474_v49 = vpop.eup %4473 }
0x1f9e   :  { %2602 = vrot.lane.b32.xlu0 %v4474_v49, %s4502_s21 }
0x2010   :  { %v2603_v50 = vpop.permute.xlu0 %2602 }
0x2011   :  { %v2605_v51 = vmul.f32 %v4472_v43, %v2603_v50 }
0x2013   :  { %2618 = vrot.lane.b32.xlu1 %v2605_v51, %s4503_s4 }
0x2085   :  { %v2619_v52 = vpop.permute.xlu1 %2618 }
0x2086   :  { %4257 = vmatmul.mubr.msk.f32.vlgmr.msra.gmra.mxu1 %vm52_vm0, %v2619_v52  ;;  %4268 = vmatmul.mubr.msk.f32.vlgmr.msra.gmra.mxu0 %vm52_vm0, %v2619_v52 }
0x2087   :  { %4271 = vmatpush3.msra.mxu1 %v4872_v12  ;;  %4278 = vmatprep.mubr.msk.f32.mxu1 %vm4501_vm1, %v4500_v0 }
0x2088   :  { %4272 = vmatprep.subr.mxu1 %v4500_v0  ;;  %4282 = vmatpush3.msra.mxu0 %v4959_v1 }
0x2089   :  { %4273 = vmatpush3.msra.mxu1 %v4882_v59  ;;  %4283 = vmatprep.subr.mxu0 %v4500_v0 }
0x208a   :  { %4274 = vmatprep.subr.mxu1 %v4500_v0  ;;  %4284 = vmatpush3.msra.mxu0 %v4964_v29 }
0x208b   :  { %4275 = vmatpush3.msra.mxu1 %v4896_v61  ;;  %4285 = vmatprep.subr.mxu0 %v4500_v0 }
0x208c   :  { %4276 = vmatprep.subr.mxu1 %v4500_v0  ;;  %4286 = vmatpush3.msra.mxu0 %v4971_v30 }
0x208d   :  { %4277 = vmatpush3.msra.mxu1 %v4910_v63  ;;  %4287 = vmatprep.subr.mxu0 %v4500_v0 }
0x208e   :  { %4279 = vmatmul.mubr.msk.f32.vlgmr.msra.gmra.mxu1 %vm52_vm0, %v3733_v53  ;;  %4292 = vmatprep.subr.mxu1 %v4500_v0 }
0x208f   :  { %4293 = vmatpush3.msra.mxu1 %v4877_v58  ;;  %4288 = vmatpush3.msra.mxu0 %v4978_v3 }
0x2090   :  { %4294 = vmatprep.subr.mxu1 %v4500_v0  ;;  %4289 = vmatprep.mubr.msk.f32.mxu0 %vm4501_vm1, %v4500_v0 }
0x2091   :  { %4295 = vmatpush3.msra.mxu1 %v4889_v60  ;;  %4300 = vmatprep.mubr.msk.f32.mxu1 %vm4501_vm1, %v4500_v0 }
0x2092   :  { %4296 = vmatprep.subr.mxu1 %v4500_v0  ;;  %4303 = vmatprep.subr.mxu0 %v4500_v0 }
0x2093   :  { %4297 = vmatpush3.msra.mxu1 %v4901_v62 }
0x2094   :  { %4298 = vmatprep.subr.mxu1 %v4500_v0 }
0x2095   :  { %4299 = vmatpush3.msra.mxu1 %v4915_v9 }
0x2096   :  { %4314 = vmatprep.subr.mxu1 %v4500_v0 }
0x2146   :  { %v5152_v54 = vpop.f32.mrf.mxu1  ;;  %v2805_v55 = vpop.f32.mrf.mxu0 }
0x2148   :  { %v4258_v56 = vpop.f32.mrf.mxu1  ;;  %v4269_v10 = vpop.f32.mrf.mxu0 }
0x214e   :  { %v2878_v11 = vpop.f32.mrf.mxu1 }
0x214f   :  { %v2879_v13 = vadd.f32 %v2878_v11, %v2805_v55 }
0x2150   :  { %v4280_v14 = vpop.f32.mrf.mxu1 }
0x2151   :  { %v2889_v15 = vadd.f32 %v4947_v19, %v2879_v13 }
0x2153   :  { %4475 = vtanh.f32 %v2889_v15  ;;  %v3737_v17 = vmul.f32 -1.442695, %v2889_v15  ;;  %v1457_v15 = vld [vmem:[%s5422_s11] sm:$0x3] }
0x2155   :  { %4477 = vpow2.f32 %v3737_v17 }
0x2160   :  { %v4476_v16 = vpop.eup %4475 }
0x2161   :  { %2899 = vrot.lane.b32.xlu0 %v4476_v16, %s4502_s21 }
0x2162   :  { %v4478_v18 = vpop.eup %4477 }
0x2163   :  { %v2893_v20 = vadd.f32 1.0, %v4478_v18 }
0x2165   :  { %4479 = vrcp.f32 %v2893_v20 }
0x2172   :  { %v4480_v21 = vpop.eup %4479 }
0x2173   :  { %v2897_v24 = vmul.f32 %v4480_v21, %v2599_v48 }
0x21d3   :  { %v2900_v22 = vpop.permute.xlu0 %2899 }
0x21d4   :  { %v2902_v23 = vmul.f32 %v4480_v21, %v2900_v22  ;;  %v41_v22 = vlaneseq }
0x21d6   :  { %2904 = vrot.lane.b32.xlu1 %v2902_v23, %s4503_s4  ;;  %v5243_v23 = vld [vmem:[%s5423_s9] ss:$0 sm:$0xff] }
0x2248   :  { %v2905_v25 = vpop.permute.xlu1 %2904 }
0x2249   :  { %v2907_v2 = vadd.f32 %v2905_v25, %v2897_v24  ;;  %v5245_v24 = vand.u32 127, %v41_v22  ;;  %v1765_v25 = vadd.f32 %v5243_v23, %v5022_v7  ;;  %v3718_v22 = vld [vmem:[%s5422_s11 + $0x6] sm:$0x3] }
0x224b   :  { %4481 = vtanh.f32 %v2907_v2 }
0x2258   :  { %v4482_v26 = vpop.eup %4481 }
0x2259   :  { %2910 = vrot.lane.b32.xlu0 %v4482_v26, %s4502_s21 }
0x22cb   :  { %v2911_v27 = vpop.permute.xlu0 %2910 }
0x22cc   :  { %v2913_v28 = vmul.f32 %v4480_v21, %v2911_v27 }
0x22ce   :  { %2926 = vrot.lane.b32.xlu1 %v2913_v28, %s4503_s4 }
0x2340   :  { %v2927_v4 = vpop.permute.xlu1 %2926 }
0x2341   :  { %4290 = vmatmul.mubr.msk.f32.vlgmr.msra.gmra.mxu0 %vm52_vm0, %v2927_v4  ;;  %4301 = vmatmul.mubr.msk.f32.vlgmr.msra.gmra.mxu1 %vm52_vm0, %v2927_v4 }
0x2342   :  { %4304 = vmatpush3.msra.mxu0 %v4872_v12  ;;  %4311 = vmatprep.mubr.msk.f32.mxu0 %vm4501_vm1, %v4500_v0 }
0x2343   :  { %4305 = vmatprep.subr.mxu0 %v4500_v0  ;;  %4315 = vmatpush3.msra.mxu1 %v4959_v1 }
0x2344   :  { %4306 = vmatpush3.msra.mxu0 %v4882_v59  ;;  %4316 = vmatprep.subr.mxu1 %v4500_v0 }
0x2345   :  { %4307 = vmatprep.subr.mxu0 %v4500_v0  ;;  %4317 = vmatpush3.msra.mxu1 %v4964_v29 }
0x2346   :  { %4308 = vmatpush3.msra.mxu0 %v4896_v61  ;;  %4318 = vmatprep.subr.mxu1 %v4500_v0 }
0x2347   :  { %4309 = vmatprep.subr.mxu0 %v4500_v0  ;;  %4319 = vmatpush3.msra.mxu1 %v4971_v30 }
0x2348   :  { %4310 = vmatpush3.msra.mxu0 %v4910_v63  ;;  %4320 = vmatprep.subr.mxu1 %v4500_v0 }
0x2349   :  { %4312 = vmatmul.mubr.msk.f32.vlgmr.msra.gmra.mxu0 %vm52_vm0, %v3744_v6  ;;  %4325 = vmatprep.subr.mxu0 %v4500_v0 }
0x234a   :  { %4326 = vmatpush3.msra.mxu0 %v4877_v58  ;;  %4321 = vmatpush3.msra.mxu1 %v4978_v3 }
0x234b   :  { %4327 = vmatprep.subr.mxu0 %v4500_v0  ;;  %4322 = vmatprep.mubr.msk.f32.mxu1 %vm4501_vm1, %v4500_v0 }
0x234c   :  { %4328 = vmatpush3.msra.mxu0 %v4889_v60  ;;  %4333 = vmatprep.mubr.msk.f32.mxu0 %vm4501_vm1, %v4500_v0 }
0x234d   :  { %4329 = vmatprep.subr.mxu0 %v4500_v0  ;;  %4336 = vmatprep.subr.mxu1 %v4500_v0 }
0x234e   :  { %4330 = vmatpush3.msra.mxu0 %v4901_v62 }
0x234f   :  { %4331 = vmatprep.subr.mxu0 %v4500_v0 }
0x2350   :  { %4332 = vmatpush3.msra.mxu0 %v4915_v9 }
0x2351   :  { %4347 = vmatprep.subr.mxu0 %v4500_v0 }
0x2401   :  { %v5195_v58 = vpop.f32.mrf.mxu0  ;;  %v3113_v8 = vpop.f32.mrf.mxu1 }
0x2403   :  { %v4291_v31 = vpop.f32.mrf.mxu0  ;;  %v4302_v60 = vpop.f32.mrf.mxu1 }
0x2409   :  { %v3186_v5 = vpop.f32.mrf.mxu0 }
0x240a   :  { %v3187_v33 = vadd.f32 %v3186_v5, %v3113_v8  ;;  %v4504_v5 = vmov 0  }
0x240b   :  { %v4313_v34 = vpop.f32.mrf.mxu0  ;;  %4370 = vset.pattern.permute.xlu0 %v4504_v5 }
0x240c   :  { %v3197_v35 = vadd.f32 %v4947_v19, %v3187_v33 }
0x240e   :  { %4483 = vtanh.f32 %v3197_v35  ;;  %v3748_v62 = vmul.f32 -1.442695, %v3197_v35 }
0x2410   :  { %4485 = vpow2.f32 %v3748_v62 }
0x241b   :  { %v4484_v36 = vpop.eup %4483 }
0x241c   :  { %3207 = vrot.lane.b32.xlu0 %v4484_v36, %s4502_s21 }
0x241d   :  { %v4486_v37 = vpop.eup %4485 }
0x241e   :  { %v3201_v9 = vadd.f32 1.0, %v4486_v37 }
0x2420   :  { %4487 = vrcp.f32 %v3201_v9 }
0x242d   :  { %v4488_v38 = vpop.eup %4487 }
0x242e   :  { %v3205_v41 = vmul.f32 %v4488_v38, %v2907_v2  ;;  %v3696_v2 = vld [vmem:[%s5422_s11 + $0x2] sm:$0x3] }
0x242f   :  { %v1770_v28 = vadd.f32 %v3696_v2, %v1765_v25 }
0x2431   :  { %v1771_v31 = vmul.f32 1.3498588, %v1770_v28 }
0x2433   :  { %v1772_v60 = vsel %vm1460_vm2, %v1771_v31, -inf }
0x248e   :  { %v3208_v39 = vpop.permute.xlu0 %3207 }
0x248f   :  { %v3210_v40 = vmul.f32 %v4488_v38, %v3208_v39 }
0x2491   :  { %3212 = vrot.lane.b32.xlu1 %v3210_v40, %s4503_s4  ;;  %v1484_v40 = vld [vmem:[%s5424_s1] sm:$0x3] }
0x2492   :  { %vm1485_vm6 = vcmp.gt.f32.partialorder %v1484_v40, 0.5 }
0x2503   :  { %v3213_v42 = vpop.permute.xlu1 %3212 }
0x2504   :  { %v3215_v43 = vadd.f32 %v3213_v42, %v3205_v41  ;;  %v1486_v41 = vsel %vm1485_vm6, 1, %v4504_v5  ;;  %v4505_v42 = vmov 1  }
0x2505   :  { %4371 = vset.pattern.permute.xlu1 %v4505_v42 }
0x2506   :  { %4489 = vtanh.f32 %v3215_v43 }
0x2513   :  { %v4490_v44 = vpop.eup %4489 }
0x2514   :  { %3218 = vrot.lane.b32.xlu0 %v4490_v44, %s4502_s21 }
0x2586   :  { %v3219_v45 = vpop.permute.xlu0 %3218 }
0x2587   :  { %v3221_v46 = vmul.f32 %v4488_v38, %v3219_v45 }
0x2589   :  { %3234 = vrot.lane.b32.xlu1 %v3221_v46, %s4503_s4 }
0x25fb   :  { %v3235_v47 = vpop.permute.xlu1 %3234 }
0x25fc   :  { %4323 = vmatmul.mubr.msk.f32.vlgmr.msra.gmra.mxu1 %vm52_vm0, %v3235_v47  ;;  %4334 = vmatmul.mubr.msk.f32.vlgmr.msra.gmra.mxu0 %vm52_vm0, %v3235_v47 }
0x25fd   :  { %4337 = vmatpush3.msra.mxu1 %v4872_v12  ;;  %4344 = vmatprep.mubr.msk.f32.mxu1 %vm4501_vm1, %v4500_v0  ;;  %v3755_v12 = vld [vmem:[%s5415_s0 + $0xc] sm:$0x3] }
0x25fe   :  { %4338 = vmatprep.subr.mxu1 %v4500_v0  ;;  %4348 = vmatpush3.msra.mxu0 %v4959_v1 }
0x25ff   :  { %4339 = vmatpush3.msra.mxu1 %v4882_v59  ;;  %4349 = vmatprep.subr.mxu0 %v4500_v0 }
0x2600   :  { %4340 = vmatprep.subr.mxu1 %v4500_v0  ;;  %4350 = vmatpush3.msra.mxu0 %v4964_v29 }
0x2601   :  { %4341 = vmatpush3.msra.mxu1 %v4896_v61  ;;  %4351 = vmatprep.subr.mxu0 %v4500_v0 }
0x2602   :  { %4342 = vmatprep.subr.mxu1 %v4500_v0  ;;  %4352 = vmatpush3.msra.mxu0 %v4971_v30 }
0x2603   :  { %4343 = vmatpush3.msra.mxu1 %v4910_v63  ;;  %4353 = vmatprep.subr.mxu0 %v4500_v0 }
0x2604   :  { %4345 = vmatmul.mubr.msk.f32.vlgmr.msra.gmra.mxu1 %vm52_vm0, %v3755_v12  ;;  %4354 = vmatpush3.msra.mxu0 %v4978_v3 }
0x2605   :  { %4355 = vmatprep.mubr.msk.f32.mxu0 %vm4501_vm1, %v4500_v0 }
0x26bc   :  { %v5226_v59 = vpop.f32.mrf.mxu1  ;;  %v3421_v61 = vpop.f32.mrf.mxu0 }
0x26be   :  { %v4324_v1 = vpop.f32.mrf.mxu1  ;;  %v4335_v29 = vpop.f32.mrf.mxu0 }
0x26c4   :  { %v3494_v48 = vpop.f32.mrf.mxu1 }
0x26c5   :  { %v3495_v49 = vadd.f32 %v3494_v48, %v3421_v61 }
0x26c6   :  { %v4346_v50 = vpop.f32.mrf.mxu1 }
0x26c7   :  { %v3505_v30 = vadd.f32 %v4947_v19, %v3495_v49  ;;  %v1456_v19 = vld [vmem:[%s5421_s10] sm:$0x3] }
0x26c8   :  { %v1458_v16 = vadd.f32 %v1457_v15, %v1456_v19 }
0x26c9   :  { %4491 = vtanh.f32 %v3505_v30  ;;  %v3759_v51 = vmul.f32 -1.442695, %v3505_v30  ;;  %v4499_v30 = vld [vmem:[%s5415_s0] sm:$0x3] }
0x26ca   :  { %v1459_v17 = vmul.f32 1.3498588, %v1458_v16 }
0x26cb   :  { %4493 = vpow2.f32 %v3759_v51 }
0x26cc   :  { %v1461_v18 = vsel %vm1460_vm2, %v1459_v17, -inf }
0x26d6   :  { %v4492_v63 = vpop.eup %4491 }
0x26d7   :  { %3515 = vrot.lane.b32.xlu0 %v4492_v63, %s4502_s21 }
0x26d8   :  { %v4494_v3 = vpop.eup %4493 }
0x26d9   :  { %v3509_v52 = vadd.f32 1.0, %v4494_v3  ;;  %v1795_v3 = vld [vmem:[%s5424_s1] sm:$0x3] }
0x26da   :  { %vm1796_vm10 = vcmp.gt.f32.partialorder %v1795_v3, 0.5 }
0x26db   :  { %4495 = vrcp.f32 %v3509_v52  ;;  %v1798_v52 = vsel %vm1796_vm10, 1, %v4504_v5 }
0x26e8   :  { %v4496_v53 = vpop.eup %4495 }
0x26e9   :  { %v3513_v10 = vmul.f32 %v4496_v53, %v3215_v43 }
0x2749   :  { %v3516_v55 = vpop.permute.xlu0 %3515 }
0x274a   :  { %v3518_v56 = vmul.f32 %v4496_v53, %v3516_v55  ;;  %v3707_v55 = vld [vmem:[%s5422_s11 + $0x4] sm:$0x3] }
0x274c   :  { %3520 = vrot.lane.b32.xlu1 %v3518_v56, %s4503_s4 }
0x27be   :  { %v3521_v11 = vpop.permute.xlu1 %3520 }
0x27bf   :  { %v3523_v13 = vadd.f32 %v3521_v11, %v3513_v10 }
0x27c1   :  { %4497 = vtanh.f32 %v3523_v13 }
0x27ce   :  { %v4498_v14 = vpop.eup %4497 }
0x27cf   :  { %3526 = vrot.lane.b32.xlu0 %v4498_v14, %s4502_s21 }
0x27ee   :  { %1462 = vmax.xlane.f32.xlu0 %v1461_v18 }
0x2841   :  { %v3527_v20 = vpop.permute.xlu0 %3526 }
0x2842   :  { %v3529_v21 = vmul.f32 %v4496_v53, %v3527_v20  ;;  %v2073_v53 = vadd.f32 %v5243_v23, %v5066_v57 }
0x2844   :  { %3542 = vrot.lane.b32.xlu1 %v3529_v21, %s4503_s4  ;;  %v2078_v56 = vadd.f32 %v3707_v55, %v2073_v53  ;;  %v2381_v21 = vadd.f32 %v5243_v23, %v5109_v32 }
0x2846   :  { %v2079_v10 = vmul.f32 1.3498588, %v2078_v56 }
0x2848   :  { %v2080_v11 = vsel %vm1460_vm2, %v2079_v10, -inf }
0x2877   :  { %v1463_v26 = vpop.xlane.xlu0 %1462 }
0x2878   :  { %vm1464_vm3 = vcmp.eq.f32.partialorder %v1459_v17, %v1463_v26  ;;  %v3698_v17 = vld [vmem:[%s5415_s0 + $0x2] sm:$0x3]  ;;  %v2386_v26 = vadd.f32 %v3718_v22, %v2381_v21 }
0x2879   :  { %v1465_v27 = vsel %vm1464_vm3, %v5245_v24, 32 }
0x287a   :  { %v1466_v4 = vsel %vm1460_vm2, %v1465_v27, 2147483647  ;;  %v2689_v27 = vadd.f32 %v5243_v23, %v5152_v54  ;;  %v3305_v54 = vadd.f32 %v5243_v23, %v5226_v59  ;;  %v4506_v59 = vmov 2  }
0x287b   :  { %v1468_v6 = vshra.s32 %v1466_v4, 16  ;;  %v1467_v33 = vand.u32 65535, %v1466_v4  ;;  %v3729_v4 = vld [vmem:[%s5422_s11 + $0x8] sm:$0x3] }
0x287d   :  { %v1470_v8 = vcvt.s32.f32 %v1468_v6  ;;  %v1469_v35 = vcvt.s32.f32 %v1467_v33 }
0x287f   :  { %1471 = vmin.xlane.f32.xlu1 %v1470_v8 }
0x2883   :  { %1773 = vmax.xlane.f32.xlu1 %v1772_v60  ;;  %v2387_v60 = vmul.f32 1.3498588, %v2386_v26 }
0x28b6   :  { %v3543_v7 = vpop.permute.xlu1 %3542 }
0x28b7   :  { %4356 = vmatmul.mubr.msk.f32.vlgmr.msra.gmra.mxu0 %vm52_vm0, %v3543_v7  ;;  %v3740_v7 = vld [vmem:[%s5422_s11 + $0xa] sm:$0x3] }
0x2908   :  { %v1472_v34 = vpop.xlane.xlu1 %1471 }
0x2909   :  { %vm1473_vm4 = vcmp.eq.f32.partialorder %v1470_v8, %v1472_v34  ;;  %v1478_v45 = vcvt.f32.s32 %v1472_v34  ;;  %v2694_v8 = vadd.f32 %v3729_v4, %v2689_v27  ;;  %v2388_v34 = vsel %vm1460_vm2, %v2387_v60, -inf }
0x290a   :  { %v1474_v36 = vsel %vm1473_vm4, %v1469_v35, inf }
0x290b   :  { %1475 = vmin.xlane.f32.xlu0 %v1474_v36  ;;  %v1479_v47 = vshll.u32 %v1478_v45, 16  ;;  %v2695_v35 = vmul.f32 1.3498588, %v2694_v8  ;;  %v3751_v36 = vld [vmem:[%s5422_s11 + $0xc] sm:$0x3] }
0x290c   :  { %v1774_v62 = vpop.xlane.xlu1 %1773 }
0x290d   :  { %vm1775_vm5 = vcmp.eq.f32.partialorder %v1771_v31, %v1774_v62  ;;  %v2997_v31 = vadd.f32 %v5243_v23, %v5195_v58  ;;  %v3310_v62 = vadd.f32 %v3751_v36, %v3305_v54  ;;  %v2696_v58 = vsel %vm1460_vm2, %v2695_v35, -inf }
0x290e   :  { %v1776_v37 = vsel %vm1775_vm5, %v5245_v24, 32  ;;  %v4509_v54 = vmov 4  }
0x290f   :  { %v1777_v9 = vsel %vm1460_vm2, %v1776_v37, 2147483647  ;;  %v3002_v33 = vadd.f32 %v3740_v7, %v2997_v31  ;;  %v2411_v31 = vld [vmem:[%s5424_s1] sm:$0x3] }
0x2910   :  { %v1779_v38 = vshra.s32 %v1777_v9, 16  ;;  %v1778_v1 = vand.u32 65535, %v1777_v9 }
0x2911   :  { %v3003_v37 = vmul.f32 1.3498588, %v3002_v33 }
0x2912   :  { %v1781_v39 = vcvt.s32.f32 %v1779_v38  ;;  %v1780_v50 = vcvt.s32.f32 %v1778_v1  ;;  %v3311_v38 = vmul.f32 1.3498588, %v3310_v62  ;;  %v2103_v1 = vld [vmem:[%s5424_s1] sm:$0x3] }
0x2913   :  { %v3004_v9 = vsel %vm1460_vm2, %v3003_v37, -inf  ;;  %vm2104_vm0 = vcmp.gt.f32.partialorder %v2103_v1, 0.5 }
0x2914   :  { %1782 = vmin.xlane.f32.xlu1 %v1781_v39 }
0x2921   :  { %1488 = vperm.xlu0 %4370, %v1486_v41  }
0x2977   :  { %v5263_v43 = vpop.f32.mrf.mxu0 }
0x2979   :  { %v4357_v44 = vpop.f32.mrf.mxu0 }
0x2994   :  { %v1476_v46 = vpop.xlane.xlu0 %1475 }
0x2995   :  { %v1477_v12 = vcvt.f32.s32 %v1476_v46 }
0x2997   :  { %v1480_v61 = vadd.s32 %v1479_v47, %v1477_v12 }
0x2999   :  { %vm1481_vm7 = vcmp.eq.s32.totalorder %v5245_v24, %v1480_v61 }
0x299a   :  { %v3689_v48 = vsel %vm1481_vm7, 1.0, %v4500_v0 }
0x299c   :  { %v1489_v29 = vpop.permute.xlu0 %1488 }
0x299d   :  { %vm1490_vm8 = vcmp.eq.s32.totalorder %v1489_v29, 1  ;;  %v1783_v49 = vpop.xlane.xlu1 %1782  ;;  %v2106_v29 = vsel %vm2104_vm0, 1, %v4504_v5 }
0x299e   :  { %v1491_v63 = vsel %vm1490_vm8, %v3689_v48, %v4499_v30  ;;  %vm1784_vm9 = vcmp.eq.f32.partialorder %v1781_v39, %v1783_v49  ;;  %v1789_v13 = vcvt.f32.s32 %v1783_v49  ;;  %v3312_v39 = vsel %vm1460_vm2, %v3311_v38, -inf  ;;  %v3762_v30 = vld [vmem:[%s5422_s11 + $0xe] sm:$0x3] }
0x299f   :  { %1492 = vst.msk [vmem:[%s5425_s12] sm:$0x3] %vm1460_vm2, %v1491_v63  ;;  %v1785_v51 = vsel %vm1784_vm9, %v1780_v50, inf  ;;  %v4507_v48 = vmov 3   ;;  %v3613_v50 = vadd.f32 %v5243_v23, %v5263_v43  ;;  %vm2412_vm8 = vcmp.gt.f32.partialorder %v2411_v31, 0.5 }
0x29a0   :  { %1786 = vmin.xlane.f32.xlu1 %v1785_v51  ;;  %v1790_v19 = vshll.u32 %v1789_v13, 16  ;;  %4373 = vset.pattern.permute.xlu0 %v4507_v48  ;;  %v2414_v7 = vsel %vm2412_vm8, 1, %v4504_v5 }
0x29a1   :  { %v3618_v51 = vadd.f32 %v3762_v30, %v3613_v50 }
0x29a3   :  { %v3619_v55 = vmul.f32 1.3498588, %v3618_v51 }
0x29a5   :  { %v3620_v43 = vsel %vm1460_vm2, %v3619_v55, -inf }
0x29b1   :  { %1800 = vperm.xlu1 %4371, %v1798_v52  }
0x29b5   :  { %4372 = vset.pattern.permute.xlu1 %v4506_v59 }
0x29d5   :  { %2081 = vmax.xlane.f32.xlu1 %v2080_v11 }
0x2a29   :  { %v1787_v14 = vpop.xlane.xlu1 %1786 }
0x2a2a   :  { %v1788_v15 = vcvt.f32.s32 %v1787_v14 }
0x2a2c   :  { %v1791_v16 = vadd.s32 %v1790_v19, %v1788_v15 }
0x2a2d   :  { %v1801_v18 = vpop.permute.xlu1 %1800 }
0x2a2e   :  { %vm1792_vm11 = vcmp.eq.s32.totalorder %v5245_v24, %v1791_v16  ;;  %vm1802_vm12 = vcmp.eq.s32.totalorder %v1801_v18, 1  ;;  %v4508_v18 = vmov 5  }
0x2a2f   :  { %v3697_v57 = vsel %vm1792_vm11, 1.0, %v4500_v0 }
0x2a30   :  { %v1803_v20 = vsel %vm1802_vm12, %v3697_v57, %v3698_v17 }
0x2a31   :  { %3699 = vst.msk [vmem:[%s5425_s12 + $0x2] sm:$0x3] %vm1460_vm2, %v1803_v20 }
0x2a5e   :  { %v2082_v25 = vpop.xlane.xlu1 %2081 }
0x2a5f   :  { %vm2083_vm13 = vcmp.eq.f32.partialorder %v2079_v10, %v2082_v25 }
0x2a60   :  { %v2084_v2 = vsel %vm2083_vm13, %v5245_v24, 32 }
0x2a61   :  { %v2085_v28 = vsel %vm1460_vm2, %v2084_v2, 2147483647  ;;  %v3709_v2 = vld [vmem:[%s5415_s0 + $0x4] sm:$0x3] }
0x2a62   :  { %v2087_v6 = vshra.s32 %v2085_v28, 16  ;;  %v2086_v40 = vand.u32 65535, %v2085_v28 }
0x2a64   :  { %v2089_v32 = vcvt.s32.f32 %v2087_v6  ;;  %v2088_v42 = vcvt.s32.f32 %v2086_v40 }
0x2a66   :  { %2090 = vmin.xlane.f32.xlu0 %v2089_v32 }
0x2a6a   :  { %2389 = vmax.xlane.f32.xlu0 %v2388_v34  ;;  %v4510_v34 = vmov 6  }
0x2a6e   :  { %2697 = vmax.xlane.f32.xlu0 %v2696_v58 }
0x2a72   :  { %3005 = vmax.xlane.f32.xlu0 %v3004_v9 }
0x2a76   :  { %3313 = vmax.xlane.f32.xlu0 %v3312_v39 }
0x2aef   :  { %v2091_v41 = vpop.xlane.xlu0 %2090 }
0x2af0   :  { %vm2092_vm14 = vcmp.eq.f32.partialorder %v2089_v32, %v2091_v41  ;;  %v2097_v57 = vcvt.f32.s32 %v2091_v41 }
0x2af1   :  { %v2093_v44 = vsel %vm2092_vm14, %v2088_v42, inf }
0x2af2   :  { %2094 = vmin.xlane.f32.xlu1 %v2093_v44  ;;  %v2098_v21 = vshll.u32 %v2097_v57, 16 }
0x2af3   :  { %v2390_v45 = vpop.xlane.xlu0 %2389 }
0x2af4   :  { %vm2391_vm15 = vcmp.eq.f32.partialorder %v2387_v60, %v2390_v45  ;;  %v2719_v60 = vld [vmem:[%s5424_s1] sm:$0x3] }
0x2af5   :  { %v2392_v46 = vsel %vm2391_vm15, %v5245_v24, 32  ;;  %vm2720_vm9 = vcmp.gt.f32.partialorder %v2719_v60, 0.5 }
0x2af6   :  { %v2393_v47 = vsel %vm1460_vm2, %v2392_v46, 2147483647  ;;  %v2722_v33 = vsel %vm2720_vm9, 1, %v4504_v5 }
0x2af7   :  { %v2395_v12 = vshra.s32 %v2393_v47, 16  ;;  %v2698_v49 = vpop.xlane.xlu0 %2697  ;;  %v2394_v27 = vand.u32 65535, %v2393_v47 }
0x2af8   :  { %vm2699_vm1 = vcmp.eq.f32.partialorder %v2695_v35, %v2698_v49  ;;  %v4511_v49 = vmov 7  }
0x2af9   :  { %v2397_v61 = vcvt.s32.f32 %v2395_v12  ;;  %v2700_v3 = vsel %vm2699_vm1, %v5245_v24, 32  ;;  %v2396_v32 = vcvt.s32.f32 %v2394_v27 }
0x2afa   :  { %v2701_v53 = vsel %vm1460_vm2, %v2700_v3, 2147483647 }
0x2afb   :  { %2398 = vmin.xlane.f32.xlu0 %v2397_v61  ;;  %v3006_v63 = vpop.xlane.xlu0 %3005  ;;  %v2703_v10 = vshra.s32 %v2701_v53, 16  ;;  %v2702_v36 = vand.u32 65535, %v2701_v53 }
0x2afc   :  { %vm3007_vm3 = vcmp.eq.f32.partialorder %v3003_v37, %v3006_v63 }
0x2afd   :  { %v3008_v56 = vsel %vm3007_vm3, %v5245_v24, 32  ;;  %v2705_v13 = vcvt.s32.f32 %v2703_v10  ;;  %v2704_v37 = vcvt.s32.f32 %v2702_v36 }
0x2afe   :  { %v3009_v23 = vsel %vm1460_vm2, %v3008_v56, 2147483647 }
0x2aff   :  { %v3314_v52 = vpop.xlane.xlu0 %3313  ;;  %v3011_v14 = vshra.s32 %v3009_v23, 16  ;;  %v3010_v9 = vand.u32 65535, %v3009_v23 }
0x2b00   :  { %vm3315_vm4 = vcmp.eq.f32.partialorder %v3311_v38, %v3314_v52  ;;  %v3720_v52 = vld [vmem:[%s5415_s0 + $0x6] sm:$0x3] }
0x2b01   :  { %v3316_v11 = vsel %vm3315_vm4, %v5245_v24, 32  ;;  %v3013_v15 = vcvt.s32.f32 %v3011_v14  ;;  %v3012_v40 = vcvt.s32.f32 %v3010_v9 }
0x2b02   :  { %v3317_v19 = vsel %vm1460_vm2, %v3316_v11, 2147483647 }
0x2b03   :  { %2108 = vperm.xlu1 %4372, %v2106_v29   ;;  %v3319_v16 = vshra.s32 %v3317_v19, 16  ;;  %v3318_v44 = vand.u32 65535, %v3317_v19  ;;  %v3335_v29 = vld [vmem:[%s5424_s1] sm:$0x3] }
0x2b04   :  { %vm3336_vm15 = vcmp.gt.f32.partialorder %v3335_v29, 0.5 }
0x2b05   :  { %v3321_v17 = vcvt.s32.f32 %v3319_v16  ;;  %v3320_v47 = vcvt.s32.f32 %v3318_v44  ;;  %v3338_v48 = vsel %vm3336_vm15, 1, %v4504_v5  ;;  %v3731_v16 = vld [vmem:[%s5415_s0 + $0x8] sm:$0x3] }
0x2b07   :  { %4375 = vset.pattern.permute.xlu1 %v4508_v18 }
0x2b27   :  { %3621 = vmax.xlane.f32.xlu1 %v3620_v43 }
0x2b2b   :  { %2706 = vmin.xlane.f32.xlu1 %v2705_v13 }
0x2b2f   :  { %3014 = vmin.xlane.f32.xlu1 %v3013_v15 }
0x2b33   :  { %3322 = vmin.xlane.f32.xlu1 %v3321_v17 }
0x2b7b   :  { %v2095_v20 = vpop.xlane.xlu1 %2094 }
0x2b7c   :  { %v2096_v22 = vcvt.f32.s32 %v2095_v20 }
0x2b7e   :  { %v2099_v25 = vadd.s32 %v2098_v21, %v2096_v22 }
0x2b7f   :  { %v2109_v26 = vpop.permute.xlu1 %2108 }
0x2b80   :  { %vm2100_vm5 = vcmp.eq.s32.totalorder %v5245_v24, %v2099_v25  ;;  %vm2110_vm6 = vcmp.eq.s32.totalorder %v2109_v26, 1 }
0x2b81   :  { %v3708_v28 = vsel %vm2100_vm5, 1.0, %v4500_v0 }
0x2b82   :  { %v2111_v4 = vsel %vm2110_vm6, %v3708_v28, %v3709_v2 }
0x2b83   :  { %3710 = vst.msk [vmem:[%s5425_s12 + $0x4] sm:$0x3] %vm1460_vm2, %v2111_v4 }
0x2b84   :  { %v2399_v6 = vpop.xlane.xlu0 %2398 }
0x2b85   :  { %vm2400_vm7 = vcmp.eq.f32.partialorder %v2397_v61, %v2399_v6  ;;  %v3027_v61 = vld [vmem:[%s5424_s1] sm:$0x3]  ;;  %v2405_v50 = vcvt.f32.s32 %v2399_v6 }
0x2b86   :  { %v2401_v8 = vsel %vm2400_vm7, %v2396_v32, inf  ;;  %vm3028_vm14 = vcmp.gt.f32.partialorder %v3027_v61, 0.5  ;;  %v3742_v32 = vld [vmem:[%s5415_s0 + $0xa] sm:$0x3] }
0x2b87   :  { %2402 = vmin.xlane.f32.xlu0 %v2401_v8  ;;  %v3030_v1 = vsel %vm3028_vm14, 1, %v4504_v5  ;;  %v2406_v63 = vshll.u32 %v2405_v50, 16 }
0x2b9d   :  { %2416 = vperm.xlu0 %4373, %v2414_v7  }
0x2ba1   :  { %4374 = vset.pattern.permute.xlu0 %v4509_v54 }
0x2ba2   :  { %2724 = vperm.xlu0 %4374, %v2722_v33   ;;  %v3753_v33 = vld [vmem:[%s5415_s0 + $0xc] sm:$0x3] }
0x2ba6   :  { %4376 = vset.pattern.permute.xlu0 %v4510_v34 }
0x2bb0   :  { %v3622_v35 = vpop.xlane.xlu1 %3621 }
0x2bb1   :  { %vm3623_vm10 = vcmp.eq.f32.partialorder %v3619_v55, %v3622_v35  ;;  %v3643_v35 = vld [vmem:[%s5424_s1] sm:$0x3] }
0x2bb2   :  { %v3624_v62 = vsel %vm3623_vm10, %v5245_v24, 32  ;;  %vm3644_vm10 = vcmp.gt.f32.partialorder %v3643_v35, 0.5 }
0x2bb3   :  { %v3625_v38 = vsel %vm1460_vm2, %v3624_v62, 2147483647  ;;  %v3646_v62 = vsel %vm3644_vm10, 1, %v4504_v5 }
0x2bb4   :  { %v2707_v58 = vpop.xlane.xlu1 %2706  ;;  %v3627_v41 = vshra.s32 %v3625_v38, 16 }
0x2bb5   :  { %vm2708_vm11 = vcmp.eq.f32.partialorder %v2705_v13, %v2707_v58  ;;  %v2713_v10 = vcvt.f32.s32 %v2707_v58 }
0x2bb6   :  { %v2709_v39 = vsel %vm2708_vm11, %v2704_v37, inf  ;;  %v3629_v46 = vcvt.s32.f32 %v3627_v41 }
0x2bb7   :  { %2710 = vmin.xlane.f32.xlu1 %v2709_v39  ;;  %v2714_v43 = vshll.u32 %v2713_v10, 16 }
0x2bb8   :  { %v3015_v59 = vpop.xlane.xlu1 %3014 }
0x2bb9   :  { %vm3016_vm12 = vcmp.eq.f32.partialorder %v3013_v15, %v3015_v59  ;;  %v3021_v11 = vcvt.f32.s32 %v3015_v59  ;;  %v3764_v59 = vld [vmem:[%s5415_s0 + $0xe] sm:$0x3] }
0x2bba   :  { %v3017_v42 = vsel %vm3016_vm12, %v3012_v40, inf }
0x2bbb   :  { %3018 = vmin.xlane.f32.xlu1 %v3017_v42  ;;  %v3022_v18 = vshll.u32 %v3021_v11, 16 }
0x2bbc   :  { %v3323_v45 = vpop.xlane.xlu1 %3322 }
0x2bbd   :  { %vm3324_vm13 = vcmp.eq.f32.partialorder %v3321_v17, %v3323_v45  ;;  %v3626_v17 = vand.u32 65535, %v3625_v38  ;;  %v3329_v21 = vcvt.f32.s32 %v3323_v45 }
0x2bbe   :  { %v3325_v12 = vsel %vm3324_vm13, %v3320_v47, inf }
0x2bbf   :  { %3630 = vmin.xlane.f32.xlu1 %v3629_v46  ;;  %v3628_v26 = vcvt.s32.f32 %v3626_v17  ;;  %v3330_v4 = vshll.u32 %v3329_v21, 16 }
0x2bc1   :  { %3326 = vmin.xlane.f32.xlu0 %v3325_v12 }
0x2bd0   :  { %3032 = vperm.xlu1 %4375, %v3030_v1  }
0x2bd4   :  { %4377 = vset.pattern.permute.xlu1 %v4511_v49 }
0x2bd7   :  { %3340 = vperm.xlu0 %4376, %v3338_v48  }
0x2bdb   :  { %4378 = vset.pattern.permute.xlu0 %v4511_v49 }
0x2c10   :  { %v2403_v30 = vpop.xlane.xlu0 %2402 }
0x2c11   :  { %v2404_v51 = vcvt.f32.s32 %v2403_v30 }
0x2c13   :  { %v2407_v3 = vadd.s32 %v2406_v63, %v2404_v51 }
0x2c15   :  { %vm2408_vm0 = vcmp.eq.s32.totalorder %v5245_v24, %v2407_v3 }
0x2c16   :  { %v3719_v55 = vsel %vm2408_vm0, 1.0, %v4500_v0 }
0x2c18   :  { %v2417_v53 = vpop.permute.xlu0 %2416 }
0x2c19   :  { %vm2418_vm1 = vcmp.eq.s32.totalorder %v2417_v53, 1 }
0x2c1a   :  { %v2419_v56 = vsel %vm2418_vm1, %v3719_v55, %v3720_v52 }
0x2c1b   :  { %3721 = vst.msk [vmem:[%s5425_s12 + $0x6] sm:$0x3] %vm1460_vm2, %v2419_v56 }
0x2c1d   :  { %v2725_v14 = vpop.permute.xlu0 %2724 }
0x2c1e   :  { %vm2726_vm3 = vcmp.eq.s32.totalorder %v2725_v14, 1 }
0x2c40   :  { %v2711_v23 = vpop.xlane.xlu1 %2710 }
0x2c41   :  { %v2712_v13 = vcvt.f32.s32 %v2711_v23 }
0x2c43   :  { %v2715_v19 = vadd.s32 %v2714_v43, %v2712_v13 }
0x2c44   :  { %v3019_v15 = vpop.xlane.xlu1 %3018 }
0x2c45   :  { %vm2716_vm4 = vcmp.eq.s32.totalorder %v5245_v24, %v2715_v19  ;;  %v3020_v57 = vcvt.f32.s32 %v3019_v15 }
0x2c46   :  { %v3730_v20 = vsel %vm2716_vm4, 1.0, %v4500_v0 }
0x2c47   :  { %v3023_v22 = vadd.s32 %v3022_v18, %v3020_v57  ;;  %v2727_v25 = vsel %vm2726_vm3, %v3730_v20, %v3731_v16 }
0x2c48   :  { %3732 = vst.msk [vmem:[%s5425_s12 + $0x8] sm:$0x3] %vm1460_vm2, %v2727_v25  ;;  %v3631_v2 = vpop.xlane.xlu1 %3630 }
0x2c49   :  { %vm3632_vm5 = vcmp.eq.f32.partialorder %v3629_v46, %v3631_v2  ;;  %vm3024_vm6 = vcmp.eq.s32.totalorder %v5245_v24, %v3023_v22  ;;  %v3637_v58 = vcvt.f32.s32 %v3631_v2 }
0x2c4a   :  { %v3327_v27 = vpop.xlane.xlu0 %3326  ;;  %v3633_v28 = vsel %vm3632_vm5, %v3628_v26, inf  ;;  %v3741_v60 = vsel %vm3024_vm6, 1.0, %v4500_v0 }
0x2c4b   :  { %v3328_v6 = vcvt.f32.s32 %v3327_v27  ;;  %3634 = vmin.xlane.f32.xlu1 %v3633_v28  ;;  %v3638_v9 = vshll.u32 %v3637_v58, 16 }
0x2c4c   :  { %v3033_v8 = vpop.permute.xlu1 %3032 }
0x2c4d   :  { %v3331_v31 = vadd.s32 %v3330_v4, %v3328_v6  ;;  %vm3034_vm7 = vcmp.eq.s32.totalorder %v3033_v8, 1 }
0x2c4e   :  { %v3035_v7 = vsel %vm3034_vm7, %v3741_v60, %v3742_v32 }
0x2c4f   :  { %3743 = vst.msk [vmem:[%s5425_s12 + $0xa] sm:$0x3] %vm1460_vm2, %v3035_v7  ;;  %vm3332_vm8 = vcmp.eq.s32.totalorder %v5245_v24, %v3331_v31 }
0x2c50   :  { %v3752_v34 = vsel %vm3332_vm8, 1.0, %v4500_v0 }
0x2c52   :  { %v3341_v54 = vpop.permute.xlu0 %3340 }
0x2c53   :  { %vm3342_vm9 = vcmp.eq.s32.totalorder %v3341_v54, 1 }
0x2c54   :  { %v3343_v36 = vsel %vm3342_vm9, %v3752_v34, %v3753_v33 }
0x2c55   :  { %3754 = vst.msk [vmem:[%s5425_s12 + $0xc] sm:$0x3] %vm1460_vm2, %v3343_v36 }
0x2c5c   :  { %3648 = vperm.xlu1 %4377, %v3646_v62  }
0x2cd4   :  { %v3635_v37 = vpop.xlane.xlu1 %3634 }
0x2cd5   :  { %v3636_v38 = vcvt.f32.s32 %v3635_v37 }
0x2cd7   :  { %v3639_v39 = vadd.s32 %v3638_v9, %v3636_v38 }
0x2cd8   :  { %v3649_v40 = vpop.permute.xlu1 %3648 }
0x2cd9   :  { %vm3640_vm11 = vcmp.eq.s32.totalorder %v5245_v24, %v3639_v39  ;;  %vm3650_vm12 = vcmp.eq.s32.totalorder %v3649_v40, 1 }
0x2cda   :  { %v3763_v41 = vsel %vm3640_vm11, 1.0, %v4500_v0 }
0x2cdb   :  { %v3651_v42 = vsel %vm3650_vm12, %v3763_v41, %v3764_v59 }
0x2cdc   :  { %3765 = vst.msk [vmem:[%s5425_s12 + $0xe] sm:$0x3] %vm1460_vm2, %v3651_v42 }

</bundles_post_ra>
